<compile_context>
chip_gen: v6e
topology: v6e:2x2x1
jax: 0.10.0
libtpu: 0.0.40
codegen_flags: <defaults>
</compile_context>

<pallas_src>
import math
import jax
import jax.numpy as jnp
from jax.experimental import pallas as pl
from jax.experimental.pallas import tpu as pltpu

BS, S, D = 2, 8, 32          # batch, seq len, dim_emb
H, F, NL = 4, 64, 2          # n_head, dim_ffn, n_layer
DH = D // H                  # per-head dim
EPS = 1e-5
SCALE = 1.0 / math.sqrt(DH)
CT = jnp.bfloat16            # MXU operand dtype (accumulation stays f32)


def _layernorm(v, g, b):
    mu = jnp.mean(v, axis=-1, keepdims=True)
    var = jnp.mean(jnp.square(v - mu), axis=-1, keepdims=True)
    return (v - mu) * jax.lax.rsqrt(var + EPS) * g + b


def _gelu(v):  # exact (erf) gelu, matching F.gelu(approximate='none')
    return 0.5 * v * (1.0 + jax.lax.erf(v * (1.0 / math.sqrt(2.0))))


def _mm(a, b):
    # bf16 operands (native MXU format on v6e/v7x), f32 accumulation.
    return jnp.dot(a.astype(CT), b.astype(CT), preferred_element_type=jnp.float32)


def _qkt(q, k):
    # q @ k.T with bf16 operands, f32 accumulation.
    return jax.lax.dot_general(q.astype(CT), k.astype(CT),
                               (((1,), (1,)), ((), ())),
                               preferred_element_type=jnp.float32)


# ----------------------------- fused Pallas kernel -----------------------------

def fused_encoder_kernel(x_ref, pe_ref, ln_ref, wqkv_ref, bqkv_ref, wo_ref,
                         bo_b2_ref, w1_ref, b1_ref, w2_ref, fin_ref, o_ref):
    # x_ref/pe_ref/o_ref: (BS*S, D).  All weights already resident in VMEM.
    x = x_ref[...] + pe_ref[...]                       # SinusoidalPE; dropout=0 -> identity

    for i in range(NL):                                # static layer loop (unrolled)
        ln = ln_ref[i]                                 # (4, D): ln1g, ln1b, ln2g, ln2b
        bo_b2 = bo_b2_ref[i]                           # (2, D): bo, b2

        # --- multi-head self-attention (pre-norm, no mask, not causal) ---
        h = _layernorm(x, ln[0:1], ln[1:2])
        qkv = _mm(h, wqkv_ref[i]) + bqkv_ref[i]        # fused QKV proj -> (BS*S, 3D)
        wo = wo_ref[i]                                 # (D, D)

        attn_parts = []
        for b in range(BS):                            # static batch loop
            qkv_b = qkv[b * S:(b + 1) * S]             # (S, 3D), sublane-aligned slice
            acc = jnp.zeros((S, D), jnp.float32)
            for hh in range(H):                        # static head loop
                q_h = qkv_b[:, hh * DH:(hh + 1) * DH]
                k_h = qkv_b[:, D + hh * DH:D + (hh + 1) * DH]
                v_h = qkv_b[:, 2 * D + hh * DH:2 * D + (hh + 1) * DH]
                s = _qkt(q_h, k_h) * SCALE             # (S, S), f32
                s = s - jnp.max(s, axis=-1, keepdims=True)
                p = jnp.exp(s)
                p = p * pl.reciprocal(jnp.sum(p, axis=-1, keepdims=True), approx=True)
                ctx = _mm(p, v_h)                      # (S, DH)
                # Fold output projection into the head loop: sublane-sliced Wo rows,
                # accumulate into a full-lane-width (S, D) tile -> no lane-dim concat.
                acc = acc + _mm(ctx, wo[hh * DH:(hh + 1) * DH, :])
            attn_parts.append(acc)
        attn = jnp.concatenate(attn_parts, axis=0) + bo_b2[0:1]   # (BS*S, D)
        x = x + attn                                   # residual (dropout=0)

        # --- feed-forward (pre-norm) ---
        h2 = _layernorm(x, ln[2:3], ln[3:4])
        f = _gelu(_mm(h2, w1_ref[i]) + b1_ref[i])
        f = _mm(f, w2_ref[i]) + bo_b2[1:2]
        x = x + f                                      # residual (dropout=0)

    # final norm (norm_first=True -> encoder-level LayerNorm)
    o_ref[...] = _layernorm(x, fin_ref[0:1], fin_ref[1:2])


# ----------------------------- wrapper -----------------------------------------

def transformer_data_encoder(x, pe, params):
    x2 = x.reshape(BS * S, D)                 # merge batch+seq into sublane rows (free in XLA)
    pe2 = jnp.tile(pe, (BS, 1))               # broadcast PE to (BS*S, D) outside the kernel
    ins = (x2, pe2, params['ln'], params['wqkv'], params['bqkv'], params['wo'],
           params['bo_b2'], params['w1'], params['b1'], params['w2'], params['fin'])
    out = pl.pallas_call(
        fused_encoder_kernel,
        out_shape=jax.ShapeDtypeStruct((BS * S, D), jnp.float32),
        in_specs=[pl.BlockSpec(memory_space=pltpu.MemorySpace.VMEM) for _ in ins],
        out_specs=pl.BlockSpec(memory_space=pltpu.MemorySpace.VMEM),
    )(*ins)
    return out.reshape(BS, S, D)


# ----------------------------- params / PE ---------------------------------

def sinusoidal_pe(slen, dim):
    pos = jnp.arange(slen, dtype=jnp.float32)[:, None]
    div = jnp.exp(jnp.arange(0, dim, 2, dtype=jnp.float32) * (-math.log(10000.0) / dim))
    ang = pos * div
    pe = jnp.zeros((slen, dim), jnp.float32)
    pe = pe.at[:, 0::2].set(jnp.sin(ang))
    pe = pe.at[:, 1::2].set(jnp.cos(ang))
    return pe


def init_params(key):
    def w(k, shape):
        return 0.02 * jax.random.normal(k, shape, jnp.float32)

    ln, wqkv, bqkv, wo, bo_b2, w1, b1, w2 = [], [], [], [], [], [], [], []
    for _ in range(NL):
        key, *ks = jax.random.split(key, 13)
        ks = iter(ks)
        ln.append(jnp.stack([jnp.ones((D,), jnp.float32), jnp.zeros((D,), jnp.float32),
                             jnp.ones((D,), jnp.float32), jnp.zeros((D,), jnp.float32)]))
        wq, wk, wv = w(next(ks), (D, D)), w(next(ks), (D, D)), w(next(ks), (D, D))
        bq, bk, bv = w(next(ks), (D,)), w(next(ks), (D,)), w(next(ks), (D,))
        wqkv.append(jnp.concatenate([wq, wk, wv], axis=1))      # (D, 3D)
        bqkv.append(jnp.concatenate([bq, bk, bv])[None, :])      # (1, 3D)
        wo.append(w(next(ks), (D, D)))
        bo = w(next(ks), (D,))
        w1.append(w(next(ks), (D, F)))
        b1.append(w(next(ks), (F,))[None, :])                    # (1, F)
        w2.append(w(next(ks), (F, D)))
        b2 = w(next(ks), (D,))
        bo_b2.append(jnp.stack([bo, b2]))                        # (2, D)
    return {
        'ln': jnp.stack(ln),            # (NL, 4, D)
        'wqkv': jnp.stack(wqkv),        # (NL, D, 3D)
        'bqkv': jnp.stack(bqkv),        # (NL, 1, 3D)
        'wo': jnp.stack(wo),            # (NL, D, D)
        'bo_b2': jnp.stack(bo_b2),      # (NL, 2, D)
        'w1': jnp.stack(w1),            # (NL, D, F)
        'b1': jnp.stack(b1),            # (NL, 1, F)
        'w2': jnp.stack(w2),            # (NL, F, D)
        'fin': jnp.stack([jnp.ones((D,), jnp.float32), jnp.zeros((D,), jnp.float32)]),  # (2, D)
    }


# ----------------------------- pure-JAX reference ---------------------------

def ref_forward(x, pe, params):
    x = x + pe[None]
    for i in range(NL):
        ln = params['ln'][i]
        h = _layernorm(x, ln[0], ln[1])
        qkv = h @ params['wqkv'][i] + params['bqkv'][i][0]
        q = qkv[..., 0 * D:1 * D].reshape(BS, S, H, DH)
        k = qkv[..., 1 * D:2 * D].reshape(BS, S, H, DH)
        v = qkv[..., 2 * D:3 * D].reshape(BS, S, H, DH)
        scores = jnp.einsum('bqhd,bkhd->bhqk', q, k) * SCALE
        p = jax.nn.softmax(scores, axis=-1)
        ctx = jnp.einsum('bhqk,bkhd->bqhd', p, v).reshape(BS, S, D)
        x = x + ctx @ params['wo'][i] + params['bo_b2'][i][0]
        h2 = _layernorm(x, ln[2], ln[3])
        x = x + _gelu(h2 @ params['w1'][i] + params['b1'][i][0]) @ params['w2'][i] \
              + params['bo_b2'][i][1]
    return _layernorm(x, params['fin'][0], params['fin'][1])


if __name__ == "__main__":
    key = jax.random.PRNGKey(0)
    key, xk = jax.random.split(key)
    x = jax.random.normal(xk, (BS, S, D), jnp.float32)

    params = init_params(key)
    pe = sinusoidal_pe(S, D)

    out = jax.jit(transformer_data_encoder)(x, pe, params)
    out = jax.block_until_ready(out)

    ref = ref_forward(x, pe, params)
    assert out.shape == (BS, S, D), out.shape
    max_err = float(jnp.max(jnp.abs(out - ref)))
    assert jnp.allclose(out, ref, atol=2e-2, rtol=2e-2), max_err
    print("KERNEL_OK")
</pallas_src>

<mosaic_0001>
module attributes {stable_mosaic.version = 11 : i64} {
  func.func @fused_encoder_kernel(%arg0: memref<16x32xf32, #tpu.memory_space<vmem>>, %arg1: memref<16x32xf32, #tpu.memory_space<vmem>>, %arg2: memref<2x4x32xf32, #tpu.memory_space<vmem>>, %arg3: memref<2x32x96xf32, #tpu.memory_space<vmem>>, %arg4: memref<2x1x96xf32, #tpu.memory_space<vmem>>, %arg5: memref<2x32x32xf32, #tpu.memory_space<vmem>>, %arg6: memref<2x2x32xf32, #tpu.memory_space<vmem>>, %arg7: memref<2x32x64xf32, #tpu.memory_space<vmem>>, %arg8: memref<2x1x64xf32, #tpu.memory_space<vmem>>, %arg9: memref<2x64x32xf32, #tpu.memory_space<vmem>>, %arg10: memref<2x32xf32, #tpu.memory_space<vmem>>, %arg11: memref<16x32xf32, #tpu.memory_space<vmem>>) attributes {dimension_semantics = [], scalar_prefetch = 0 : i64, scratch_operands = 0 : i64, tpu.core_type = #tpu.core_type<tc>} {
    %c0 = arith.constant 0 : index
    %c0_0 = arith.constant 0 : index
    %0 = vector.load %arg0[%c0, %c0_0] : memref<16x32xf32, #tpu.memory_space<vmem>>, vector<16x32xf32>
    %c0_1 = arith.constant 0 : index
    %c0_2 = arith.constant 0 : index
    %1 = vector.load %arg1[%c0_1, %c0_2] : memref<16x32xf32, #tpu.memory_space<vmem>>, vector<16x32xf32>
    %2 = arith.addf %0, %1 : vector<16x32xf32>
    %c0_3 = arith.constant 0 : index
    %c0_4 = arith.constant 0 : index
    %c0_5 = arith.constant 0 : index
    %3 = vector.load %arg2[%c0_3, %c0_4, %c0_5] : memref<2x4x32xf32, #tpu.memory_space<vmem>>, vector<1x4x32xf32>
    %4 = vector.shape_cast %3 : vector<1x4x32xf32> to vector<4x32xf32>
    %c0_6 = arith.constant 0 : index
    %c0_7 = arith.constant 0 : index
    %c0_8 = arith.constant 0 : index
    %5 = vector.load %arg6[%c0_6, %c0_7, %c0_8] : memref<2x2x32xf32, #tpu.memory_space<vmem>>, vector<1x2x32xf32>
    %6 = vector.shape_cast %5 : vector<1x2x32xf32> to vector<2x32xf32>
    %7 = vector.extract_strided_slice %4 {offsets = [0, 0], sizes = [1, 32], strides = [1, 1]} : vector<4x32xf32> to vector<1x32xf32>
    %8 = vector.extract_strided_slice %4 {offsets = [1, 0], sizes = [1, 32], strides = [1, 1]} : vector<4x32xf32> to vector<1x32xf32>
    %cst = arith.constant dense<0.000000e+00> : vector<16xf32>
    %9 = vector.multi_reduction <add>, %2, %cst [1] : vector<16x32xf32> to vector<16xf32>
    %10 = vector.shape_cast %9 : vector<16xf32> to vector<16x1xf32>
    %cst_9 = arith.constant 3.200000e+01 : f32
    %11 = vector.broadcast %cst_9 : f32 to vector<16x1xf32>
    %12 = arith.divf %10, %11 : vector<16x1xf32>
    %13 = vector.broadcast %12 : vector<16x1xf32> to vector<16x32xf32>
    %14 = arith.subf %2, %13 : vector<16x32xf32>
    %15 = arith.mulf %14, %14 : vector<16x32xf32>
    %cst_10 = arith.constant dense<0.000000e+00> : vector<16xf32>
    %16 = vector.multi_reduction <add>, %15, %cst_10 [1] : vector<16x32xf32> to vector<16xf32>
    %17 = vector.shape_cast %16 : vector<16xf32> to vector<16x1xf32>
    %cst_11 = arith.constant 3.200000e+01 : f32
    %18 = vector.broadcast %cst_11 : f32 to vector<16x1xf32>
    %19 = arith.divf %17, %18 : vector<16x1xf32>
    %20 = vector.broadcast %12 : vector<16x1xf32> to vector<16x32xf32>
    %21 = arith.subf %2, %20 : vector<16x32xf32>
    %cst_12 = arith.constant 9.99999974E-6 : f32
    %22 = vector.broadcast %cst_12 : f32 to vector<16x1xf32>
    %23 = arith.addf %19, %22 : vector<16x1xf32>
    %24 = math.rsqrt %23 : vector<16x1xf32>
    %25 = vector.broadcast %24 : vector<16x1xf32> to vector<16x32xf32>
    %26 = arith.mulf %21, %25 : vector<16x32xf32>
    %27 = vector.broadcast %7 : vector<1x32xf32> to vector<16x32xf32>
    %28 = arith.mulf %26, %27 : vector<16x32xf32>
    %29 = vector.broadcast %8 : vector<1x32xf32> to vector<16x32xf32>
    %30 = arith.addf %28, %29 : vector<16x32xf32>
    %c0_13 = arith.constant 0 : index
    %c0_14 = arith.constant 0 : index
    %c0_15 = arith.constant 0 : index
    %31 = vector.load %arg3[%c0_13, %c0_14, %c0_15] : memref<2x32x96xf32, #tpu.memory_space<vmem>>, vector<1x32x96xf32>
    %32 = vector.shape_cast %31 : vector<1x32x96xf32> to vector<32x96xf32>
    %33 = arith.truncf %30 : vector<16x32xf32> to vector<16x32xbf16>
    %34 = arith.truncf %32 : vector<32x96xf32> to vector<32x96xbf16>
    %cst_16 = arith.constant dense<0.000000e+00> : vector<16x96xf32>
    %35 = tpu.matmul %33, %34, %cst_16 {dimension_numbers = #tpu.dot_dimension_numbers<[1], [0], [0], [1], [0, 0, 1, 1], [], []>} : vector<16x32xbf16>, vector<32x96xbf16>, vector<16x96xf32> -> vector<16x96xf32>
    %c0_17 = arith.constant 0 : index
    %c0_18 = arith.constant 0 : index
    %c0_19 = arith.constant 0 : index
    %36 = vector.load %arg4[%c0_17, %c0_18, %c0_19] : memref<2x1x96xf32, #tpu.memory_space<vmem>>, vector<1x1x96xf32>
    %37 = vector.shape_cast %36 : vector<1x1x96xf32> to vector<1x96xf32>
    %38 = vector.broadcast %37 : vector<1x96xf32> to vector<16x96xf32>
    %39 = arith.addf %35, %38 : vector<16x96xf32>
    %c0_20 = arith.constant 0 : index
    %c0_21 = arith.constant 0 : index
    %c0_22 = arith.constant 0 : index
    %40 = vector.load %arg5[%c0_20, %c0_21, %c0_22] : memref<2x32x32xf32, #tpu.memory_space<vmem>>, vector<1x32x32xf32>
    %41 = vector.shape_cast %40 : vector<1x32x32xf32> to vector<32x32xf32>
    %42 = vector.extract_strided_slice %39 {offsets = [0, 0], sizes = [8, 96], strides = [1, 1]} : vector<16x96xf32> to vector<8x96xf32>
    %cst_23 = arith.constant 0.000000e+00 : f32
    %43 = vector.broadcast %cst_23 : f32 to vector<8x32xf32>
    %44 = vector.extract_strided_slice %42 {offsets = [0, 0], sizes = [8, 8], strides = [1, 1]} : vector<8x96xf32> to vector<8x8xf32>
    %45 = vector.extract_strided_slice %42 {offsets = [0, 32], sizes = [8, 8], strides = [1, 1]} : vector<8x96xf32> to vector<8x8xf32>
    %46 = vector.extract_strided_slice %42 {offsets = [0, 64], sizes = [8, 8], strides = [1, 1]} : vector<8x96xf32> to vector<8x8xf32>
    %47 = arith.truncf %44 : vector<8x8xf32> to vector<8x8xbf16>
    %48 = arith.truncf %45 : vector<8x8xf32> to vector<8x8xbf16>
    %cst_24 = arith.constant dense<0.000000e+00> : vector<8x8xf32>
    %49 = tpu.matmul %47, %48, %cst_24 {dimension_numbers = #tpu.dot_dimension_numbers<[1], [1], [0], [0], [0, 0, 1, 0], [], []>} : vector<8x8xbf16>, vector<8x8xbf16>, vector<8x8xf32> -> vector<8x8xf32>
    %cst_25 = arith.constant 0.353553385 : f32
    %50 = vector.broadcast %cst_25 : f32 to vector<8x8xf32>
    %51 = arith.mulf %49, %50 : vector<8x8xf32>
    %cst_26 = arith.constant dense<0xFF800000> : vector<8xf32>
    %52 = vector.multi_reduction <maximumf>, %51, %cst_26 [1] : vector<8x8xf32> to vector<8xf32>
    %53 = vector.shape_cast %52 : vector<8xf32> to vector<8x1xf32>
    %54 = vector.broadcast %53 : vector<8x1xf32> to vector<8x8xf32>
    %55 = arith.subf %51, %54 : vector<8x8xf32>
    %56 = math.exp %55 : vector<8x8xf32>
    %cst_27 = arith.constant dense<0.000000e+00> : vector<8xf32>
    %57 = vector.multi_reduction <add>, %56, %cst_27 [1] : vector<8x8xf32> to vector<8xf32>
    %58 = vector.shape_cast %57 : vector<8xf32> to vector<8x1xf32>
    %59 = tpu.reciprocal %58 {approx = true} : vector<8x1xf32> -> vector<8x1xf32>
    %60 = vector.broadcast %59 : vector<8x1xf32> to vector<8x8xf32>
    %61 = arith.mulf %56, %60 : vector<8x8xf32>
    %62 = arith.truncf %61 : vector<8x8xf32> to vector<8x8xbf16>
    %63 = arith.truncf %46 : vector<8x8xf32> to vector<8x8xbf16>
    %cst_28 = arith.constant dense<0.000000e+00> : vector<8x8xf32>
    %64 = tpu.matmul %62, %63, %cst_28 {dimension_numbers = #tpu.dot_dimension_numbers<[1], [0], [0], [1], [0, 0, 1, 1], [], []>} : vector<8x8xbf16>, vector<8x8xbf16>, vector<8x8xf32> -> vector<8x8xf32>
    %65 = vector.extract_strided_slice %41 {offsets = [0, 0], sizes = [8, 32], strides = [1, 1]} : vector<32x32xf32> to vector<8x32xf32>
    %66 = arith.truncf %64 : vector<8x8xf32> to vector<8x8xbf16>
    %67 = arith.truncf %65 : vector<8x32xf32> to vector<8x32xbf16>
    %cst_29 = arith.constant dense<0.000000e+00> : vector<8x32xf32>
    %68 = tpu.matmul %66, %67, %cst_29 {dimension_numbers = #tpu.dot_dimension_numbers<[1], [0], [0], [1], [0, 0, 1, 1], [], []>} : vector<8x8xbf16>, vector<8x32xbf16>, vector<8x32xf32> -> vector<8x32xf32>
    %69 = arith.addf %43, %68 : vector<8x32xf32>
    %70 = vector.extract_strided_slice %42 {offsets = [0, 8], sizes = [8, 8], strides = [1, 1]} : vector<8x96xf32> to vector<8x8xf32>
    %71 = vector.extract_strided_slice %42 {offsets = [0, 40], sizes = [8, 8], strides = [1, 1]} : vector<8x96xf32> to vector<8x8xf32>
    %72 = vector.extract_strided_slice %42 {offsets = [0, 72], sizes = [8, 8], strides = [1, 1]} : vector<8x96xf32> to vector<8x8xf32>
    %73 = arith.truncf %70 : vector<8x8xf32> to vector<8x8xbf16>
    %74 = arith.truncf %71 : vector<8x8xf32> to vector<8x8xbf16>
    %cst_30 = arith.constant dense<0.000000e+00> : vector<8x8xf32>
    %75 = tpu.matmul %73, %74, %cst_30 {dimension_numbers = #tpu.dot_dimension_numbers<[1], [1], [0], [0], [0, 0, 1, 0], [], []>} : vector<8x8xbf16>, vector<8x8xbf16>, vector<8x8xf32> -> vector<8x8xf32>
    %cst_31 = arith.constant 0.353553385 : f32
    %76 = vector.broadcast %cst_31 : f32 to vector<8x8xf32>
    %77 = arith.mulf %75, %76 : vector<8x8xf32>
    %cst_32 = arith.constant dense<0xFF800000> : vector<8xf32>
    %78 = vector.multi_reduction <maximumf>, %77, %cst_32 [1] : vector<8x8xf32> to vector<8xf32>
    %79 = vector.shape_cast %78 : vector<8xf32> to vector<8x1xf32>
    %80 = vector.broadcast %79 : vector<8x1xf32> to vector<8x8xf32>
    %81 = arith.subf %77, %80 : vector<8x8xf32>
    %82 = math.exp %81 : vector<8x8xf32>
    %cst_33 = arith.constant dense<0.000000e+00> : vector<8xf32>
    %83 = vector.multi_reduction <add>, %82, %cst_33 [1] : vector<8x8xf32> to vector<8xf32>
    %84 = vector.shape_cast %83 : vector<8xf32> to vector<8x1xf32>
    %85 = tpu.reciprocal %84 {approx = true} : vector<8x1xf32> -> vector<8x1xf32>
    %86 = vector.broadcast %85 : vector<8x1xf32> to vector<8x8xf32>
    %87 = arith.mulf %82, %86 : vector<8x8xf32>
    %88 = arith.truncf %87 : vector<8x8xf32> to vector<8x8xbf16>
    %89 = arith.truncf %72 : vector<8x8xf32> to vector<8x8xbf16>
    %cst_34 = arith.constant dense<0.000000e+00> : vector<8x8xf32>
    %90 = tpu.matmul %88, %89, %cst_34 {dimension_numbers = #tpu.dot_dimension_numbers<[1], [0], [0], [1], [0, 0, 1, 1], [], []>} : vector<8x8xbf16>, vector<8x8xbf16>, vector<8x8xf32> -> vector<8x8xf32>
    %91 = vector.extract_strided_slice %41 {offsets = [8, 0], sizes = [8, 32], strides = [1, 1]} : vector<32x32xf32> to vector<8x32xf32>
    %92 = arith.truncf %90 : vector<8x8xf32> to vector<8x8xbf16>
    %93 = arith.truncf %91 : vector<8x32xf32> to vector<8x32xbf16>
    %cst_35 = arith.constant dense<0.000000e+00> : vector<8x32xf32>
    %94 = tpu.matmul %92, %93, %cst_35 {dimension_numbers = #tpu.dot_dimension_numbers<[1], [0], [0], [1], [0, 0, 1, 1], [], []>} : vector<8x8xbf16>, vector<8x32xbf16>, vector<8x32xf32> -> vector<8x32xf32>
    %95 = arith.addf %69, %94 : vector<8x32xf32>
    %96 = vector.extract_strided_slice %42 {offsets = [0, 16], sizes = [8, 8], strides = [1, 1]} : vector<8x96xf32> to vector<8x8xf32>
    %97 = vector.extract_strided_slice %42 {offsets = [0, 48], sizes = [8, 8], strides = [1, 1]} : vector<8x96xf32> to vector<8x8xf32>
    %98 = vector.extract_strided_slice %42 {offsets = [0, 80], sizes = [8, 8], strides = [1, 1]} : vector<8x96xf32> to vector<8x8xf32>
    %99 = arith.truncf %96 : vector<8x8xf32> to vector<8x8xbf16>
    %100 = arith.truncf %97 : vector<8x8xf32> to vector<8x8xbf16>
    %cst_36 = arith.constant dense<0.000000e+00> : vector<8x8xf32>
    %101 = tpu.matmul %99, %100, %cst_36 {dimension_numbers = #tpu.dot_dimension_numbers<[1], [1], [0], [0], [0, 0, 1, 0], [], []>} : vector<8x8xbf16>, vector<8x8xbf16>, vector<8x8xf32> -> vector<8x8xf32>
    %cst_37 = arith.constant 0.353553385 : f32
    %102 = vector.broadcast %cst_37 : f32 to vector<8x8xf32>
    %103 = arith.mulf %101, %102 : vector<8x8xf32>
    %cst_38 = arith.constant dense<0xFF800000> : vector<8xf32>
    %104 = vector.multi_reduction <maximumf>, %103, %cst_38 [1] : vector<8x8xf32> to vector<8xf32>
    %105 = vector.shape_cast %104 : vector<8xf32> to vector<8x1xf32>
    %106 = vector.broadcast %105 : vector<8x1xf32> to vector<8x8xf32>
    %107 = arith.subf %103, %106 : vector<8x8xf32>
    %108 = math.exp %107 : vector<8x8xf32>
    %cst_39 = arith.constant dense<0.000000e+00> : vector<8xf32>
    %109 = vector.multi_reduction <add>, %108, %cst_39 [1] : vector<8x8xf32> to vector<8xf32>
    %110 = vector.shape_cast %109 : vector<8xf32> to vector<8x1xf32>
    %111 = tpu.reciprocal %110 {approx = true} : vector<8x1xf32> -> vector<8x1xf32>
    %112 = vector.broadcast %111 : vector<8x1xf32> to vector<8x8xf32>
    %113 = arith.mulf %108, %112 : vector<8x8xf32>
    %114 = arith.truncf %113 : vector<8x8xf32> to vector<8x8xbf16>
    %115 = arith.truncf %98 : vector<8x8xf32> to vector<8x8xbf16>
    %cst_40 = arith.constant dense<0.000000e+00> : vector<8x8xf32>
    %116 = tpu.matmul %114, %115, %cst_40 {dimension_numbers = #tpu.dot_dimension_numbers<[1], [0], [0], [1], [0, 0, 1, 1], [], []>} : vector<8x8xbf16>, vector<8x8xbf16>, vector<8x8xf32> -> vector<8x8xf32>
    %117 = vector.extract_strided_slice %41 {offsets = [16, 0], sizes = [8, 32], strides = [1, 1]} : vector<32x32xf32> to vector<8x32xf32>
    %118 = arith.truncf %116 : vector<8x8xf32> to vector<8x8xbf16>
    %119 = arith.truncf %117 : vector<8x32xf32> to vector<8x32xbf16>
    %cst_41 = arith.constant dense<0.000000e+00> : vector<8x32xf32>
    %120 = tpu.matmul %118, %119, %cst_41 {dimension_numbers = #tpu.dot_dimension_numbers<[1], [0], [0], [1], [0, 0, 1, 1], [], []>} : vector<8x8xbf16>, vector<8x32xbf16>, vector<8x32xf32> -> vector<8x32xf32>
    %121 = arith.addf %95, %120 : vector<8x32xf32>
    %122 = vector.extract_strided_slice %42 {offsets = [0, 24], sizes = [8, 8], strides = [1, 1]} : vector<8x96xf32> to vector<8x8xf32>
    %123 = vector.extract_strided_slice %42 {offsets = [0, 56], sizes = [8, 8], strides = [1, 1]} : vector<8x96xf32> to vector<8x8xf32>
    %124 = vector.extract_strided_slice %42 {offsets = [0, 88], sizes = [8, 8], strides = [1, 1]} : vector<8x96xf32> to vector<8x8xf32>
    %125 = arith.truncf %122 : vector<8x8xf32> to vector<8x8xbf16>
    %126 = arith.truncf %123 : vector<8x8xf32> to vector<8x8xbf16>
    %cst_42 = arith.constant dense<0.000000e+00> : vector<8x8xf32>
    %127 = tpu.matmul %125, %126, %cst_42 {dimension_numbers = #tpu.dot_dimension_numbers<[1], [1], [0], [0], [0, 0, 1, 0], [], []>} : vector<8x8xbf16>, vector<8x8xbf16>, vector<8x8xf32> -> vector<8x8xf32>
    %cst_43 = arith.constant 0.353553385 : f32
    %128 = vector.broadcast %cst_43 : f32 to vector<8x8xf32>
    %129 = arith.mulf %127, %128 : vector<8x8xf32>
    %cst_44 = arith.constant dense<0xFF800000> : vector<8xf32>
    %130 = vector.multi_reduction <maximumf>, %129, %cst_44 [1] : vector<8x8xf32> to vector<8xf32>
    %131 = vector.shape_cast %130 : vector<8xf32> to vector<8x1xf32>
    %132 = vector.broadcast %131 : vector<8x1xf32> to vector<8x8xf32>
    %133 = arith.subf %129, %132 : vector<8x8xf32>
    %134 = math.exp %133 : vector<8x8xf32>
    %cst_45 = arith.constant dense<0.000000e+00> : vector<8xf32>
    %135 = vector.multi_reduction <add>, %134, %cst_45 [1] : vector<8x8xf32> to vector<8xf32>
    %136 = vector.shape_cast %135 : vector<8xf32> to vector<8x1xf32>
    %137 = tpu.reciprocal %136 {approx = true} : vector<8x1xf32> -> vector<8x1xf32>
    %138 = vector.broadcast %137 : vector<8x1xf32> to vector<8x8xf32>
    %139 = arith.mulf %134, %138 : vector<8x8xf32>
    %140 = arith.truncf %139 : vector<8x8xf32> to vector<8x8xbf16>
    %141 = arith.truncf %124 : vector<8x8xf32> to vector<8x8xbf16>
    %cst_46 = arith.constant dense<0.000000e+00> : vector<8x8xf32>
    %142 = tpu.matmul %140, %141, %cst_46 {dimension_numbers = #tpu.dot_dimension_numbers<[1], [0], [0], [1], [0, 0, 1, 1], [], []>} : vector<8x8xbf16>, vector<8x8xbf16>, vector<8x8xf32> -> vector<8x8xf32>
    %143 = vector.extract_strided_slice %41 {offsets = [24, 0], sizes = [8, 32], strides = [1, 1]} : vector<32x32xf32> to vector<8x32xf32>
    %144 = arith.truncf %142 : vector<8x8xf32> to vector<8x8xbf16>
    %145 = arith.truncf %143 : vector<8x32xf32> to vector<8x32xbf16>
    %cst_47 = arith.constant dense<0.000000e+00> : vector<8x32xf32>
    %146 = tpu.matmul %144, %145, %cst_47 {dimension_numbers = #tpu.dot_dimension_numbers<[1], [0], [0], [1], [0, 0, 1, 1], [], []>} : vector<8x8xbf16>, vector<8x32xbf16>, vector<8x32xf32> -> vector<8x32xf32>
    %147 = arith.addf %121, %146 : vector<8x32xf32>
    %148 = vector.extract_strided_slice %39 {offsets = [8, 0], sizes = [8, 96], strides = [1, 1]} : vector<16x96xf32> to vector<8x96xf32>
    %cst_48 = arith.constant 0.000000e+00 : f32
    %149 = vector.broadcast %cst_48 : f32 to vector<8x32xf32>
    %150 = vector.extract_strided_slice %148 {offsets = [0, 0], sizes = [8, 8], strides = [1, 1]} : vector<8x96xf32> to vector<8x8xf32>
    %151 = vector.extract_strided_slice %148 {offsets = [0, 32], sizes = [8, 8], strides = [1, 1]} : vector<8x96xf32> to vector<8x8xf32>
    %152 = vector.extract_strided_slice %148 {offsets = [0, 64], sizes = [8, 8], strides = [1, 1]} : vector<8x96xf32> to vector<8x8xf32>
    %153 = arith.truncf %150 : vector<8x8xf32> to vector<8x8xbf16>
    %154 = arith.truncf %151 : vector<8x8xf32> to vector<8x8xbf16>
    %cst_49 = arith.constant dense<0.000000e+00> : vector<8x8xf32>
    %155 = tpu.matmul %153, %154, %cst_49 {dimension_numbers = #tpu.dot_dimension_numbers<[1], [1], [0], [0], [0, 0, 1, 0], [], []>} : vector<8x8xbf16>, vector<8x8xbf16>, vector<8x8xf32> -> vector<8x8xf32>
    %cst_50 = arith.constant 0.353553385 : f32
    %156 = vector.broadcast %cst_50 : f32 to vector<8x8xf32>
    %157 = arith.mulf %155, %156 : vector<8x8xf32>
    %cst_51 = arith.constant dense<0xFF800000> : vector<8xf32>
    %158 = vector.multi_reduction <maximumf>, %157, %cst_51 [1] : vector<8x8xf32> to vector<8xf32>
    %159 = vector.shape_cast %158 : vector<8xf32> to vector<8x1xf32>
    %160 = vector.broadcast %159 : vector<8x1xf32> to vector<8x8xf32>
    %161 = arith.subf %157, %160 : vector<8x8xf32>
    %162 = math.exp %161 : vector<8x8xf32>
    %cst_52 = arith.constant dense<0.000000e+00> : vector<8xf32>
    %163 = vector.multi_reduction <add>, %162, %cst_52 [1] : vector<8x8xf32> to vector<8xf32>
    %164 = vector.shape_cast %163 : vector<8xf32> to vector<8x1xf32>
    %165 = tpu.reciprocal %164 {approx = true} : vector<8x1xf32> -> vector<8x1xf32>
    %166 = vector.broadcast %165 : vector<8x1xf32> to vector<8x8xf32>
    %167 = arith.mulf %162, %166 : vector<8x8xf32>
    %168 = arith.truncf %167 : vector<8x8xf32> to vector<8x8xbf16>
    %169 = arith.truncf %152 : vector<8x8xf32> to vector<8x8xbf16>
    %cst_53 = arith.constant dense<0.000000e+00> : vector<8x8xf32>
    %170 = tpu.matmul %168, %169, %cst_53 {dimension_numbers = #tpu.dot_dimension_numbers<[1], [0], [0], [1], [0, 0, 1, 1], [], []>} : vector<8x8xbf16>, vector<8x8xbf16>, vector<8x8xf32> -> vector<8x8xf32>
    %171 = vector.extract_strided_slice %41 {offsets = [0, 0], sizes = [8, 32], strides = [1, 1]} : vector<32x32xf32> to vector<8x32xf32>
    %172 = arith.truncf %170 : vector<8x8xf32> to vector<8x8xbf16>
    %173 = arith.truncf %171 : vector<8x32xf32> to vector<8x32xbf16>
    %cst_54 = arith.constant dense<0.000000e+00> : vector<8x32xf32>
    %174 = tpu.matmul %172, %173, %cst_54 {dimension_numbers = #tpu.dot_dimension_numbers<[1], [0], [0], [1], [0, 0, 1, 1], [], []>} : vector<8x8xbf16>, vector<8x32xbf16>, vector<8x32xf32> -> vector<8x32xf32>
    %175 = arith.addf %149, %174 : vector<8x32xf32>
    %176 = vector.extract_strided_slice %148 {offsets = [0, 8], sizes = [8, 8], strides = [1, 1]} : vector<8x96xf32> to vector<8x8xf32>
    %177 = vector.extract_strided_slice %148 {offsets = [0, 40], sizes = [8, 8], strides = [1, 1]} : vector<8x96xf32> to vector<8x8xf32>
    %178 = vector.extract_strided_slice %148 {offsets = [0, 72], sizes = [8, 8], strides = [1, 1]} : vector<8x96xf32> to vector<8x8xf32>
    %179 = arith.truncf %176 : vector<8x8xf32> to vector<8x8xbf16>
    %180 = arith.truncf %177 : vector<8x8xf32> to vector<8x8xbf16>
    %cst_55 = arith.constant dense<0.000000e+00> : vector<8x8xf32>
    %181 = tpu.matmul %179, %180, %cst_55 {dimension_numbers = #tpu.dot_dimension_numbers<[1], [1], [0], [0], [0, 0, 1, 0], [], []>} : vector<8x8xbf16>, vector<8x8xbf16>, vector<8x8xf32> -> vector<8x8xf32>
    %cst_56 = arith.constant 0.353553385 : f32
    %182 = vector.broadcast %cst_56 : f32 to vector<8x8xf32>
    %183 = arith.mulf %181, %182 : vector<8x8xf32>
    %cst_57 = arith.constant dense<0xFF800000> : vector<8xf32>
    %184 = vector.multi_reduction <maximumf>, %183, %cst_57 [1] : vector<8x8xf32> to vector<8xf32>
    %185 = vector.shape_cast %184 : vector<8xf32> to vector<8x1xf32>
    %186 = vector.broadcast %185 : vector<8x1xf32> to vector<8x8xf32>
    %187 = arith.subf %183, %186 : vector<8x8xf32>
    %188 = math.exp %187 : vector<8x8xf32>
    %cst_58 = arith.constant dense<0.000000e+00> : vector<8xf32>
    %189 = vector.multi_reduction <add>, %188, %cst_58 [1] : vector<8x8xf32> to vector<8xf32>
    %190 = vector.shape_cast %189 : vector<8xf32> to vector<8x1xf32>
    %191 = tpu.reciprocal %190 {approx = true} : vector<8x1xf32> -> vector<8x1xf32>
    %192 = vector.broadcast %191 : vector<8x1xf32> to vector<8x8xf32>
    %193 = arith.mulf %188, %192 : vector<8x8xf32>
    %194 = arith.truncf %193 : vector<8x8xf32> to vector<8x8xbf16>
    %195 = arith.truncf %178 : vector<8x8xf32> to vector<8x8xbf16>
    %cst_59 = arith.constant dense<0.000000e+00> : vector<8x8xf32>
    %196 = tpu.matmul %194, %195, %cst_59 {dimension_numbers = #tpu.dot_dimension_numbers<[1], [0], [0], [1], [0, 0, 1, 1], [], []>} : vector<8x8xbf16>, vector<8x8xbf16>, vector<8x8xf32> -> vector<8x8xf32>
    %197 = vector.extract_strided_slice %41 {offsets = [8, 0], sizes = [8, 32], strides = [1, 1]} : vector<32x32xf32> to vector<8x32xf32>
    %198 = arith.truncf %196 : vector<8x8xf32> to vector<8x8xbf16>
    %199 = arith.truncf %197 : vector<8x32xf32> to vector<8x32xbf16>
    %cst_60 = arith.constant dense<0.000000e+00> : vector<8x32xf32>
    %200 = tpu.matmul %198, %199, %cst_60 {dimension_numbers = #tpu.dot_dimension_numbers<[1], [0], [0], [1], [0, 0, 1, 1], [], []>} : vector<8x8xbf16>, vector<8x32xbf16>, vector<8x32xf32> -> vector<8x32xf32>
    %201 = arith.addf %175, %200 : vector<8x32xf32>
    %202 = vector.extract_strided_slice %148 {offsets = [0, 16], sizes = [8, 8], strides = [1, 1]} : vector<8x96xf32> to vector<8x8xf32>
    %203 = vector.extract_strided_slice %148 {offsets = [0, 48], sizes = [8, 8], strides = [1, 1]} : vector<8x96xf32> to vector<8x8xf32>
    %204 = vector.extract_strided_slice %148 {offsets = [0, 80], sizes = [8, 8], strides = [1, 1]} : vector<8x96xf32> to vector<8x8xf32>
    %205 = arith.truncf %202 : vector<8x8xf32> to vector<8x8xbf16>
    %206 = arith.truncf %203 : vector<8x8xf32> to vector<8x8xbf16>
    %cst_61 = arith.constant dense<0.000000e+00> : vector<8x8xf32>
    %207 = tpu.matmul %205, %206, %cst_61 {dimension_numbers = #tpu.dot_dimension_numbers<[1], [1], [0], [0], [0, 0, 1, 0], [], []>} : vector<8x8xbf16>, vector<8x8xbf16>, vector<8x8xf32> -> vector<8x8xf32>
    %cst_62 = arith.constant 0.353553385 : f32
    %208 = vector.broadcast %cst_62 : f32 to vector<8x8xf32>
    %209 = arith.mulf %207, %208 : vector<8x8xf32>
    %cst_63 = arith.constant dense<0xFF800000> : vector<8xf32>
    %210 = vector.multi_reduction <maximumf>, %209, %cst_63 [1] : vector<8x8xf32> to vector<8xf32>
    %211 = vector.shape_cast %210 : vector<8xf32> to vector<8x1xf32>
    %212 = vector.broadcast %211 : vector<8x1xf32> to vector<8x8xf32>
    %213 = arith.subf %209, %212 : vector<8x8xf32>
    %214 = math.exp %213 : vector<8x8xf32>
    %cst_64 = arith.constant dense<0.000000e+00> : vector<8xf32>
    %215 = vector.multi_reduction <add>, %214, %cst_64 [1] : vector<8x8xf32> to vector<8xf32>
    %216 = vector.shape_cast %215 : vector<8xf32> to vector<8x1xf32>
    %217 = tpu.reciprocal %216 {approx = true} : vector<8x1xf32> -> vector<8x1xf32>
    %218 = vector.broadcast %217 : vector<8x1xf32> to vector<8x8xf32>
    %219 = arith.mulf %214, %218 : vector<8x8xf32>
    %220 = arith.truncf %219 : vector<8x8xf32> to vector<8x8xbf16>
    %221 = arith.truncf %204 : vector<8x8xf32> to vector<8x8xbf16>
    %cst_65 = arith.constant dense<0.000000e+00> : vector<8x8xf32>
    %222 = tpu.matmul %220, %221, %cst_65 {dimension_numbers = #tpu.dot_dimension_numbers<[1], [0], [0], [1], [0, 0, 1, 1], [], []>} : vector<8x8xbf16>, vector<8x8xbf16>, vector<8x8xf32> -> vector<8x8xf32>
    %223 = vector.extract_strided_slice %41 {offsets = [16, 0], sizes = [8, 32], strides = [1, 1]} : vector<32x32xf32> to vector<8x32xf32>
    %224 = arith.truncf %222 : vector<8x8xf32> to vector<8x8xbf16>
    %225 = arith.truncf %223 : vector<8x32xf32> to vector<8x32xbf16>
    %cst_66 = arith.constant dense<0.000000e+00> : vector<8x32xf32>
    %226 = tpu.matmul %224, %225, %cst_66 {dimension_numbers = #tpu.dot_dimension_numbers<[1], [0], [0], [1], [0, 0, 1, 1], [], []>} : vector<8x8xbf16>, vector<8x32xbf16>, vector<8x32xf32> -> vector<8x32xf32>
    %227 = arith.addf %201, %226 : vector<8x32xf32>
    %228 = vector.extract_strided_slice %148 {offsets = [0, 24], sizes = [8, 8], strides = [1, 1]} : vector<8x96xf32> to vector<8x8xf32>
    %229 = vector.extract_strided_slice %148 {offsets = [0, 56], sizes = [8, 8], strides = [1, 1]} : vector<8x96xf32> to vector<8x8xf32>
    %230 = vector.extract_strided_slice %148 {offsets = [0, 88], sizes = [8, 8], strides = [1, 1]} : vector<8x96xf32> to vector<8x8xf32>
    %231 = arith.truncf %228 : vector<8x8xf32> to vector<8x8xbf16>
    %232 = arith.truncf %229 : vector<8x8xf32> to vector<8x8xbf16>
    %cst_67 = arith.constant dense<0.000000e+00> : vector<8x8xf32>
    %233 = tpu.matmul %231, %232, %cst_67 {dimension_numbers = #tpu.dot_dimension_numbers<[1], [1], [0], [0], [0, 0, 1, 0], [], []>} : vector<8x8xbf16>, vector<8x8xbf16>, vector<8x8xf32> -> vector<8x8xf32>
    %cst_68 = arith.constant 0.353553385 : f32
    %234 = vector.broadcast %cst_68 : f32 to vector<8x8xf32>
    %235 = arith.mulf %233, %234 : vector<8x8xf32>
    %cst_69 = arith.constant dense<0xFF800000> : vector<8xf32>
    %236 = vector.multi_reduction <maximumf>, %235, %cst_69 [1] : vector<8x8xf32> to vector<8xf32>
    %237 = vector.shape_cast %236 : vector<8xf32> to vector<8x1xf32>
    %238 = vector.broadcast %237 : vector<8x1xf32> to vector<8x8xf32>
    %239 = arith.subf %235, %238 : vector<8x8xf32>
    %240 = math.exp %239 : vector<8x8xf32>
    %cst_70 = arith.constant dense<0.000000e+00> : vector<8xf32>
    %241 = vector.multi_reduction <add>, %240, %cst_70 [1] : vector<8x8xf32> to vector<8xf32>
    %242 = vector.shape_cast %241 : vector<8xf32> to vector<8x1xf32>
    %243 = tpu.reciprocal %242 {approx = true} : vector<8x1xf32> -> vector<8x1xf32>
    %244 = vector.broadcast %243 : vector<8x1xf32> to vector<8x8xf32>
    %245 = arith.mulf %240, %244 : vector<8x8xf32>
    %246 = arith.truncf %245 : vector<8x8xf32> to vector<8x8xbf16>
    %247 = arith.truncf %230 : vector<8x8xf32> to vector<8x8xbf16>
    %cst_71 = arith.constant dense<0.000000e+00> : vector<8x8xf32>
    %248 = tpu.matmul %246, %247, %cst_71 {dimension_numbers = #tpu.dot_dimension_numbers<[1], [0], [0], [1], [0, 0, 1, 1], [], []>} : vector<8x8xbf16>, vector<8x8xbf16>, vector<8x8xf32> -> vector<8x8xf32>
    %249 = vector.extract_strided_slice %41 {offsets = [24, 0], sizes = [8, 32], strides = [1, 1]} : vector<32x32xf32> to vector<8x32xf32>
    %250 = arith.truncf %248 : vector<8x8xf32> to vector<8x8xbf16>
    %251 = arith.truncf %249 : vector<8x32xf32> to vector<8x32xbf16>
    %cst_72 = arith.constant dense<0.000000e+00> : vector<8x32xf32>
    %252 = tpu.matmul %250, %251, %cst_72 {dimension_numbers = #tpu.dot_dimension_numbers<[1], [0], [0], [1], [0, 0, 1, 1], [], []>} : vector<8x8xbf16>, vector<8x32xbf16>, vector<8x32xf32> -> vector<8x32xf32>
    %253 = arith.addf %227, %252 : vector<8x32xf32>
    %254 = tpu.concatenate %147, %253 in 0 : vector<8x32xf32>, vector<8x32xf32> -> vector<16x32xf32>
    %255 = vector.extract_strided_slice %6 {offsets = [0, 0], sizes = [1, 32], strides = [1, 1]} : vector<2x32xf32> to vector<1x32xf32>
    %256 = vector.broadcast %255 : vector<1x32xf32> to vector<16x32xf32>
    %257 = arith.addf %254, %256 : vector<16x32xf32>
    %258 = arith.addf %2, %257 : vector<16x32xf32>
    %259 = vector.extract_strided_slice %4 {offsets = [2, 0], sizes = [1, 32], strides = [1, 1]} : vector<4x32xf32> to vector<1x32xf32>
    %260 = vector.extract_strided_slice %4 {offsets = [3, 0], sizes = [1, 32], strides = [1, 1]} : vector<4x32xf32> to vector<1x32xf32>
    %cst_73 = arith.constant dense<0.000000e+00> : vector<16xf32>
    %261 = vector.multi_reduction <add>, %258, %cst_73 [1] : vector<16x32xf32> to vector<16xf32>
    %262 = vector.shape_cast %261 : vector<16xf32> to vector<16x1xf32>
    %cst_74 = arith.constant 3.200000e+01 : f32
    %263 = vector.broadcast %cst_74 : f32 to vector<16x1xf32>
    %264 = arith.divf %262, %263 : vector<16x1xf32>
    %265 = vector.broadcast %264 : vector<16x1xf32> to vector<16x32xf32>
    %266 = arith.subf %258, %265 : vector<16x32xf32>
    %267 = arith.mulf %266, %266 : vector<16x32xf32>
    %cst_75 = arith.constant dense<0.000000e+00> : vector<16xf32>
    %268 = vector.multi_reduction <add>, %267, %cst_75 [1] : vector<16x32xf32> to vector<16xf32>
    %269 = vector.shape_cast %268 : vector<16xf32> to vector<16x1xf32>
    %cst_76 = arith.constant 3.200000e+01 : f32
    %270 = vector.broadcast %cst_76 : f32 to vector<16x1xf32>
    %271 = arith.divf %269, %270 : vector<16x1xf32>
    %272 = vector.broadcast %264 : vector<16x1xf32> to vector<16x32xf32>
    %273 = arith.subf %258, %272 : vector<16x32xf32>
    %cst_77 = arith.constant 9.99999974E-6 : f32
    %274 = vector.broadcast %cst_77 : f32 to vector<16x1xf32>
    %275 = arith.addf %271, %274 : vector<16x1xf32>
    %276 = math.rsqrt %275 : vector<16x1xf32>
    %277 = vector.broadcast %276 : vector<16x1xf32> to vector<16x32xf32>
    %278 = arith.mulf %273, %277 : vector<16x32xf32>
    %279 = vector.broadcast %259 : vector<1x32xf32> to vector<16x32xf32>
    %280 = arith.mulf %278, %279 : vector<16x32xf32>
    %281 = vector.broadcast %260 : vector<1x32xf32> to vector<16x32xf32>
    %282 = arith.addf %280, %281 : vector<16x32xf32>
    %c0_78 = arith.constant 0 : index
    %c0_79 = arith.constant 0 : index
    %c0_80 = arith.constant 0 : index
    %283 = vector.load %arg7[%c0_78, %c0_79, %c0_80] : memref<2x32x64xf32, #tpu.memory_space<vmem>>, vector<1x32x64xf32>
    %284 = vector.shape_cast %283 : vector<1x32x64xf32> to vector<32x64xf32>
    %285 = arith.truncf %282 : vector<16x32xf32> to vector<16x32xbf16>
    %286 = arith.truncf %284 : vector<32x64xf32> to vector<32x64xbf16>
    %cst_81 = arith.constant dense<0.000000e+00> : vector<16x64xf32>
    %287 = tpu.matmul %285, %286, %cst_81 {dimension_numbers = #tpu.dot_dimension_numbers<[1], [0], [0], [1], [0, 0, 1, 1], [], []>} : vector<16x32xbf16>, vector<32x64xbf16>, vector<16x64xf32> -> vector<16x64xf32>
    %c0_82 = arith.constant 0 : index
    %c0_83 = arith.constant 0 : index
    %c0_84 = arith.constant 0 : index
    %288 = vector.load %arg8[%c0_82, %c0_83, %c0_84] : memref<2x1x64xf32, #tpu.memory_space<vmem>>, vector<1x1x64xf32>
    %289 = vector.shape_cast %288 : vector<1x1x64xf32> to vector<1x64xf32>
    %290 = vector.broadcast %289 : vector<1x64xf32> to vector<16x64xf32>
    %291 = arith.addf %287, %290 : vector<16x64xf32>
    %cst_85 = arith.constant 5.000000e-01 : f32
    %292 = vector.broadcast %cst_85 : f32 to vector<16x64xf32>
    %293 = arith.mulf %292, %291 : vector<16x64xf32>
    %cst_86 = arith.constant 0.707106769 : f32
    %294 = vector.broadcast %cst_86 : f32 to vector<16x64xf32>
    %295 = arith.mulf %291, %294 : vector<16x64xf32>
    %296 = math.erf %295 : vector<16x64xf32>
    %cst_87 = arith.constant 1.000000e+00 : f32
    %297 = vector.broadcast %cst_87 : f32 to vector<16x64xf32>
    %298 = arith.addf %297, %296 : vector<16x64xf32>
    %299 = arith.mulf %293, %298 : vector<16x64xf32>
    %c0_88 = arith.constant 0 : index
    %c0_89 = arith.constant 0 : index
    %c0_90 = arith.constant 0 : index
    %300 = vector.load %arg9[%c0_88, %c0_89, %c0_90] : memref<2x64x32xf32, #tpu.memory_space<vmem>>, vector<1x64x32xf32>
    %301 = vector.shape_cast %300 : vector<1x64x32xf32> to vector<64x32xf32>
    %302 = arith.truncf %299 : vector<16x64xf32> to vector<16x64xbf16>
    %303 = arith.truncf %301 : vector<64x32xf32> to vector<64x32xbf16>
    %cst_91 = arith.constant dense<0.000000e+00> : vector<16x32xf32>
    %304 = tpu.matmul %302, %303, %cst_91 {dimension_numbers = #tpu.dot_dimension_numbers<[1], [0], [0], [1], [0, 0, 1, 1], [], []>} : vector<16x64xbf16>, vector<64x32xbf16>, vector<16x32xf32> -> vector<16x32xf32>
    %305 = vector.extract_strided_slice %6 {offsets = [1, 0], sizes = [1, 32], strides = [1, 1]} : vector<2x32xf32> to vector<1x32xf32>
    %306 = vector.broadcast %305 : vector<1x32xf32> to vector<16x32xf32>
    %307 = arith.addf %304, %306 : vector<16x32xf32>
    %308 = arith.addf %258, %307 : vector<16x32xf32>
    %c1 = arith.constant 1 : index
    %c0_92 = arith.constant 0 : index
    %c0_93 = arith.constant 0 : index
    %309 = vector.load %arg2[%c1, %c0_92, %c0_93] : memref<2x4x32xf32, #tpu.memory_space<vmem>>, vector<1x4x32xf32>
    %310 = vector.shape_cast %309 : vector<1x4x32xf32> to vector<4x32xf32>
    %c1_94 = arith.constant 1 : index
    %c0_95 = arith.constant 0 : index
    %c0_96 = arith.constant 0 : index
    %311 = vector.load %arg6[%c1_94, %c0_95, %c0_96] : memref<2x2x32xf32, #tpu.memory_space<vmem>>, vector<1x2x32xf32>
    %312 = vector.shape_cast %311 : vector<1x2x32xf32> to vector<2x32xf32>
    %313 = vector.extract_strided_slice %310 {offsets = [0, 0], sizes = [1, 32], strides = [1, 1]} : vector<4x32xf32> to vector<1x32xf32>
    %314 = vector.extract_strided_slice %310 {offsets = [1, 0], sizes = [1, 32], strides = [1, 1]} : vector<4x32xf32> to vector<1x32xf32>
    %cst_97 = arith.constant dense<0.000000e+00> : vector<16xf32>
    %315 = vector.multi_reduction <add>, %308, %cst_97 [1] : vector<16x32xf32> to vector<16xf32>
    %316 = vector.shape_cast %315 : vector<16xf32> to vector<16x1xf32>
    %cst_98 = arith.constant 3.200000e+01 : f32
    %317 = vector.broadcast %cst_98 : f32 to vector<16x1xf32>
    %318 = arith.divf %316, %317 : vector<16x1xf32>
    %319 = vector.broadcast %318 : vector<16x1xf32> to vector<16x32xf32>
    %320 = arith.subf %308, %319 : vector<16x32xf32>
    %321 = arith.mulf %320, %320 : vector<16x32xf32>
    %cst_99 = arith.constant dense<0.000000e+00> : vector<16xf32>
    %322 = vector.multi_reduction <add>, %321, %cst_99 [1] : vector<16x32xf32> to vector<16xf32>
    %323 = vector.shape_cast %322 : vector<16xf32> to vector<16x1xf32>
    %cst_100 = arith.constant 3.200000e+01 : f32
    %324 = vector.broadcast %cst_100 : f32 to vector<16x1xf32>
    %325 = arith.divf %323, %324 : vector<16x1xf32>
    %326 = vector.broadcast %318 : vector<16x1xf32> to vector<16x32xf32>
    %327 = arith.subf %308, %326 : vector<16x32xf32>
    %cst_101 = arith.constant 9.99999974E-6 : f32
    %328 = vector.broadcast %cst_101 : f32 to vector<16x1xf32>
    %329 = arith.addf %325, %328 : vector<16x1xf32>
    %330 = math.rsqrt %329 : vector<16x1xf32>
    %331 = vector.broadcast %330 : vector<16x1xf32> to vector<16x32xf32>
    %332 = arith.mulf %327, %331 : vector<16x32xf32>
    %333 = vector.broadcast %313 : vector<1x32xf32> to vector<16x32xf32>
    %334 = arith.mulf %332, %333 : vector<16x32xf32>
    %335 = vector.broadcast %314 : vector<1x32xf32> to vector<16x32xf32>
    %336 = arith.addf %334, %335 : vector<16x32xf32>
    %c1_102 = arith.constant 1 : index
    %c0_103 = arith.constant 0 : index
    %c0_104 = arith.constant 0 : index
    %337 = vector.load %arg3[%c1_102, %c0_103, %c0_104] : memref<2x32x96xf32, #tpu.memory_space<vmem>>, vector<1x32x96xf32>
    %338 = vector.shape_cast %337 : vector<1x32x96xf32> to vector<32x96xf32>
    %339 = arith.truncf %336 : vector<16x32xf32> to vector<16x32xbf16>
    %340 = arith.truncf %338 : vector<32x96xf32> to vector<32x96xbf16>
    %cst_105 = arith.constant dense<0.000000e+00> : vector<16x96xf32>
    %341 = tpu.matmul %339, %340, %cst_105 {dimension_numbers = #tpu.dot_dimension_numbers<[1], [0], [0], [1], [0, 0, 1, 1], [], []>} : vector<16x32xbf16>, vector<32x96xbf16>, vector<16x96xf32> -> vector<16x96xf32>
    %c1_106 = arith.constant 1 : index
    %c0_107 = arith.constant 0 : index
    %c0_108 = arith.constant 0 : index
    %342 = vector.load %arg4[%c1_106, %c0_107, %c0_108] : memref<2x1x96xf32, #tpu.memory_space<vmem>>, vector<1x1x96xf32>
    %343 = vector.shape_cast %342 : vector<1x1x96xf32> to vector<1x96xf32>
    %344 = vector.broadcast %343 : vector<1x96xf32> to vector<16x96xf32>
    %345 = arith.addf %341, %344 : vector<16x96xf32>
    %c1_109 = arith.constant 1 : index
    %c0_110 = arith.constant 0 : index
    %c0_111 = arith.constant 0 : index
    %346 = vector.load %arg5[%c1_109, %c0_110, %c0_111] : memref<2x32x32xf32, #tpu.memory_space<vmem>>, vector<1x32x32xf32>
    %347 = vector.shape_cast %346 : vector<1x32x32xf32> to vector<32x32xf32>
    %348 = vector.extract_strided_slice %345 {offsets = [0, 0], sizes = [8, 96], strides = [1, 1]} : vector<16x96xf32> to vector<8x96xf32>
    %cst_112 = arith.constant 0.000000e+00 : f32
    %349 = vector.broadcast %cst_112 : f32 to vector<8x32xf32>
    %350 = vector.extract_strided_slice %348 {offsets = [0, 0], sizes = [8, 8], strides = [1, 1]} : vector<8x96xf32> to vector<8x8xf32>
    %351 = vector.extract_strided_slice %348 {offsets = [0, 32], sizes = [8, 8], strides = [1, 1]} : vector<8x96xf32> to vector<8x8xf32>
    %352 = vector.extract_strided_slice %348 {offsets = [0, 64], sizes = [8, 8], strides = [1, 1]} : vector<8x96xf32> to vector<8x8xf32>
    %353 = arith.truncf %350 : vector<8x8xf32> to vector<8x8xbf16>
    %354 = arith.truncf %351 : vector<8x8xf32> to vector<8x8xbf16>
    %cst_113 = arith.constant dense<0.000000e+00> : vector<8x8xf32>
    %355 = tpu.matmul %353, %354, %cst_113 {dimension_numbers = #tpu.dot_dimension_numbers<[1], [1], [0], [0], [0, 0, 1, 0], [], []>} : vector<8x8xbf16>, vector<8x8xbf16>, vector<8x8xf32> -> vector<8x8xf32>
    %cst_114 = arith.constant 0.353553385 : f32
    %356 = vector.broadcast %cst_114 : f32 to vector<8x8xf32>
    %357 = arith.mulf %355, %356 : vector<8x8xf32>
    %cst_115 = arith.constant dense<0xFF800000> : vector<8xf32>
    %358 = vector.multi_reduction <maximumf>, %357, %cst_115 [1] : vector<8x8xf32> to vector<8xf32>
    %359 = vector.shape_cast %358 : vector<8xf32> to vector<8x1xf32>
    %360 = vector.broadcast %359 : vector<8x1xf32> to vector<8x8xf32>
    %361 = arith.subf %357, %360 : vector<8x8xf32>
    %362 = math.exp %361 : vector<8x8xf32>
    %cst_116 = arith.constant dense<0.000000e+00> : vector<8xf32>
    %363 = vector.multi_reduction <add>, %362, %cst_116 [1] : vector<8x8xf32> to vector<8xf32>
    %364 = vector.shape_cast %363 : vector<8xf32> to vector<8x1xf32>
    %365 = tpu.reciprocal %364 {approx = true} : vector<8x1xf32> -> vector<8x1xf32>
    %366 = vector.broadcast %365 : vector<8x1xf32> to vector<8x8xf32>
    %367 = arith.mulf %362, %366 : vector<8x8xf32>
    %368 = arith.truncf %367 : vector<8x8xf32> to vector<8x8xbf16>
    %369 = arith.truncf %352 : vector<8x8xf32> to vector<8x8xbf16>
    %cst_117 = arith.constant dense<0.000000e+00> : vector<8x8xf32>
    %370 = tpu.matmul %368, %369, %cst_117 {dimension_numbers = #tpu.dot_dimension_numbers<[1], [0], [0], [1], [0, 0, 1, 1], [], []>} : vector<8x8xbf16>, vector<8x8xbf16>, vector<8x8xf32> -> vector<8x8xf32>
    %371 = vector.extract_strided_slice %347 {offsets = [0, 0], sizes = [8, 32], strides = [1, 1]} : vector<32x32xf32> to vector<8x32xf32>
    %372 = arith.truncf %370 : vector<8x8xf32> to vector<8x8xbf16>
    %373 = arith.truncf %371 : vector<8x32xf32> to vector<8x32xbf16>
    %cst_118 = arith.constant dense<0.000000e+00> : vector<8x32xf32>
    %374 = tpu.matmul %372, %373, %cst_118 {dimension_numbers = #tpu.dot_dimension_numbers<[1], [0], [0], [1], [0, 0, 1, 1], [], []>} : vector<8x8xbf16>, vector<8x32xbf16>, vector<8x32xf32> -> vector<8x32xf32>
    %375 = arith.addf %349, %374 : vector<8x32xf32>
    %376 = vector.extract_strided_slice %348 {offsets = [0, 8], sizes = [8, 8], strides = [1, 1]} : vector<8x96xf32> to vector<8x8xf32>
    %377 = vector.extract_strided_slice %348 {offsets = [0, 40], sizes = [8, 8], strides = [1, 1]} : vector<8x96xf32> to vector<8x8xf32>
    %378 = vector.extract_strided_slice %348 {offsets = [0, 72], sizes = [8, 8], strides = [1, 1]} : vector<8x96xf32> to vector<8x8xf32>
    %379 = arith.truncf %376 : vector<8x8xf32> to vector<8x8xbf16>
    %380 = arith.truncf %377 : vector<8x8xf32> to vector<8x8xbf16>
    %cst_119 = arith.constant dense<0.000000e+00> : vector<8x8xf32>
    %381 = tpu.matmul %379, %380, %cst_119 {dimension_numbers = #tpu.dot_dimension_numbers<[1], [1], [0], [0], [0, 0, 1, 0], [], []>} : vector<8x8xbf16>, vector<8x8xbf16>, vector<8x8xf32> -> vector<8x8xf32>
    %cst_120 = arith.constant 0.353553385 : f32
    %382 = vector.broadcast %cst_120 : f32 to vector<8x8xf32>
    %383 = arith.mulf %381, %382 : vector<8x8xf32>
    %cst_121 = arith.constant dense<0xFF800000> : vector<8xf32>
    %384 = vector.multi_reduction <maximumf>, %383, %cst_121 [1] : vector<8x8xf32> to vector<8xf32>
    %385 = vector.shape_cast %384 : vector<8xf32> to vector<8x1xf32>
    %386 = vector.broadcast %385 : vector<8x1xf32> to vector<8x8xf32>
    %387 = arith.subf %383, %386 : vector<8x8xf32>
    %388 = math.exp %387 : vector<8x8xf32>
    %cst_122 = arith.constant dense<0.000000e+00> : vector<8xf32>
    %389 = vector.multi_reduction <add>, %388, %cst_122 [1] : vector<8x8xf32> to vector<8xf32>
    %390 = vector.shape_cast %389 : vector<8xf32> to vector<8x1xf32>
    %391 = tpu.reciprocal %390 {approx = true} : vector<8x1xf32> -> vector<8x1xf32>
    %392 = vector.broadcast %391 : vector<8x1xf32> to vector<8x8xf32>
    %393 = arith.mulf %388, %392 : vector<8x8xf32>
    %394 = arith.truncf %393 : vector<8x8xf32> to vector<8x8xbf16>
    %395 = arith.truncf %378 : vector<8x8xf32> to vector<8x8xbf16>
    %cst_123 = arith.constant dense<0.000000e+00> : vector<8x8xf32>
    %396 = tpu.matmul %394, %395, %cst_123 {dimension_numbers = #tpu.dot_dimension_numbers<[1], [0], [0], [1], [0, 0, 1, 1], [], []>} : vector<8x8xbf16>, vector<8x8xbf16>, vector<8x8xf32> -> vector<8x8xf32>
    %397 = vector.extract_strided_slice %347 {offsets = [8, 0], sizes = [8, 32], strides = [1, 1]} : vector<32x32xf32> to vector<8x32xf32>
    %398 = arith.truncf %396 : vector<8x8xf32> to vector<8x8xbf16>
    %399 = arith.truncf %397 : vector<8x32xf32> to vector<8x32xbf16>
    %cst_124 = arith.constant dense<0.000000e+00> : vector<8x32xf32>
    %400 = tpu.matmul %398, %399, %cst_124 {dimension_numbers = #tpu.dot_dimension_numbers<[1], [0], [0], [1], [0, 0, 1, 1], [], []>} : vector<8x8xbf16>, vector<8x32xbf16>, vector<8x32xf32> -> vector<8x32xf32>
    %401 = arith.addf %375, %400 : vector<8x32xf32>
    %402 = vector.extract_strided_slice %348 {offsets = [0, 16], sizes = [8, 8], strides = [1, 1]} : vector<8x96xf32> to vector<8x8xf32>
    %403 = vector.extract_strided_slice %348 {offsets = [0, 48], sizes = [8, 8], strides = [1, 1]} : vector<8x96xf32> to vector<8x8xf32>
    %404 = vector.extract_strided_slice %348 {offsets = [0, 80], sizes = [8, 8], strides = [1, 1]} : vector<8x96xf32> to vector<8x8xf32>
    %405 = arith.truncf %402 : vector<8x8xf32> to vector<8x8xbf16>
    %406 = arith.truncf %403 : vector<8x8xf32> to vector<8x8xbf16>
    %cst_125 = arith.constant dense<0.000000e+00> : vector<8x8xf32>
    %407 = tpu.matmul %405, %406, %cst_125 {dimension_numbers = #tpu.dot_dimension_numbers<[1], [1], [0], [0], [0, 0, 1, 0], [], []>} : vector<8x8xbf16>, vector<8x8xbf16>, vector<8x8xf32> -> vector<8x8xf32>
    %cst_126 = arith.constant 0.353553385 : f32
    %408 = vector.broadcast %cst_126 : f32 to vector<8x8xf32>
    %409 = arith.mulf %407, %408 : vector<8x8xf32>
    %cst_127 = arith.constant dense<0xFF800000> : vector<8xf32>
    %410 = vector.multi_reduction <maximumf>, %409, %cst_127 [1] : vector<8x8xf32> to vector<8xf32>
    %411 = vector.shape_cast %410 : vector<8xf32> to vector<8x1xf32>
    %412 = vector.broadcast %411 : vector<8x1xf32> to vector<8x8xf32>
    %413 = arith.subf %409, %412 : vector<8x8xf32>
    %414 = math.exp %413 : vector<8x8xf32>
    %cst_128 = arith.constant dense<0.000000e+00> : vector<8xf32>
    %415 = vector.multi_reduction <add>, %414, %cst_128 [1] : vector<8x8xf32> to vector<8xf32>
    %416 = vector.shape_cast %415 : vector<8xf32> to vector<8x1xf32>
    %417 = tpu.reciprocal %416 {approx = true} : vector<8x1xf32> -> vector<8x1xf32>
    %418 = vector.broadcast %417 : vector<8x1xf32> to vector<8x8xf32>
    %419 = arith.mulf %414, %418 : vector<8x8xf32>
    %420 = arith.truncf %419 : vector<8x8xf32> to vector<8x8xbf16>
    %421 = arith.truncf %404 : vector<8x8xf32> to vector<8x8xbf16>
    %cst_129 = arith.constant dense<0.000000e+00> : vector<8x8xf32>
    %422 = tpu.matmul %420, %421, %cst_129 {dimension_numbers = #tpu.dot_dimension_numbers<[1], [0], [0], [1], [0, 0, 1, 1], [], []>} : vector<8x8xbf16>, vector<8x8xbf16>, vector<8x8xf32> -> vector<8x8xf32>
    %423 = vector.extract_strided_slice %347 {offsets = [16, 0], sizes = [8, 32], strides = [1, 1]} : vector<32x32xf32> to vector<8x32xf32>
    %424 = arith.truncf %422 : vector<8x8xf32> to vector<8x8xbf16>
    %425 = arith.truncf %423 : vector<8x32xf32> to vector<8x32xbf16>
    %cst_130 = arith.constant dense<0.000000e+00> : vector<8x32xf32>
    %426 = tpu.matmul %424, %425, %cst_130 {dimension_numbers = #tpu.dot_dimension_numbers<[1], [0], [0], [1], [0, 0, 1, 1], [], []>} : vector<8x8xbf16>, vector<8x32xbf16>, vector<8x32xf32> -> vector<8x32xf32>
    %427 = arith.addf %401, %426 : vector<8x32xf32>
    %428 = vector.extract_strided_slice %348 {offsets = [0, 24], sizes = [8, 8], strides = [1, 1]} : vector<8x96xf32> to vector<8x8xf32>
    %429 = vector.extract_strided_slice %348 {offsets = [0, 56], sizes = [8, 8], strides = [1, 1]} : vector<8x96xf32> to vector<8x8xf32>
    %430 = vector.extract_strided_slice %348 {offsets = [0, 88], sizes = [8, 8], strides = [1, 1]} : vector<8x96xf32> to vector<8x8xf32>
    %431 = arith.truncf %428 : vector<8x8xf32> to vector<8x8xbf16>
    %432 = arith.truncf %429 : vector<8x8xf32> to vector<8x8xbf16>
    %cst_131 = arith.constant dense<0.000000e+00> : vector<8x8xf32>
    %433 = tpu.matmul %431, %432, %cst_131 {dimension_numbers = #tpu.dot_dimension_numbers<[1], [1], [0], [0], [0, 0, 1, 0], [], []>} : vector<8x8xbf16>, vector<8x8xbf16>, vector<8x8xf32> -> vector<8x8xf32>
    %cst_132 = arith.constant 0.353553385 : f32
    %434 = vector.broadcast %cst_132 : f32 to vector<8x8xf32>
    %435 = arith.mulf %433, %434 : vector<8x8xf32>
    %cst_133 = arith.constant dense<0xFF800000> : vector<8xf32>
    %436 = vector.multi_reduction <maximumf>, %435, %cst_133 [1] : vector<8x8xf32> to vector<8xf32>
    %437 = vector.shape_cast %436 : vector<8xf32> to vector<8x1xf32>
    %438 = vector.broadcast %437 : vector<8x1xf32> to vector<8x8xf32>
    %439 = arith.subf %435, %438 : vector<8x8xf32>
    %440 = math.exp %439 : vector<8x8xf32>
    %cst_134 = arith.constant dense<0.000000e+00> : vector<8xf32>
    %441 = vector.multi_reduction <add>, %440, %cst_134 [1] : vector<8x8xf32> to vector<8xf32>
    %442 = vector.shape_cast %441 : vector<8xf32> to vector<8x1xf32>
    %443 = tpu.reciprocal %442 {approx = true} : vector<8x1xf32> -> vector<8x1xf32>
    %444 = vector.broadcast %443 : vector<8x1xf32> to vector<8x8xf32>
    %445 = arith.mulf %440, %444 : vector<8x8xf32>
    %446 = arith.truncf %445 : vector<8x8xf32> to vector<8x8xbf16>
    %447 = arith.truncf %430 : vector<8x8xf32> to vector<8x8xbf16>
    %cst_135 = arith.constant dense<0.000000e+00> : vector<8x8xf32>
    %448 = tpu.matmul %446, %447, %cst_135 {dimension_numbers = #tpu.dot_dimension_numbers<[1], [0], [0], [1], [0, 0, 1, 1], [], []>} : vector<8x8xbf16>, vector<8x8xbf16>, vector<8x8xf32> -> vector<8x8xf32>
    %449 = vector.extract_strided_slice %347 {offsets = [24, 0], sizes = [8, 32], strides = [1, 1]} : vector<32x32xf32> to vector<8x32xf32>
    %450 = arith.truncf %448 : vector<8x8xf32> to vector<8x8xbf16>
    %451 = arith.truncf %449 : vector<8x32xf32> to vector<8x32xbf16>
    %cst_136 = arith.constant dense<0.000000e+00> : vector<8x32xf32>
    %452 = tpu.matmul %450, %451, %cst_136 {dimension_numbers = #tpu.dot_dimension_numbers<[1], [0], [0], [1], [0, 0, 1, 1], [], []>} : vector<8x8xbf16>, vector<8x32xbf16>, vector<8x32xf32> -> vector<8x32xf32>
    %453 = arith.addf %427, %452 : vector<8x32xf32>
    %454 = vector.extract_strided_slice %345 {offsets = [8, 0], sizes = [8, 96], strides = [1, 1]} : vector<16x96xf32> to vector<8x96xf32>
    %cst_137 = arith.constant 0.000000e+00 : f32
    %455 = vector.broadcast %cst_137 : f32 to vector<8x32xf32>
    %456 = vector.extract_strided_slice %454 {offsets = [0, 0], sizes = [8, 8], strides = [1, 1]} : vector<8x96xf32> to vector<8x8xf32>
    %457 = vector.extract_strided_slice %454 {offsets = [0, 32], sizes = [8, 8], strides = [1, 1]} : vector<8x96xf32> to vector<8x8xf32>
    %458 = vector.extract_strided_slice %454 {offsets = [0, 64], sizes = [8, 8], strides = [1, 1]} : vector<8x96xf32> to vector<8x8xf32>
    %459 = arith.truncf %456 : vector<8x8xf32> to vector<8x8xbf16>
    %460 = arith.truncf %457 : vector<8x8xf32> to vector<8x8xbf16>
    %cst_138 = arith.constant dense<0.000000e+00> : vector<8x8xf32>
    %461 = tpu.matmul %459, %460, %cst_138 {dimension_numbers = #tpu.dot_dimension_numbers<[1], [1], [0], [0], [0, 0, 1, 0], [], []>} : vector<8x8xbf16>, vector<8x8xbf16>, vector<8x8xf32> -> vector<8x8xf32>
    %cst_139 = arith.constant 0.353553385 : f32
    %462 = vector.broadcast %cst_139 : f32 to vector<8x8xf32>
    %463 = arith.mulf %461, %462 : vector<8x8xf32>
    %cst_140 = arith.constant dense<0xFF800000> : vector<8xf32>
    %464 = vector.multi_reduction <maximumf>, %463, %cst_140 [1] : vector<8x8xf32> to vector<8xf32>
    %465 = vector.shape_cast %464 : vector<8xf32> to vector<8x1xf32>
    %466 = vector.broadcast %465 : vector<8x1xf32> to vector<8x8xf32>
    %467 = arith.subf %463, %466 : vector<8x8xf32>
    %468 = math.exp %467 : vector<8x8xf32>
    %cst_141 = arith.constant dense<0.000000e+00> : vector<8xf32>
    %469 = vector.multi_reduction <add>, %468, %cst_141 [1] : vector<8x8xf32> to vector<8xf32>
    %470 = vector.shape_cast %469 : vector<8xf32> to vector<8x1xf32>
    %471 = tpu.reciprocal %470 {approx = true} : vector<8x1xf32> -> vector<8x1xf32>
    %472 = vector.broadcast %471 : vector<8x1xf32> to vector<8x8xf32>
    %473 = arith.mulf %468, %472 : vector<8x8xf32>
    %474 = arith.truncf %473 : vector<8x8xf32> to vector<8x8xbf16>
    %475 = arith.truncf %458 : vector<8x8xf32> to vector<8x8xbf16>
    %cst_142 = arith.constant dense<0.000000e+00> : vector<8x8xf32>
    %476 = tpu.matmul %474, %475, %cst_142 {dimension_numbers = #tpu.dot_dimension_numbers<[1], [0], [0], [1], [0, 0, 1, 1], [], []>} : vector<8x8xbf16>, vector<8x8xbf16>, vector<8x8xf32> -> vector<8x8xf32>
    %477 = vector.extract_strided_slice %347 {offsets = [0, 0], sizes = [8, 32], strides = [1, 1]} : vector<32x32xf32> to vector<8x32xf32>
    %478 = arith.truncf %476 : vector<8x8xf32> to vector<8x8xbf16>
    %479 = arith.truncf %477 : vector<8x32xf32> to vector<8x32xbf16>
    %cst_143 = arith.constant dense<0.000000e+00> : vector<8x32xf32>
    %480 = tpu.matmul %478, %479, %cst_143 {dimension_numbers = #tpu.dot_dimension_numbers<[1], [0], [0], [1], [0, 0, 1, 1], [], []>} : vector<8x8xbf16>, vector<8x32xbf16>, vector<8x32xf32> -> vector<8x32xf32>
    %481 = arith.addf %455, %480 : vector<8x32xf32>
    %482 = vector.extract_strided_slice %454 {offsets = [0, 8], sizes = [8, 8], strides = [1, 1]} : vector<8x96xf32> to vector<8x8xf32>
    %483 = vector.extract_strided_slice %454 {offsets = [0, 40], sizes = [8, 8], strides = [1, 1]} : vector<8x96xf32> to vector<8x8xf32>
    %484 = vector.extract_strided_slice %454 {offsets = [0, 72], sizes = [8, 8], strides = [1, 1]} : vector<8x96xf32> to vector<8x8xf32>
    %485 = arith.truncf %482 : vector<8x8xf32> to vector<8x8xbf16>
    %486 = arith.truncf %483 : vector<8x8xf32> to vector<8x8xbf16>
    %cst_144 = arith.constant dense<0.000000e+00> : vector<8x8xf32>
    %487 = tpu.matmul %485, %486, %cst_144 {dimension_numbers = #tpu.dot_dimension_numbers<[1], [1], [0], [0], [0, 0, 1, 0], [], []>} : vector<8x8xbf16>, vector<8x8xbf16>, vector<8x8xf32> -> vector<8x8xf32>
    %cst_145 = arith.constant 0.353553385 : f32
    %488 = vector.broadcast %cst_145 : f32 to vector<8x8xf32>
    %489 = arith.mulf %487, %488 : vector<8x8xf32>
    %cst_146 = arith.constant dense<0xFF800000> : vector<8xf32>
    %490 = vector.multi_reduction <maximumf>, %489, %cst_146 [1] : vector<8x8xf32> to vector<8xf32>
    %491 = vector.shape_cast %490 : vector<8xf32> to vector<8x1xf32>
    %492 = vector.broadcast %491 : vector<8x1xf32> to vector<8x8xf32>
    %493 = arith.subf %489, %492 : vector<8x8xf32>
    %494 = math.exp %493 : vector<8x8xf32>
    %cst_147 = arith.constant dense<0.000000e+00> : vector<8xf32>
    %495 = vector.multi_reduction <add>, %494, %cst_147 [1] : vector<8x8xf32> to vector<8xf32>
    %496 = vector.shape_cast %495 : vector<8xf32> to vector<8x1xf32>
    %497 = tpu.reciprocal %496 {approx = true} : vector<8x1xf32> -> vector<8x1xf32>
    %498 = vector.broadcast %497 : vector<8x1xf32> to vector<8x8xf32>
    %499 = arith.mulf %494, %498 : vector<8x8xf32>
    %500 = arith.truncf %499 : vector<8x8xf32> to vector<8x8xbf16>
    %501 = arith.truncf %484 : vector<8x8xf32> to vector<8x8xbf16>
    %cst_148 = arith.constant dense<0.000000e+00> : vector<8x8xf32>
    %502 = tpu.matmul %500, %501, %cst_148 {dimension_numbers = #tpu.dot_dimension_numbers<[1], [0], [0], [1], [0, 0, 1, 1], [], []>} : vector<8x8xbf16>, vector<8x8xbf16>, vector<8x8xf32> -> vector<8x8xf32>
    %503 = vector.extract_strided_slice %347 {offsets = [8, 0], sizes = [8, 32], strides = [1, 1]} : vector<32x32xf32> to vector<8x32xf32>
    %504 = arith.truncf %502 : vector<8x8xf32> to vector<8x8xbf16>
    %505 = arith.truncf %503 : vector<8x32xf32> to vector<8x32xbf16>
    %cst_149 = arith.constant dense<0.000000e+00> : vector<8x32xf32>
    %506 = tpu.matmul %504, %505, %cst_149 {dimension_numbers = #tpu.dot_dimension_numbers<[1], [0], [0], [1], [0, 0, 1, 1], [], []>} : vector<8x8xbf16>, vector<8x32xbf16>, vector<8x32xf32> -> vector<8x32xf32>
    %507 = arith.addf %481, %506 : vector<8x32xf32>
    %508 = vector.extract_strided_slice %454 {offsets = [0, 16], sizes = [8, 8], strides = [1, 1]} : vector<8x96xf32> to vector<8x8xf32>
    %509 = vector.extract_strided_slice %454 {offsets = [0, 48], sizes = [8, 8], strides = [1, 1]} : vector<8x96xf32> to vector<8x8xf32>
    %510 = vector.extract_strided_slice %454 {offsets = [0, 80], sizes = [8, 8], strides = [1, 1]} : vector<8x96xf32> to vector<8x8xf32>
    %511 = arith.truncf %508 : vector<8x8xf32> to vector<8x8xbf16>
    %512 = arith.truncf %509 : vector<8x8xf32> to vector<8x8xbf16>
    %cst_150 = arith.constant dense<0.000000e+00> : vector<8x8xf32>
    %513 = tpu.matmul %511, %512, %cst_150 {dimension_numbers = #tpu.dot_dimension_numbers<[1], [1], [0], [0], [0, 0, 1, 0], [], []>} : vector<8x8xbf16>, vector<8x8xbf16>, vector<8x8xf32> -> vector<8x8xf32>
    %cst_151 = arith.constant 0.353553385 : f32
    %514 = vector.broadcast %cst_151 : f32 to vector<8x8xf32>
    %515 = arith.mulf %513, %514 : vector<8x8xf32>
    %cst_152 = arith.constant dense<0xFF800000> : vector<8xf32>
    %516 = vector.multi_reduction <maximumf>, %515, %cst_152 [1] : vector<8x8xf32> to vector<8xf32>
    %517 = vector.shape_cast %516 : vector<8xf32> to vector<8x1xf32>
    %518 = vector.broadcast %517 : vector<8x1xf32> to vector<8x8xf32>
    %519 = arith.subf %515, %518 : vector<8x8xf32>
    %520 = math.exp %519 : vector<8x8xf32>
    %cst_153 = arith.constant dense<0.000000e+00> : vector<8xf32>
    %521 = vector.multi_reduction <add>, %520, %cst_153 [1] : vector<8x8xf32> to vector<8xf32>
    %522 = vector.shape_cast %521 : vector<8xf32> to vector<8x1xf32>
    %523 = tpu.reciprocal %522 {approx = true} : vector<8x1xf32> -> vector<8x1xf32>
    %524 = vector.broadcast %523 : vector<8x1xf32> to vector<8x8xf32>
    %525 = arith.mulf %520, %524 : vector<8x8xf32>
    %526 = arith.truncf %525 : vector<8x8xf32> to vector<8x8xbf16>
    %527 = arith.truncf %510 : vector<8x8xf32> to vector<8x8xbf16>
    %cst_154 = arith.constant dense<0.000000e+00> : vector<8x8xf32>
    %528 = tpu.matmul %526, %527, %cst_154 {dimension_numbers = #tpu.dot_dimension_numbers<[1], [0], [0], [1], [0, 0, 1, 1], [], []>} : vector<8x8xbf16>, vector<8x8xbf16>, vector<8x8xf32> -> vector<8x8xf32>
    %529 = vector.extract_strided_slice %347 {offsets = [16, 0], sizes = [8, 32], strides = [1, 1]} : vector<32x32xf32> to vector<8x32xf32>
    %530 = arith.truncf %528 : vector<8x8xf32> to vector<8x8xbf16>
    %531 = arith.truncf %529 : vector<8x32xf32> to vector<8x32xbf16>
    %cst_155 = arith.constant dense<0.000000e+00> : vector<8x32xf32>
    %532 = tpu.matmul %530, %531, %cst_155 {dimension_numbers = #tpu.dot_dimension_numbers<[1], [0], [0], [1], [0, 0, 1, 1], [], []>} : vector<8x8xbf16>, vector<8x32xbf16>, vector<8x32xf32> -> vector<8x32xf32>
    %533 = arith.addf %507, %532 : vector<8x32xf32>
    %534 = vector.extract_strided_slice %454 {offsets = [0, 24], sizes = [8, 8], strides = [1, 1]} : vector<8x96xf32> to vector<8x8xf32>
    %535 = vector.extract_strided_slice %454 {offsets = [0, 56], sizes = [8, 8], strides = [1, 1]} : vector<8x96xf32> to vector<8x8xf32>
    %536 = vector.extract_strided_slice %454 {offsets = [0, 88], sizes = [8, 8], strides = [1, 1]} : vector<8x96xf32> to vector<8x8xf32>
    %537 = arith.truncf %534 : vector<8x8xf32> to vector<8x8xbf16>
    %538 = arith.truncf %535 : vector<8x8xf32> to vector<8x8xbf16>
    %cst_156 = arith.constant dense<0.000000e+00> : vector<8x8xf32>
    %539 = tpu.matmul %537, %538, %cst_156 {dimension_numbers = #tpu.dot_dimension_numbers<[1], [1], [0], [0], [0, 0, 1, 0], [], []>} : vector<8x8xbf16>, vector<8x8xbf16>, vector<8x8xf32> -> vector<8x8xf32>
    %cst_157 = arith.constant 0.353553385 : f32
    %540 = vector.broadcast %cst_157 : f32 to vector<8x8xf32>
    %541 = arith.mulf %539, %540 : vector<8x8xf32>
    %cst_158 = arith.constant dense<0xFF800000> : vector<8xf32>
    %542 = vector.multi_reduction <maximumf>, %541, %cst_158 [1] : vector<8x8xf32> to vector<8xf32>
    %543 = vector.shape_cast %542 : vector<8xf32> to vector<8x1xf32>
    %544 = vector.broadcast %543 : vector<8x1xf32> to vector<8x8xf32>
    %545 = arith.subf %541, %544 : vector<8x8xf32>
    %546 = math.exp %545 : vector<8x8xf32>
    %cst_159 = arith.constant dense<0.000000e+00> : vector<8xf32>
    %547 = vector.multi_reduction <add>, %546, %cst_159 [1] : vector<8x8xf32> to vector<8xf32>
    %548 = vector.shape_cast %547 : vector<8xf32> to vector<8x1xf32>
    %549 = tpu.reciprocal %548 {approx = true} : vector<8x1xf32> -> vector<8x1xf32>
    %550 = vector.broadcast %549 : vector<8x1xf32> to vector<8x8xf32>
    %551 = arith.mulf %546, %550 : vector<8x8xf32>
    %552 = arith.truncf %551 : vector<8x8xf32> to vector<8x8xbf16>
    %553 = arith.truncf %536 : vector<8x8xf32> to vector<8x8xbf16>
    %cst_160 = arith.constant dense<0.000000e+00> : vector<8x8xf32>
    %554 = tpu.matmul %552, %553, %cst_160 {dimension_numbers = #tpu.dot_dimension_numbers<[1], [0], [0], [1], [0, 0, 1, 1], [], []>} : vector<8x8xbf16>, vector<8x8xbf16>, vector<8x8xf32> -> vector<8x8xf32>
    %555 = vector.extract_strided_slice %347 {offsets = [24, 0], sizes = [8, 32], strides = [1, 1]} : vector<32x32xf32> to vector<8x32xf32>
    %556 = arith.truncf %554 : vector<8x8xf32> to vector<8x8xbf16>
    %557 = arith.truncf %555 : vector<8x32xf32> to vector<8x32xbf16>
    %cst_161 = arith.constant dense<0.000000e+00> : vector<8x32xf32>
    %558 = tpu.matmul %556, %557, %cst_161 {dimension_numbers = #tpu.dot_dimension_numbers<[1], [0], [0], [1], [0, 0, 1, 1], [], []>} : vector<8x8xbf16>, vector<8x32xbf16>, vector<8x32xf32> -> vector<8x32xf32>
    %559 = arith.addf %533, %558 : vector<8x32xf32>
    %560 = tpu.concatenate %453, %559 in 0 : vector<8x32xf32>, vector<8x32xf32> -> vector<16x32xf32>
    %561 = vector.extract_strided_slice %312 {offsets = [0, 0], sizes = [1, 32], strides = [1, 1]} : vector<2x32xf32> to vector<1x32xf32>
    %562 = vector.broadcast %561 : vector<1x32xf32> to vector<16x32xf32>
    %563 = arith.addf %560, %562 : vector<16x32xf32>
    %564 = arith.addf %308, %563 : vector<16x32xf32>
    %565 = vector.extract_strided_slice %310 {offsets = [2, 0], sizes = [1, 32], strides = [1, 1]} : vector<4x32xf32> to vector<1x32xf32>
    %566 = vector.extract_strided_slice %310 {offsets = [3, 0], sizes = [1, 32], strides = [1, 1]} : vector<4x32xf32> to vector<1x32xf32>
    %cst_162 = arith.constant dense<0.000000e+00> : vector<16xf32>
    %567 = vector.multi_reduction <add>, %564, %cst_162 [1] : vector<16x32xf32> to vector<16xf32>
    %568 = vector.shape_cast %567 : vector<16xf32> to vector<16x1xf32>
    %cst_163 = arith.constant 3.200000e+01 : f32
    %569 = vector.broadcast %cst_163 : f32 to vector<16x1xf32>
    %570 = arith.divf %568, %569 : vector<16x1xf32>
    %571 = vector.broadcast %570 : vector<16x1xf32> to vector<16x32xf32>
    %572 = arith.subf %564, %571 : vector<16x32xf32>
    %573 = arith.mulf %572, %572 : vector<16x32xf32>
    %cst_164 = arith.constant dense<0.000000e+00> : vector<16xf32>
    %574 = vector.multi_reduction <add>, %573, %cst_164 [1] : vector<16x32xf32> to vector<16xf32>
    %575 = vector.shape_cast %574 : vector<16xf32> to vector<16x1xf32>
    %cst_165 = arith.constant 3.200000e+01 : f32
    %576 = vector.broadcast %cst_165 : f32 to vector<16x1xf32>
    %577 = arith.divf %575, %576 : vector<16x1xf32>
    %578 = vector.broadcast %570 : vector<16x1xf32> to vector<16x32xf32>
    %579 = arith.subf %564, %578 : vector<16x32xf32>
    %cst_166 = arith.constant 9.99999974E-6 : f32
    %580 = vector.broadcast %cst_166 : f32 to vector<16x1xf32>
    %581 = arith.addf %577, %580 : vector<16x1xf32>
    %582 = math.rsqrt %581 : vector<16x1xf32>
    %583 = vector.broadcast %582 : vector<16x1xf32> to vector<16x32xf32>
    %584 = arith.mulf %579, %583 : vector<16x32xf32>
    %585 = vector.broadcast %565 : vector<1x32xf32> to vector<16x32xf32>
    %586 = arith.mulf %584, %585 : vector<16x32xf32>
    %587 = vector.broadcast %566 : vector<1x32xf32> to vector<16x32xf32>
    %588 = arith.addf %586, %587 : vector<16x32xf32>
    %c1_167 = arith.constant 1 : index
    %c0_168 = arith.constant 0 : index
    %c0_169 = arith.constant 0 : index
    %589 = vector.load %arg7[%c1_167, %c0_168, %c0_169] : memref<2x32x64xf32, #tpu.memory_space<vmem>>, vector<1x32x64xf32>
    %590 = vector.shape_cast %589 : vector<1x32x64xf32> to vector<32x64xf32>
    %591 = arith.truncf %588 : vector<16x32xf32> to vector<16x32xbf16>
    %592 = arith.truncf %590 : vector<32x64xf32> to vector<32x64xbf16>
    %cst_170 = arith.constant dense<0.000000e+00> : vector<16x64xf32>
    %593 = tpu.matmul %591, %592, %cst_170 {dimension_numbers = #tpu.dot_dimension_numbers<[1], [0], [0], [1], [0, 0, 1, 1], [], []>} : vector<16x32xbf16>, vector<32x64xbf16>, vector<16x64xf32> -> vector<16x64xf32>
    %c1_171 = arith.constant 1 : index
    %c0_172 = arith.constant 0 : index
    %c0_173 = arith.constant 0 : index
    %594 = vector.load %arg8[%c1_171, %c0_172, %c0_173] : memref<2x1x64xf32, #tpu.memory_space<vmem>>, vector<1x1x64xf32>
    %595 = vector.shape_cast %594 : vector<1x1x64xf32> to vector<1x64xf32>
    %596 = vector.broadcast %595 : vector<1x64xf32> to vector<16x64xf32>
    %597 = arith.addf %593, %596 : vector<16x64xf32>
    %cst_174 = arith.constant 5.000000e-01 : f32
    %598 = vector.broadcast %cst_174 : f32 to vector<16x64xf32>
    %599 = arith.mulf %598, %597 : vector<16x64xf32>
    %cst_175 = arith.constant 0.707106769 : f32
    %600 = vector.broadcast %cst_175 : f32 to vector<16x64xf32>
    %601 = arith.mulf %597, %600 : vector<16x64xf32>
    %602 = math.erf %601 : vector<16x64xf32>
    %cst_176 = arith.constant 1.000000e+00 : f32
    %603 = vector.broadcast %cst_176 : f32 to vector<16x64xf32>
    %604 = arith.addf %603, %602 : vector<16x64xf32>
    %605 = arith.mulf %599, %604 : vector<16x64xf32>
    %c1_177 = arith.constant 1 : index
    %c0_178 = arith.constant 0 : index
    %c0_179 = arith.constant 0 : index
    %606 = vector.load %arg9[%c1_177, %c0_178, %c0_179] : memref<2x64x32xf32, #tpu.memory_space<vmem>>, vector<1x64x32xf32>
    %607 = vector.shape_cast %606 : vector<1x64x32xf32> to vector<64x32xf32>
    %608 = arith.truncf %605 : vector<16x64xf32> to vector<16x64xbf16>
    %609 = arith.truncf %607 : vector<64x32xf32> to vector<64x32xbf16>
    %cst_180 = arith.constant dense<0.000000e+00> : vector<16x32xf32>
    %610 = tpu.matmul %608, %609, %cst_180 {dimension_numbers = #tpu.dot_dimension_numbers<[1], [0], [0], [1], [0, 0, 1, 1], [], []>} : vector<16x64xbf16>, vector<64x32xbf16>, vector<16x32xf32> -> vector<16x32xf32>
    %611 = vector.extract_strided_slice %312 {offsets = [1, 0], sizes = [1, 32], strides = [1, 1]} : vector<2x32xf32> to vector<1x32xf32>
    %612 = vector.broadcast %611 : vector<1x32xf32> to vector<16x32xf32>
    %613 = arith.addf %610, %612 : vector<16x32xf32>
    %614 = arith.addf %564, %613 : vector<16x32xf32>
    %c0_181 = arith.constant 0 : index
    %c0_182 = arith.constant 0 : index
    %615 = vector.load %arg10[%c0_181, %c0_182] : memref<2x32xf32, #tpu.memory_space<vmem>>, vector<1x32xf32>
    %c1_183 = arith.constant 1 : index
    %c0_184 = arith.constant 0 : index
    %616 = vector.load %arg10[%c1_183, %c0_184] : memref<2x32xf32, #tpu.memory_space<vmem>>, vector<1x32xf32>
    %cst_185 = arith.constant dense<0.000000e+00> : vector<16xf32>
    %617 = vector.multi_reduction <add>, %614, %cst_185 [1] : vector<16x32xf32> to vector<16xf32>
    %618 = vector.shape_cast %617 : vector<16xf32> to vector<16x1xf32>
    %cst_186 = arith.constant 3.200000e+01 : f32
    %619 = vector.broadcast %cst_186 : f32 to vector<16x1xf32>
    %620 = arith.divf %618, %619 : vector<16x1xf32>
    %621 = vector.broadcast %620 : vector<16x1xf32> to vector<16x32xf32>
    %622 = arith.subf %614, %621 : vector<16x32xf32>
    %623 = arith.mulf %622, %622 : vector<16x32xf32>
    %cst_187 = arith.constant dense<0.000000e+00> : vector<16xf32>
    %624 = vector.multi_reduction <add>, %623, %cst_187 [1] : vector<16x32xf32> to vector<16xf32>
    %625 = vector.shape_cast %624 : vector<16xf32> to vector<16x1xf32>
    %cst_188 = arith.constant 3.200000e+01 : f32
    %626 = vector.broadcast %cst_188 : f32 to vector<16x1xf32>
    %627 = arith.divf %625, %626 : vector<16x1xf32>
    %628 = vector.broadcast %620 : vector<16x1xf32> to vector<16x32xf32>
    %629 = arith.subf %614, %628 : vector<16x32xf32>
    %cst_189 = arith.constant 9.99999974E-6 : f32
    %630 = vector.broadcast %cst_189 : f32 to vector<16x1xf32>
    %631 = arith.addf %627, %630 : vector<16x1xf32>
    %632 = math.rsqrt %631 : vector<16x1xf32>
    %633 = vector.broadcast %632 : vector<16x1xf32> to vector<16x32xf32>
    %634 = arith.mulf %629, %633 : vector<16x32xf32>
    %635 = vector.broadcast %615 : vector<1x32xf32> to vector<16x32xf32>
    %636 = arith.mulf %634, %635 : vector<16x32xf32>
    %637 = vector.broadcast %616 : vector<1x32xf32> to vector<16x32xf32>
    %638 = arith.addf %636, %637 : vector<16x32xf32>
    %c0_190 = arith.constant 0 : index
    %c0_191 = arith.constant 0 : index
    %639 = vector.load %arg11[%c0_190, %c0_191] : memref<16x32xf32, #tpu.memory_space<vmem>>, vector<16x32xf32>
    tpu.vector_store %arg11[%c0_190, %c0_191], %638 {strides = array<i32>} : memref<16x32xf32, #tpu.memory_space<vmem>>, vector<16x32xf32>,
    return
  }
}

</mosaic_0001>

<bundles_post_ra>
// kernel: transformer_data_encoder.1
= control target key start
LH: loop header
LB: loop body
LE: loop exit
PB: predicated region body
PF: predicated region fallthrough
CT: control target
= control target key end

     0   :  { %16 = vsyncpa [#allocation3], 0  ;;  %s4721_s0 = inlined_call_operand.vmem [shape: f32[16,32], index: 0, kind: input, shape index: {}]   ;;  %s4722_s1 = inlined_call_operand.vmem [shape: f32[16,32], index: 1, kind: input, shape index: {}]   ;;  %s4723_s2 = inlined_call_operand.vmem [shape: f32[2,4,32], index: 2, kind: input, shape index: {}]   ;;  %s4724_s3 = inlined_call_operand.vmem [shape: f32[2,32,96], index: 3, kind: input, shape index: {}]   ;;  %s4725_s4 = inlined_call_operand.vmem [shape: f32[2,1,96], index: 4, kind: input, shape index: {}]   ;;  %s4726_s5 = inlined_call_operand.vmem [shape: f32[2,32,32], index: 5, kind: input, shape index: {}]   ;;  %s4727_s6 = inlined_call_operand.vmem [shape: f32[2,2,32], index: 6, kind: input, shape index: {}]   ;;  %s4728_s7 = inlined_call_operand.vmem [shape: f32[2,32,64], index: 7, kind: input, shape index: {}]   ;;  %s4729_s8 = inlined_call_operand.hbm [shape: f32[2,1,64], index: 8, kind: input, shape index: {}]   ;;  %s4730_s9 = inlined_call_operand.vmem [shape: f32[2,64,32], index: 9, kind: input, shape index: {}]   ;;  %s4731_s10 = inlined_call_operand.vmem [shape: f32[2,32], index: 10, kind: input, shape index: {}]   ;;  %s4732_s11 = inlined_call_operand.hbm [shape: f32[16,32], index: 11, kind: output, shape index: {}]  }
   0x1   :  { %17 = vsyncpa [#allocation4], 0  ;;  %s3910_s17 = smov [#allocation2]  }
   0x2   :  { %s39_s18 = sshll.u32 %s3910_s17, 4  ;;  %s40_s18 = int_to_ptr.vmem [resolvable:$true] %s39_s18 }
   0x3   :  { %s3874_s19 = scalar_lea.vmem %s40_s18, 32  ;;  %p3879_p1 = scmp.lt.s32.totalorder %s40_s18, %s40_s18 }
   0x4   :  { %p3875_p0 = scmp.ne.s32.totalorder %s40_s18, %s3874_s19  ;;  %p3880_p2 = scmp.lt.s32.totalorder %s3874_s19, %s3874_s19 }
   0x6   :  { %p3881_p3 = por %p3880_p2, %p3879_p1 }
   0x8   :  { %p3882_p4 = pnand %p3881_p3, %p3875_p0 }
   0xa   :  { %3885 = shalt.err (!%p3882_p4)
}
   0xb   :  { %s3911_s20 = smov 16   ;;  %s3912_s21 = smov 1  }
   0xc   :  { %45 = dma.hbm_to_vmem [thread:$0]  %s4729_s8, 32, %s40_s18, [#allocation3], %s3911_s20, %s3911_s20, %s3912_s21  }
   0xd   :  { %3906 = dma.done.wait [#allocation3], 32  }
   0xe   :  { %3907 = vsyncadd [#allocation3], 4294967264  ;;  %v54_v0 = vld [vmem:[%s4721_s0] sm:$0xff]  ;;  %vm62_vm0 = vcmask 261120   ;;  %v55_v2 = vld [vmem:[%s4721_s0 + $0x8] sm:$0xff]  ;;  %v3913_v21 = vmov 0.0   ;;  %v90_v31 = vlaneseq }
   0xf   :  { %v56_v1 = vld [vmem:[%s4722_s1] sm:$0xff]  ;;  %v57_v4 = vld [vmem:[%s4722_s1 + $0x8] sm:$0xff]  ;;  %v104_v18 = vld [vmem:[%s4724_s3 + $0x10] sm:$0xff]  ;;  %3411 = vmatprep.subr.bf16.mxu1 %v3913_v21  ;;  %vm3914_vm1 = vmmov 0   ;;  %3425 = vmatprep.subr.bf16.mxu0 %v3913_v21  ;;  %s3915_s22 = smov 88   ;;  %s3916_s23 = smov 96  }
  0x10   :  { %v4001_v3 = vadd.f32 %v56_v1, %v54_v0  ;;  %v4006_v5 = vadd.f32 %v57_v4, %v55_v2  ;;  %v105_v19 = vld [vmem:[%s4724_s3 + $0x18] sm:$0xff]  ;;  %v102_v20 = vld [vmem:[%s4724_s3] sm:$0xff]  ;;  %v103_v23 = vld [vmem:[%s4724_s3 + $0x8] sm:$0xff]  ;;  %3415 = vmatprep.mubr.msk.bf16.mxu1 %vm3914_vm1, %v3913_v21  ;;  %3427 = vmatprep.mubr.msk.bf16.mxu0 %vm3914_vm1, %v3913_v21  ;;  %v4036_v32 = vshrl.u32 %v90_v31, 7  ;;  %s3917_s24 = smov 120   ;;  %vm168_vm2 = vcmask 64512  }
  0x11   :  { %v108_v22 = vpack.c.bf16 %v105_v19, %v104_v18  ;;  %v107_v24 = vpack.c.bf16 %v103_v23, %v102_v20  ;;  %v4044_v34 = vld [vmem:[%s4723_s2] sm:$0xf]  ;;  %s3918_s25 = smov 64   ;;  %s3919_s26 = smov 80   ;;  %vm233_vm3 = vcmask 1043456   ;;  %vm1557_vm4 = vcmask 523264  }
  0x12   :  { %v63_v6 = vsel %vm62_vm0, %v4001_v3, 0.0  ;;  %v66_v7 = vsel %vm62_vm0, %v4006_v5, 0.0  ;;  %v4039_v33 = vsub.s32 0, %v4036_v32  ;;  %v4049_v38 = vsub.s32 1, %v4036_v32  ;;  %v3210_v47 = vld [vmem:[%s4725_s4] ss:$0 sm:$0xff] }
  0x13   :  { %64 = vadd.xlane.f32.xlu0 %v63_v6  ;;  %3412 = vmatpush3.bf16.msra.mxu1 %v108_v22  ;;  %s3920_s27 = smov 112   ;;  %s3921_s28 = smov 56  }
  0x14   :  { %3413 = vmatprep.subr.bf16.mxu1 %v3913_v21  ;;  %v93_v37 = vrot.slane %v4044_v34, %v4039_v33  ;;  %v99_v42 = vrot.slane %v4044_v34, %v4049_v38  ;;  %s3922_s1 = smov 72   ;;  %s3923_s8 = smov 104  }
  0x15   :  { %s3924_s13 = smov 48   ;;  %s3925_s16 = smov 40  }
  0x17   :  { %67 = vadd.xlane.f32.xlu0 %v66_v7  ;;  %3414 = vmatpush3.bf16.msra.mxu1 %v107_v24 }
  0x18   :  { %3419 = vmatprep.subr.bf16.mxu1 %v3913_v21 }
  0x9c   :  { %v65_v8 = vpop.xlane.xlu0 %64 }
  0x9d   :  { %v70_v9 = vmul.f32 0.03125, %v65_v8 }
  0x9f   :  { %v72_v10 = vsub.f32 %v4001_v3, %v70_v9 }
  0xa0   :  { %v68_v11 = vpop.xlane.xlu0 %67 }
  0xa1   :  { %v71_v12 = vmul.f32 0.03125, %v68_v11  ;;  %v74_v13 = vmul.f32 %v72_v10, %v72_v10 }
  0xa3   :  { %v73_v14 = vsub.f32 %v4006_v5, %v71_v12  ;;  %v76_v15 = vsel %vm62_vm0, %v74_v13, 0.0 }
  0xa4   :  { %77 = vadd.xlane.f32.xlu1 %v76_v15 }
  0xa5   :  { %v75_v16 = vmul.f32 %v73_v14, %v73_v14 }
  0xa7   :  { %v79_v17 = vsel %vm62_vm0, %v75_v16, 0.0 }
  0xa8   :  { %80 = vadd.xlane.f32.xlu1 %v79_v17 }
 0x12d   :  { %v78_v25 = vpop.xlane.xlu1 %77 }
 0x12e   :  { %v82_v26 = vmul.f32 0.03125, %v78_v25 }
 0x130   :  { %v84_v27 = vadd.f32 1e-05, %v82_v26 }
 0x131   :  { %v81_v28 = vpop.xlane.xlu1 %80 }
 0x132   :  { %3774 = vrsqrt.f32 %v84_v27  ;;  %v83_v29 = vmul.f32 0.03125, %v81_v28 }
 0x134   :  { %v85_v30 = vadd.f32 1e-05, %v83_v29 }
 0x136   :  { %3776 = vrsqrt.f32 %v85_v30 }
 0x13f   :  { %v3775_v35 = vpop.eup %3774 }
 0x140   :  { %v88_v36 = vmul.f32 %v3775_v35, %v72_v10 }
 0x142   :  { %v94_v41 = vmul.f32 %v93_v37, %v88_v36  ;;  %v160_v36 = vld [vmem:[%s4726_s5] sm:$0xff] }
 0x143   :  { %v3777_v39 = vpop.eup %3776 }
 0x144   :  { %v89_v40 = vmul.f32 %v3777_v39, %v73_v14  ;;  %v100_v44 = vadd.f32 %v99_v42, %v94_v41 }
 0x146   :  { %v95_v43 = vmul.f32 %v93_v37, %v89_v40  ;;  %v278_v37 = vpack.c.bf16 %v160_v36, %v160_v36  ;;  %v161_v40 = vld [vmem:[%s4726_s5 + $0x8] sm:$0xff] }
 0x147   :  { %v391_v41 = vpack.c.bf16 %v161_v40, %v161_v40 }
 0x148   :  { %v101_v45 = vadd.f32 %v99_v42, %v95_v43  ;;  %v4106_v39 = vsel %vm233_vm3, %v278_v37, 0 }
 0x149   :  { %v4114_v42 = vsel %vm233_vm3, %v391_v41, 0 }
 0x14a   :  { %v106_v46 = vpack.c.bf16 %v101_v45, %v100_v44 }
 0x14c   :  { %3416 = vmatmul.mubr.msk.bf16.vlgmr.msra.gmra.mxu1 %vm62_vm0, %v106_v46 }
 0x14d   :  { %3421 = vmatprep.mubr.msk.bf16.mxu1 %vm3914_vm1, %v3913_v21 }
 0x20c   :  { %v153_v48 = vpop.f32.mrf.mxu1 }
 0x20d   :  { %v154_v49 = vadd.f32 %v3210_v47, %v153_v48 }
 0x20e   :  { %v3417_v50 = vpop.f32.mrf.mxu1 }
 0x20f   :  { %v4059_v51 = vpack.c.bf16 %v154_v49, %v154_v49 }
 0x210   :  { %v156_v52 = vpop.f32.mrf.mxu1 }
 0x211   :  { %v4061_v53 = vadd.f32 %v3210_v47, %v156_v52  ;;  %281 = vrot.lane.b32.xlu1 %v4059_v51, %s3915_s22  ;;  %166 = vrot.lane.b32.xlu0 %v4059_v51, %s3916_s23 }
 0x212   :  { %v3418_v54 = vpop.f32.mrf.mxu1 }
 0x215   :  { %279 = vrot.lane.b32.xlu1 %v4059_v51, %s3917_s24 }
 0x283   :  { %v167_v55 = vpop.permute.xlu0 %166  ;;  %v282_v57 = vpop.permute.xlu1 %281 }
 0x284   :  { %v173_v56 = vsel %vm168_vm2, %v167_v55, 0  ;;  %v287_v58 = vsel %vm168_vm2, %v282_v57, 0 }
 0x285   :  { %3420 = vmatpush3.bf16.xpose.msra.mxu1 %v173_v56 }
 0x286   :  { %3431 = vmatprep.subr.bf16.mxu1 %v3913_v21 }
 0x287   :  { %v280_v59 = vpop.permute.xlu1 %279 }
 0x28c   :  { %3422 = vmatmul.mubr.msk.bf16.vlgmr.msra.gmra.mxu1 %vm168_vm2, %v4059_v51 }
 0x28d   :  { %3432 = vmatpush3.bf16.xpose.msra.mxu1 %v287_v58  ;;  %3433 = vmatprep.mubr.msk.bf16.mxu1 %vm3914_vm1, %v3913_v21 }
 0x28e   :  { %3443 = vmatprep.subr.bf16.mxu1 %v3913_v21 }
 0x294   :  { %3434 = vmatmul.mubr.msk.bf16.vlgmr.msra.gmra.mxu1 %vm168_vm2, %v280_v59 }
 0x295   :  { %3445 = vmatprep.mubr.msk.bf16.mxu1 %vm3914_vm1, %v3913_v21  ;;  %3444 = vmatpush3.bf16.msra.mxu1 %v4114_v42 }
 0x296   :  { %3455 = vmatprep.subr.bf16.mxu1 %v3913_v21 }
 0x34c   :  { %v209_v60 = vpop.f32.mrf.mxu1 }
 0x34d   :  { %v215_v61 = vmul.f32 0.35355338, %v209_v60 }
 0x34e   :  { %v3423_v62 = vpop.f32.mrf.mxu1 }
 0x34f   :  { %v216_v63 = vsel %vm168_vm2, %v215_v61, -inf }
 0x350   :  { %217 = vmax.xlane.f32.xlu1 %v216_v63  ;;  %v212_v0 = vpop.f32.mrf.mxu1 }
 0x352   :  { %v3424_v1 = vpop.f32.mrf.mxu1 }
 0x354   :  { %v323_v2 = vpop.f32.mrf.mxu1 }
 0x355   :  { %v329_v4 = vmul.f32 0.35355338, %v323_v2 }
 0x356   :  { %v3435_v6 = vpop.f32.mrf.mxu1 }
 0x357   :  { %v330_v7 = vsel %vm168_vm2, %v329_v4, -inf }
 0x358   :  { %331 = vmax.xlane.f32.xlu0 %v330_v7  ;;  %v326_v8 = vpop.f32.mrf.mxu1 }
 0x35a   :  { %v3436_v9 = vpop.f32.mrf.mxu1 }
 0x361   :  { %228 = vrot.lane.b32.xlu1 %v4059_v51, %s3918_s25 }
 0x365   :  { %486 = vrot.lane.b32.xlu1 %v4059_v51, %s3919_s26 }
 0x369   :  { %484 = vrot.lane.b32.xlu1 %v4059_v51, %s3920_s27 }
 0x3d9   :  { %v218_v10 = vpop.xlane.xlu1 %217 }
 0x3da   :  { %v219_v11 = vsub.f32 %v215_v61, %v218_v10 }
 0x3dc   :  { %v220_v12 = vmul.f32 1.442695, %v219_v11 }
 0x3dd   :  { %v229_v13 = vpop.permute.xlu1 %228 }
 0x3de   :  { %3778 = vpow2.f32 %v220_v12  ;;  %v235_v14 = vsel %vm233_vm3, %v229_v13, 0 }
 0x3df   :  { %3426 = vmatpush3.bf16.msra.mxu0 %v235_v14 }
 0x3e0   :  { %3437 = vmatprep.subr.bf16.mxu0 %v3913_v21 }
 0x3e1   :  { %v332_v15 = vpop.xlane.xlu0 %331  ;;  %v487_v48 = vpop.permute.xlu1 %486 }
 0x3e2   :  { %v333_v16 = vsub.f32 %v329_v4, %v332_v15  ;;  %v492_v54 = vsel %vm168_vm2, %v487_v48, 0 }
 0x3e4   :  { %v334_v17 = vmul.f32 1.442695, %v333_v16 }
 0x3e5   :  { %v485_v57 = vpop.permute.xlu1 %484 }
 0x3e6   :  { %3780 = vpow2.f32 %v334_v17 }
 0x3eb   :  { %v3779_v18 = vpop.eup %3778 }
 0x3ec   :  { %v222_v19 = vsel %vm168_vm2, %v3779_v18, 0.0 }
 0x3ed   :  { %223 = vadd.xlane.f32.xlu0 %v222_v19 }
 0x3f3   :  { %v3781_v20 = vpop.eup %3780 }
 0x3f4   :  { %v336_v22 = vsel %vm168_vm2, %v3781_v20, 0.0 }
 0x3f5   :  { %337 = vadd.xlane.f32.xlu0 %v336_v22 }
 0x40b   :  { %342 = vrot.lane.b32.xlu0 %v4059_v51, %s3921_s28 }
 0x476   :  { %v224_v23 = vpop.xlane.xlu0 %223 }
 0x477   :  { %3782 = vrcp.f32 %v224_v23 }
 0x47e   :  { %v338_v24 = vpop.xlane.xlu0 %337 }
 0x47f   :  { %3784 = vrcp.f32 %v338_v24 }
 0x482   :  { %v343_v27 = vpop.permute.xlu0 %342 }
 0x483   :  { %v348_v29 = vsel %vm233_vm3, %v343_v27, 0 }
 0x484   :  { %v3783_v25 = vpop.eup %3782 }
 0x485   :  { %v226_v26 = vmul.f32 %v3783_v25, %v3779_v18 }
 0x487   :  { %v227_v28 = vpack.c.bf16 %v226_v26, %v226_v26  ;;  %v162_v26 = vld [vmem:[%s4726_s5 + $0x10] sm:$0xff] }
 0x488   :  { %v596_v27 = vpack.c.bf16 %v162_v26, %v162_v26 }
 0x489   :  { %3428 = vmatmul.mubr.msk.bf16.vlgmr.msra.gmra.mxu0 %vm168_vm2, %v227_v28 }
 0x48a   :  { %3438 = vmatpush3.bf16.msra.mxu0 %v348_v29  ;;  %3439 = vmatprep.mubr.msk.bf16.mxu0 %vm3914_vm1, %v3913_v21  ;;  %v4153_v28 = vsel %vm233_vm3, %v596_v27, 0 }
 0x48b   :  { %3449 = vmatprep.subr.bf16.mxu0 %v3913_v21 }
 0x48c   :  { %v3785_v30 = vpop.eup %3784 }
 0x48d   :  { %v340_v31 = vmul.f32 %v3785_v30, %v3781_v20 }
 0x48f   :  { %v341_v35 = vpack.c.bf16 %v340_v31, %v340_v31 }
 0x491   :  { %3440 = vmatmul.mubr.msk.bf16.vlgmr.msra.gmra.mxu0 %vm168_vm2, %v341_v35 }
 0x492   :  { %3451 = vmatprep.mubr.msk.bf16.mxu0 %vm3914_vm1, %v3913_v21  ;;  %3450 = vmatpush3.bf16.msra.mxu0 %v4106_v39 }
 0x493   :  { %3461 = vmatprep.subr.bf16.mxu0 %v3913_v21 }
 0x549   :  { %v271_v43 = vpop.f32.mrf.mxu0 }
 0x54a   :  { %v277_v44 = vpack.c.bf16 %v271_v43, %v271_v43 }
 0x54b   :  { %v3429_v45 = vpop.f32.mrf.mxu0 }
 0x54c   :  { %3452 = vmatmul.mubr.msk.bf16.vlgmr.msra.gmra.mxu0 %vm168_vm2, %v277_v44 }
 0x54d   :  { %v274_v46 = vpop.f32.mrf.mxu0  ;;  %3463 = vmatprep.mubr.msk.bf16.mxu0 %vm3914_vm1, %v3913_v21 }
 0x54e   :  { %v4165_v46 = vpack.c.bf16 %v4061_v53, %v4061_v53 }
 0x54f   :  { %v3430_v47 = vpop.f32.mrf.mxu0 }
 0x551   :  { %v384_v49 = vpop.f32.mrf.mxu0 }
 0x552   :  { %v390_v50 = vpack.c.bf16 %v384_v49, %v384_v49 }
 0x553   :  { %v3441_v52 = vpop.f32.mrf.mxu0 }
 0x554   :  { %3446 = vmatmul.mubr.msk.bf16.vlgmr.msra.gmra.mxu1 %vm168_vm2, %v390_v50 }
 0x555   :  { %3456 = vmatpush3.bf16.xpose.msra.mxu1 %v492_v54  ;;  %v387_v55 = vpop.f32.mrf.mxu0  ;;  %3457 = vmatprep.mubr.msk.bf16.mxu1 %vm3914_vm1, %v3913_v21 }
 0x556   :  { %3467 = vmatprep.subr.bf16.mxu1 %v3913_v21 }
 0x557   :  { %v3442_v56 = vpop.f32.mrf.mxu0 }
 0x55c   :  { %3458 = vmatmul.mubr.msk.bf16.vlgmr.msra.gmra.mxu1 %vm168_vm2, %v485_v57 }
 0x55d   :  { %3469 = vmatprep.mubr.msk.bf16.mxu1 %vm3914_vm1, %v3913_v21  ;;  %3468 = vmatpush3.bf16.msra.mxu1 %v4153_v28 }
 0x55e   :  { %3479 = vmatprep.subr.bf16.mxu1 %v3913_v21 }
 0x60c   :  { %v478_v58 = vpop.f32.mrf.mxu0 }
 0x60e   :  { %v3453_v59 = vpop.f32.mrf.mxu0 }
 0x610   :  { %v481_v60 = vpop.f32.mrf.mxu0 }
 0x612   :  { %v3454_v61 = vpop.f32.mrf.mxu0 }
 0x614   :  { %v432_v62 = vpop.f32.mrf.mxu1 }
 0x615   :  { %v4129_v63 = vadd.f32 %v478_v58, %v432_v62 }
 0x616   :  { %v3447_v0 = vpop.f32.mrf.mxu1 }
 0x618   :  { %v435_v1 = vpop.f32.mrf.mxu1 }
 0x61a   :  { %v3448_v2 = vpop.f32.mrf.mxu1 }
 0x61c   :  { %v528_v4 = vpop.f32.mrf.mxu1 }
 0x61d   :  { %v534_v6 = vmul.f32 0.35355338, %v528_v4 }
 0x61e   :  { %v3459_v7 = vpop.f32.mrf.mxu1 }
 0x61f   :  { %v535_v8 = vsel %vm168_vm2, %v534_v6, -inf }
 0x620   :  { %536 = vmax.xlane.f32.xlu1 %v535_v8  ;;  %v531_v9 = vpop.f32.mrf.mxu1 }
 0x622   :  { %v3460_v10 = vpop.f32.mrf.mxu1 }
 0x631   :  { %646 = vrot.lane.b32.xlu1 %v4059_v51, %s3922_s1 }
 0x635   :  { %644 = vrot.lane.b32.xlu1 %v4059_v51, %s3923_s8 }
 0x6a9   :  { %v537_v11 = vpop.xlane.xlu1 %536 }
 0x6aa   :  { %v538_v12 = vsub.f32 %v534_v6, %v537_v11  ;;  %v163_v6 = vld [vmem:[%s4726_s5 + $0x18] sm:$0xff] }
 0x6ab   :  { %v756_v7 = vpack.c.bf16 %v163_v6, %v163_v6 }
 0x6ac   :  { %v539_v13 = vmul.f32 1.442695, %v538_v12 }
 0x6ad   :  { %v647_v22 = vpop.permute.xlu1 %646  ;;  %v4199_v8 = vsel %vm233_vm3, %v756_v7, 0 }
 0x6ae   :  { %3786 = vpow2.f32 %v539_v13  ;;  %v652_v24 = vsel %vm168_vm2, %v647_v22, 0 }
 0x6b1   :  { %v645_v25 = vpop.permute.xlu1 %644 }
 0x6bb   :  { %v3787_v14 = vpop.eup %3786 }
 0x6bc   :  { %v541_v15 = vsel %vm168_vm2, %v3787_v14, 0.0 }
 0x6bd   :  { %542 = vadd.xlane.f32.xlu0 %v541_v15 }
 0x6d3   :  { %547 = vrot.lane.b32.xlu0 %v4059_v51, %s3924_s13 }
 0x746   :  { %v543_v16 = vpop.xlane.xlu0 %542 }
 0x747   :  { %3788 = vrcp.f32 %v543_v16 }
 0x74a   :  { %v548_v17 = vpop.permute.xlu0 %547 }
 0x74b   :  { %v553_v18 = vsel %vm233_vm3, %v548_v17, 0 }
 0x74c   :  { %3462 = vmatpush3.bf16.msra.mxu0 %v553_v18 }
 0x74d   :  { %3473 = vmatprep.subr.bf16.mxu0 %v3913_v21 }
 0x754   :  { %v3789_v19 = vpop.eup %3788 }
 0x755   :  { %v545_v20 = vmul.f32 %v3789_v19, %v3787_v14 }
 0x757   :  { %v546_v23 = vpack.c.bf16 %v545_v20, %v545_v20 }
 0x759   :  { %3464 = vmatmul.mubr.msk.bf16.vlgmr.msra.gmra.mxu0 %vm168_vm2, %v546_v23 }
 0x75a   :  { %3474 = vmatpush3.bf16.xpose.msra.mxu0 %v652_v24  ;;  %3475 = vmatprep.mubr.msk.bf16.mxu0 %vm3914_vm1, %v3913_v21 }
 0x75b   :  { %3485 = vmatprep.subr.bf16.mxu0 %v3913_v21 }
 0x761   :  { %3476 = vmatmul.mubr.msk.bf16.vlgmr.msra.gmra.mxu0 %vm168_vm2, %v645_v25 }
 0x762   :  { %3487 = vmatprep.mubr.msk.bf16.mxu0 %vm3914_vm1, %v3913_v21  ;;  %3486 = vmatpush3.bf16.msra.mxu0 %v4199_v8 }
 0x763   :  { %3497 = vmatprep.subr.bf16.mxu0 %v3913_v21 }
 0x819   :  { %v589_v29 = vpop.f32.mrf.mxu0 }
 0x81a   :  { %v595_v30 = vpack.c.bf16 %v589_v29, %v589_v29 }
 0x81b   :  { %v3465_v31 = vpop.f32.mrf.mxu0 }
 0x81c   :  { %3470 = vmatmul.mubr.msk.bf16.vlgmr.msra.gmra.mxu1 %vm168_vm2, %v595_v30 }
 0x81d   :  { %v592_v35 = vpop.f32.mrf.mxu0  ;;  %3481 = vmatprep.mubr.msk.bf16.mxu1 %vm3914_vm1, %v3913_v21 }
 0x81f   :  { %v3466_v36 = vpop.f32.mrf.mxu0 }
 0x821   :  { %v688_v37 = vpop.f32.mrf.mxu0 }
 0x822   :  { %v694_v40 = vmul.f32 0.35355338, %v688_v37 }
 0x823   :  { %v3477_v41 = vpop.f32.mrf.mxu0 }
 0x824   :  { %v695_v43 = vsel %vm168_vm2, %v694_v40, -inf }
 0x825   :  { %696 = vmax.xlane.f32.xlu0 %v695_v43  ;;  %v691_v44 = vpop.f32.mrf.mxu0 }
 0x827   :  { %v3478_v45 = vpop.f32.mrf.mxu0 }
 0x83b   :  { %707 = vrot.lane.b32.xlu0 %v4059_v51, %s3925_s16 }
 0x83f   :  { %918 = vrot.lane.b32.xlu0 %v4165_v46, %s3915_s22 }
 0x8ae   :  { %v697_v47 = vpop.xlane.xlu0 %696 }
 0x8af   :  { %v698_v48 = vsub.f32 %v694_v40, %v697_v47 }
 0x8b1   :  { %v699_v49 = vmul.f32 1.442695, %v698_v48 }
 0x8b2   :  { %v708_v50 = vpop.permute.xlu0 %707 }
 0x8b3   :  { %3790 = vpow2.f32 %v699_v49  ;;  %v713_v52 = vsel %vm233_vm3, %v708_v50, 0 }
 0x8b4   :  { %3480 = vmatpush3.bf16.msra.mxu1 %v713_v52 }
 0x8b5   :  { %3491 = vmatprep.subr.bf16.mxu1 %v3913_v21 }
 0x8c0   :  { %v3791_v54 = vpop.eup %3790 }
 0x8c1   :  { %v701_v51 = vsel %vm168_vm2, %v3791_v54, 0.0 }
 0x8c2   :  { %702 = vadd.xlane.f32.xlu1 %v701_v51 }
 0x8d3   :  { %806 = vrot.lane.b32.xlu1 %v4165_v46, %s3916_s23 }
 0x8d7   :  { %916 = vrot.lane.b32.xlu1 %v4165_v46, %s3917_s24 }
 0x8dc   :  { %v637_v53 = vpop.f32.mrf.mxu1 }
 0x8dd   :  { %v4177_v55 = vadd.f32 %v637_v53, %v4129_v63  ;;  %v919_v63 = vpop.permute.xlu0 %918 }
 0x8de   :  { %v3471_v56 = vpop.f32.mrf.mxu1  ;;  %v924_v2 = vsel %vm168_vm2, %v919_v63, 0 }
 0x8e0   :  { %v640_v57 = vpop.f32.mrf.mxu1 }
 0x8e2   :  { %v3472_v58 = vpop.f32.mrf.mxu1 }
 0x94b   :  { %v703_v59 = vpop.xlane.xlu1 %702 }
 0x94c   :  { %3792 = vrcp.f32 %v703_v59 }
 0x94f   :  { %v807_v62 = vpop.permute.xlu1 %806 }
 0x950   :  { %v812_v1 = vsel %vm168_vm2, %v807_v62, 0 }
 0x953   :  { %v917_v4 = vpop.permute.xlu1 %916 }
 0x959   :  { %v3793_v60 = vpop.eup %3792 }
 0x95a   :  { %v705_v61 = vmul.f32 %v3793_v60, %v3791_v54 }
 0x95c   :  { %v706_v0 = vpack.c.bf16 %v705_v61, %v705_v61 }
 0x95e   :  { %3482 = vmatmul.mubr.msk.bf16.vlgmr.msra.gmra.mxu1 %vm168_vm2, %v706_v0 }
 0x95f   :  { %3492 = vmatpush3.bf16.xpose.msra.mxu1 %v812_v1  ;;  %3493 = vmatprep.mubr.msk.bf16.mxu1 %vm3914_vm1, %v3913_v21 }
 0x960   :  { %3503 = vmatprep.subr.bf16.mxu1 %v3913_v21 }
 0x966   :  { %3494 = vmatmul.mubr.msk.bf16.vlgmr.msra.gmra.mxu1 %vm168_vm2, %v4165_v46 }
 0x967   :  { %3504 = vmatpush3.bf16.xpose.msra.mxu1 %v924_v2  ;;  %3505 = vmatprep.mubr.msk.bf16.mxu1 %vm3914_vm1, %v3913_v21 }
 0x968   :  { %3515 = vmatprep.subr.bf16.mxu1 %v3913_v21 }
 0x96e   :  { %3506 = vmatmul.mubr.msk.bf16.vlgmr.msra.gmra.mxu1 %vm168_vm2, %v917_v4 }
 0x96f   :  { %3516 = vmatpush3.bf16.msra.mxu1 %v4114_v42  ;;  %3517 = vmatprep.mubr.msk.bf16.mxu1 %vm3914_vm1, %v3913_v21 }
 0x970   :  { %3527 = vmatprep.subr.bf16.mxu1 %v3913_v21 }
 0xa1e   :  { %v749_v9 = vpop.f32.mrf.mxu1 }
 0xa1f   :  { %v755_v10 = vpack.c.bf16 %v749_v9, %v749_v9 }
 0xa20   :  { %v3483_v42 = vpop.f32.mrf.mxu1 }
 0xa21   :  { %3488 = vmatmul.mubr.msk.bf16.vlgmr.msra.gmra.mxu0 %vm168_vm2, %v755_v10 }
 0xa22   :  { %v752_v11 = vpop.f32.mrf.mxu1  ;;  %3499 = vmatprep.mubr.msk.bf16.mxu0 %vm3914_vm1, %v3913_v21 }
 0xa24   :  { %v3484_v12 = vpop.f32.mrf.mxu1 }
 0xa26   :  { %v848_v13 = vpop.f32.mrf.mxu1 }
 0xa27   :  { %v854_v14 = vmul.f32 0.35355338, %v848_v13 }
 0xa28   :  { %v3495_v15 = vpop.f32.mrf.mxu1 }
 0xa29   :  { %v855_v16 = vsel %vm168_vm2, %v854_v14, -inf }
 0xa2a   :  { %856 = vmax.xlane.f32.xlu0 %v855_v16  ;;  %v851_v17 = vpop.f32.mrf.mxu1 }
 0xa2c   :  { %v3496_v18 = vpop.f32.mrf.mxu1 }
 0xa2e   :  { %v960_v19 = vpop.f32.mrf.mxu1 }
 0xa2f   :  { %v966_v20 = vmul.f32 0.35355338, %v960_v19 }
 0xa30   :  { %v3507_v22 = vpop.f32.mrf.mxu1 }
 0xa31   :  { %v967_v23 = vsel %vm168_vm2, %v966_v20, -inf }
 0xa32   :  { %968 = vmax.xlane.f32.xlu1 %v967_v23  ;;  %v963_v24 = vpop.f32.mrf.mxu1 }
 0xa34   :  { %v3508_v25 = vpop.f32.mrf.mxu1 }
 0xa43   :  { %979 = vrot.lane.b32.xlu1 %v4165_v46, %s3921_s28 }
 0xa47   :  { %1116 = vrot.lane.b32.xlu1 %v4165_v46, %s3919_s26 }
 0xa4b   :  { %1114 = vrot.lane.b32.xlu1 %v4165_v46, %s3920_s27 }
 0xab3   :  { %v857_v26 = vpop.xlane.xlu0 %856 }
 0xab4   :  { %v858_v27 = vsub.f32 %v854_v14, %v857_v26 }
 0xab6   :  { %v859_v29 = vmul.f32 1.442695, %v858_v27 }
 0xab8   :  { %3794 = vpow2.f32 %v859_v29 }
 0xabb   :  { %v969_v30 = vpop.xlane.xlu1 %968 }
 0xabc   :  { %v970_v31 = vsub.f32 %v966_v20, %v969_v30 }
 0xabe   :  { %v971_v35 = vmul.f32 1.442695, %v970_v31 }
 0xac0   :  { %3796 = vpow2.f32 %v971_v35 }
 0xac5   :  { %v3795_v36 = vpop.eup %3794 }
 0xac6   :  { %v861_v37 = vsel %vm168_vm2, %v3795_v36, 0.0 }
 0xac7   :  { %862 = vadd.xlane.f32.xlu0 %v861_v37 }
 0xacd   :  { %v3797_v40 = vpop.eup %3796 }
 0xace   :  { %v973_v41 = vsel %vm168_vm2, %v3797_v40, 0.0 }
 0xacf   :  { %974 = vadd.xlane.f32.xlu0 %v973_v41 }
 0xae1   :  { %v797_v43 = vpop.f32.mrf.mxu0 }
 0xae2   :  { %v4217_v44 = vadd.f32 %v797_v43, %v4177_v55  ;;  %v980_v55 = vpop.permute.xlu1 %979 }
 0xae3   :  { %v3489_v45 = vpop.f32.mrf.mxu0  ;;  %v985_v57 = vsel %vm233_vm3, %v980_v55, 0 }
 0xae5   :  { %v800_v47 = vpop.f32.mrf.mxu0  ;;  %867 = vrot.lane.b32.xlu0 %v4165_v46, %s3918_s25 }
 0xae6   :  { %v1117_v2 = vpop.permute.xlu1 %1116 }
 0xae7   :  { %v3490_v48 = vpop.f32.mrf.mxu0 }
 0xaea   :  { %v1115_v42 = vpop.permute.xlu1 %1114 }
 0xb50   :  { %v863_v49 = vpop.xlane.xlu0 %862 }
 0xb51   :  { %3798 = vrcp.f32 %v863_v49  ;;  %v4271_v49 = vld [vmem:[%s4727_s6] sm:$0x3] }
 0xb58   :  { %v975_v50 = vpop.xlane.xlu0 %974 }
 0xb59   :  { %3800 = vrcp.f32 %v975_v50 }
 0xb5c   :  { %v868_v52 = vpop.permute.xlu0 %867 }
 0xb5d   :  { %v873_v54 = vsel %vm233_vm3, %v868_v52, 0 }
 0xb5e   :  { %v3799_v51 = vpop.eup %3798  ;;  %3498 = vmatpush3.bf16.msra.mxu0 %v873_v54 }
 0xb5f   :  { %3509 = vmatprep.subr.bf16.mxu0 %v3913_v21  ;;  %v865_v53 = vmul.f32 %v3799_v51, %v3795_v36  ;;  %v1429_v51 = vrot.slane %v4271_v49, %v4039_v33 }
 0xb61   :  { %v866_v56 = vpack.c.bf16 %v865_v53, %v865_v53  ;;  %v1430_v55 = vadd.f32 %v1429_v51, %v4217_v44 }
 0xb63   :  { %3500 = vmatmul.mubr.msk.bf16.vlgmr.msra.gmra.mxu0 %vm168_vm2, %v866_v56 }
 0xb64   :  { %3510 = vmatpush3.bf16.msra.mxu0 %v985_v57  ;;  %3511 = vmatprep.mubr.msk.bf16.mxu0 %vm3914_vm1, %v3913_v21 }
 0xb65   :  { %3521 = vmatprep.subr.bf16.mxu0 %v3913_v21 }
 0xb66   :  { %v3801_v58 = vpop.eup %3800 }
 0xb67   :  { %v977_v59 = vmul.f32 %v3801_v58, %v3797_v40 }
 0xb69   :  { %v978_v60 = vpack.c.bf16 %v977_v59, %v977_v59  ;;  %v4280_v59 = vadd.f32 %v1430_v55, %v4001_v3 }
 0xb6b   :  { %3512 = vmatmul.mubr.msk.bf16.vlgmr.msra.gmra.mxu0 %vm168_vm2, %v978_v60 }
 0xb6c   :  { %3522 = vmatpush3.bf16.msra.mxu0 %v4106_v39  ;;  %3523 = vmatprep.mubr.msk.bf16.mxu0 %vm3914_vm1, %v3913_v21  ;;  %v1122_v39 = vsel %vm168_vm2, %v1117_v2, 0 }
 0xb6d   :  { %3533 = vmatprep.subr.bf16.mxu0 %v3913_v21 }
 0xc23   :  { %v909_v61 = vpop.f32.mrf.mxu0 }
 0xc24   :  { %v915_v62 = vpack.c.bf16 %v909_v61, %v909_v61 }
 0xc25   :  { %v3501_v0 = vpop.f32.mrf.mxu0 }
 0xc26   :  { %3524 = vmatmul.mubr.msk.bf16.vlgmr.msra.gmra.mxu0 %vm168_vm2, %v915_v62  ;;  %v1434_v0 = vsel %vm62_vm0, %v4280_v59, 0.0 }
 0xc27   :  { %v912_v1 = vpop.f32.mrf.mxu0  ;;  %3535 = vmatprep.mubr.msk.bf16.mxu0 %vm3914_vm1, %v3913_v21 }
 0xc29   :  { %v3502_v63 = vpop.f32.mrf.mxu0 }
 0xc2b   :  { %v1021_v4 = vpop.f32.mrf.mxu0 }
 0xc2c   :  { %v1027_v6 = vpack.c.bf16 %v1021_v4, %v1021_v4 }
 0xc2d   :  { %v3513_v7 = vpop.f32.mrf.mxu0 }
 0xc2e   :  { %3518 = vmatmul.mubr.msk.bf16.vlgmr.msra.gmra.mxu1 %vm168_vm2, %v1027_v6 }
 0xc2f   :  { %3528 = vmatpush3.bf16.xpose.msra.mxu1 %v1122_v39  ;;  %v1024_v9 = vpop.f32.mrf.mxu0  ;;  %3529 = vmatprep.mubr.msk.bf16.mxu1 %vm3914_vm1, %v3913_v21 }
 0xc30   :  { %3539 = vmatprep.subr.bf16.mxu1 %v3913_v21 }
 0xc31   :  { %v3514_v10 = vpop.f32.mrf.mxu0 }
 0xc36   :  { %3530 = vmatmul.mubr.msk.bf16.vlgmr.msra.gmra.mxu1 %vm168_vm2, %v1115_v42 }
 0xc37   :  { %3540 = vmatpush3.bf16.msra.mxu1 %v4153_v28  ;;  %3541 = vmatprep.mubr.msk.bf16.mxu1 %vm3914_vm1, %v3913_v21 }
 0xc38   :  { %3551 = vmatprep.subr.bf16.mxu1 %v3913_v21 }
 0xce6   :  { %v1108_v11 = vpop.f32.mrf.mxu0 }
 0xce8   :  { %v3525_v12 = vpop.f32.mrf.mxu0 }
 0xcea   :  { %v1111_v13 = vpop.f32.mrf.mxu0 }
 0xcec   :  { %v3526_v14 = vpop.f32.mrf.mxu0 }
 0xcee   :  { %v1065_v15 = vpop.f32.mrf.mxu1 }
 0xcef   :  { %v4246_v16 = vadd.f32 %v1108_v11, %v1065_v15 }
 0xcf0   :  { %v3519_v17 = vpop.f32.mrf.mxu1 }
 0xcf2   :  { %v1068_v18 = vpop.f32.mrf.mxu1 }
 0xcf4   :  { %v3520_v19 = vpop.f32.mrf.mxu1 }
 0xcf6   :  { %v1158_v20 = vpop.f32.mrf.mxu1 }
 0xcf7   :  { %v1164_v22 = vmul.f32 0.35355338, %v1158_v20 }
 0xcf8   :  { %v3531_v23 = vpop.f32.mrf.mxu1 }
 0xcf9   :  { %v1165_v28 = vsel %vm168_vm2, %v1164_v22, -inf }
 0xcfa   :  { %1166 = vmax.xlane.f32.xlu0 %v1165_v28  ;;  %v1161_v24 = vpop.f32.mrf.mxu1 }
 0xcfc   :  { %v3532_v25 = vpop.f32.mrf.mxu1 }
 0xd10   :  { %1177 = vrot.lane.b32.xlu0 %v4165_v46, %s3924_s13 }
 0xd14   :  { %1270 = vrot.lane.b32.xlu0 %v4165_v46, %s3923_s8 }
 0xd83   :  { %v1167_v26 = vpop.xlane.xlu0 %1166 }
 0xd84   :  { %v1168_v27 = vsub.f32 %v1164_v22, %v1167_v26 }
 0xd86   :  { %v1169_v29 = vmul.f32 1.442695, %v1168_v27 }
 0xd87   :  { %v1178_v30 = vpop.permute.xlu0 %1177 }
 0xd88   :  { %3802 = vpow2.f32 %v1169_v29  ;;  %v1183_v31 = vsel %vm233_vm3, %v1178_v30, 0 }
 0xd89   :  { %3534 = vmatpush3.bf16.msra.mxu0 %v1183_v31 }
 0xd8a   :  { %3545 = vmatprep.subr.bf16.mxu0 %v3913_v21 }
 0xd8b   :  { %v1271_v48 = vpop.permute.xlu0 %1270 }
 0xd95   :  { %v3803_v35 = vpop.eup %3802 }
 0xd96   :  { %v1171_v36 = vsel %vm168_vm2, %v3803_v35, 0.0 }
 0xd97   :  { %1172 = vadd.xlane.f32.xlu1 %v1171_v36 }
 0xda8   :  { %1272 = vrot.lane.b32.xlu1 %v4165_v46, %s3922_s1 }
 0xe20   :  { %v1173_v37 = vpop.xlane.xlu1 %1172 }
 0xe21   :  { %3804 = vrcp.f32 %v1173_v37 }
 0xe24   :  { %v1273_v43 = vpop.permute.xlu1 %1272 }
 0xe25   :  { %v1278_v47 = vsel %vm168_vm2, %v1273_v43, 0 }
 0xe2e   :  { %v3805_v40 = vpop.eup %3804 }
 0xe2f   :  { %v1175_v41 = vmul.f32 %v3805_v40, %v3803_v35 }
 0xe31   :  { %v1176_v45 = vpack.c.bf16 %v1175_v41, %v1175_v41 }
 0xe33   :  { %3536 = vmatmul.mubr.msk.bf16.vlgmr.msra.gmra.mxu0 %vm168_vm2, %v1176_v45  ;;  %v1475_v45 = vld [vmem:[%s4728_s7 + $0x18] sm:$0xff] }
 0xe34   :  { %3546 = vmatpush3.bf16.xpose.msra.mxu0 %v1278_v47  ;;  %3547 = vmatprep.mubr.msk.bf16.mxu0 %vm3914_vm1, %v3913_v21 }
 0xe35   :  { %3557 = vmatprep.subr.bf16.mxu0 %v3913_v21 }
 0xe3b   :  { %3548 = vmatmul.mubr.msk.bf16.vlgmr.msra.gmra.mxu0 %vm168_vm2, %v1271_v48  ;;  %v1472_v48 = vld [vmem:[%s4728_s7] sm:$0xff] }
 0xe3c   :  { %3558 = vmatpush3.bf16.msra.mxu0 %v4199_v8  ;;  %3559 = vmatprep.mubr.msk.bf16.mxu0 %vm3914_vm1, %v3913_v21 }
 0xe3d   :  { %3571 = vmatprep.subr.bf16.mxu0 %v3913_v21 }
 0xef3   :  { %v1219_v50 = vpop.f32.mrf.mxu0 }
 0xef4   :  { %v1225_v52 = vpack.c.bf16 %v1219_v50, %v1219_v50  ;;  %v1473_v50 = vld [vmem:[%s4728_s7 + $0x8] sm:$0xff] }
 0xef5   :  { %v3537_v54 = vpop.f32.mrf.mxu0 }
 0xef6   :  { %3542 = vmatmul.mubr.msk.bf16.vlgmr.msra.gmra.mxu1 %vm168_vm2, %v1225_v52  ;;  %v1477_v52 = vpack.c.bf16 %v1473_v50, %v1472_v48 }
 0xef7   :  { %v1222_v53 = vpop.f32.mrf.mxu0  ;;  %3553 = vmatprep.mubr.msk.bf16.mxu1 %vm3914_vm1, %v3913_v21 }
 0xef9   :  { %v3538_v8 = vpop.f32.mrf.mxu0 }
 0xefb   :  { %v1314_v56 = vpop.f32.mrf.mxu0 }
 0xefc   :  { %v1320_v57 = vmul.f32 0.35355338, %v1314_v56 }
 0xefd   :  { %v3549_v58 = vpop.f32.mrf.mxu0 }
 0xefe   :  { %v1321_v60 = vsel %vm168_vm2, %v1320_v57, -inf }
 0xeff   :  { %1322 = vmax.xlane.f32.xlu1 %v1321_v60  ;;  %v1317_v61 = vpop.f32.mrf.mxu0 }
 0xf01   :  { %v3550_v62 = vpop.f32.mrf.mxu0 }
 0xf02   :  { %v1468_v62 = vsub.s32 3, %v4036_v32 }
 0xf03   :  { %1435 = vadd.xlane.f32.xlu1 %v1434_v0 }
 0xf88   :  { %v1323_v1 = vpop.xlane.xlu1 %1322 }
 0xf89   :  { %v1324_v63 = vsub.f32 %v1320_v57, %v1323_v1  ;;  %v1462_v57 = vsub.s32 2, %v4036_v32  ;;  %v3286_v32 = vld [vmem:[%s4730_s9 + $0x60] sm:$0xff] }
 0xf8b   :  { %v1325_v2 = vmul.f32 1.442695, %v1324_v63  ;;  %v1463_v61 = vrot.slane %v4044_v34, %v1462_v57 }
 0xf8c   :  { %v1436_v19 = vpop.xlane.xlu1 %1435 }
 0xf8d   :  { %3806 = vpow2.f32 %v1325_v2  ;;  %v1440_v20 = vmul.f32 0.03125, %v1436_v19  ;;  %v1469_v2 = vrot.slane %v4044_v34, %v1468_v62  ;;  %v1544_v34 = vld [vmem:[%s4730_s9 + $0x20] sm:$0xff] }
 0xf8f   :  { %v1442_v24 = vsub.f32 %v4280_v59, %v1440_v20 }
 0xf91   :  { %v1444_v31 = vmul.f32 %v1442_v24, %v1442_v24 }
 0xf93   :  { %v1446_v35 = vsel %vm62_vm0, %v1444_v31, 0.0 }
 0xf9a   :  { %v3807_v44 = vpop.eup %3806 }
 0xf9b   :  { %v1327_v4 = vsel %vm168_vm2, %v3807_v44, 0.0 }
 0xf9c   :  { %1328 = vadd.xlane.f32.xlu0 %v1327_v4 }
 0xfb2   :  { %1333 = vrot.lane.b32.xlu0 %v4165_v46, %s3925_s16 }
 0xfb6   :  { %v1263_v3 = vpop.f32.mrf.mxu1 }
 0xfb7   :  { %v1269_v6 = vadd.f32 %v1263_v3, %v4246_v16 }
 0xfb8   :  { %v3543_v7 = vpop.f32.mrf.mxu1 }
 0xfb9   :  { %v1546_v7 = vld [vmem:[%s4730_s9 + $0x30] sm:$0xff] }
 0xfba   :  { %v1266_v39 = vpop.f32.mrf.mxu1 }
 0xfbb   :  { %v1547_v39 = vld [vmem:[%s4730_s9 + $0x38] sm:$0xff] }
 0xfbc   :  { %v3544_v9 = vpop.f32.mrf.mxu1 }
 0xfbd   :  { %v1552_v9 = vpack.c.bf16 %v1547_v39, %v1546_v7 }
0x1025   :  { %v1329_v10 = vpop.xlane.xlu0 %1328 }
0x1026   :  { %3808 = vrcp.f32 %v1329_v10  ;;  %v1545_v10 = vld [vmem:[%s4730_s9 + $0x28] sm:$0xff] }
0x1029   :  { %v1334_v42 = vpop.permute.xlu0 %1333 }
0x102a   :  { %v1339_v11 = vsel %vm233_vm3, %v1334_v42, 0  ;;  %v1551_v42 = vpack.c.bf16 %v1545_v10, %v1544_v34 }
0x102b   :  { %3552 = vmatpush3.bf16.msra.mxu1 %v1339_v11  ;;  %v1542_v11 = vld [vmem:[%s4730_s9 + $0x10] sm:$0xff] }
0x102c   :  { %3563 = vmatprep.subr.bf16.mxu1 %v3913_v21 }
0x1033   :  { %v3809_v12 = vpop.eup %3808 }
0x1034   :  { %v1331_v13 = vmul.f32 %v3809_v12, %v3807_v44  ;;  %v1543_v12 = vld [vmem:[%s4730_s9 + $0x18] sm:$0xff] }
0x1036   :  { %v1332_v14 = vpack.c.bf16 %v1331_v13, %v1331_v13  ;;  %v1550_v13 = vpack.c.bf16 %v1543_v12, %v1542_v11 }
0x1038   :  { %3554 = vmatmul.mubr.msk.bf16.vlgmr.msra.gmra.mxu1 %vm168_vm2, %v1332_v14  ;;  %v1540_v14 = vld [vmem:[%s4730_s9] sm:$0xff] }
0x1039   :  { %3567 = vmatprep.mubr.msk.bf16.mxu1 %vm3914_vm1, %v3913_v21 }
0x10f8   :  { %v1375_v46 = vpop.f32.mrf.mxu1 }
0x10f9   :  { %v1381_v15 = vpack.c.bf16 %v1375_v46, %v1375_v46  ;;  %v1541_v46 = vld [vmem:[%s4730_s9 + $0x8] sm:$0xff] }
0x10fa   :  { %v3555_v16 = vpop.f32.mrf.mxu1 }
0x10fb   :  { %3560 = vmatmul.mubr.msk.bf16.vlgmr.msra.gmra.mxu0 %vm168_vm2, %v1381_v15  ;;  %v1549_v15 = vpack.c.bf16 %v1541_v46, %v1540_v14  ;;  %v3236_v16 = vld [vmem:[#allocation2] ss:$0 sm:$0xff] }
0x10fc   :  { %v1378_v17 = vpop.f32.mrf.mxu1  ;;  %3579 = vmatprep.mubr.msk.bf16.mxu0 %vm3914_vm1, %v3913_v21  ;;  %3572 = vmatpush3.bf16.msra.mxu0 %v1552_v9 }
0x10fd   :  { %3573 = vmatprep.subr.bf16.mxu0 %v3913_v21 }
0x10fe   :  { %v3556_v18 = vpop.f32.mrf.mxu1 }
0x1100   :  { %3574 = vmatpush3.bf16.msra.mxu0 %v1551_v42  ;;  %v4395_v42 = vld [vmem:[%s4723_s2 + $0x4] sm:$0xf] }
0x1101   :  { %3575 = vmatprep.subr.bf16.mxu0 %v3913_v21 }
0x1104   :  { %3576 = vmatpush3.bf16.msra.mxu0 %v1550_v13  ;;  %v1637_v13 = vrot.slane %v4395_v42, %v4039_v33 }
0x1105   :  { %3577 = vmatprep.subr.bf16.mxu0 %v3913_v21 }
0x1108   :  { %3578 = vmatpush3.bf16.msra.mxu0 %v1549_v15 }
0x1109   :  { %3597 = vmatprep.subr.bf16.mxu0 %v3913_v21 }
0x11bb   :  { %v1419_v22 = vpop.f32.mrf.mxu0 }
0x11bc   :  { %v1425_v23 = vadd.f32 %v1419_v22, %v1269_v6 }
0x11bd   :  { %v3561_v28 = vpop.f32.mrf.mxu0 }
0x11be   :  { %v1431_v25 = vadd.f32 %v1429_v51, %v1425_v23 }
0x11bf   :  { %v1422_v26 = vpop.f32.mrf.mxu0 }
0x11c0   :  { %v4299_v27 = vadd.f32 %v1431_v25, %v4006_v5  ;;  %v1474_v5 = vld [vmem:[%s4728_s7 + $0x10] sm:$0xff] }
0x11c1   :  { %v3562_v29 = vpop.f32.mrf.mxu0  ;;  %v1478_v47 = vpack.c.bf16 %v1475_v45, %v1474_v5 }
0x11c2   :  { %v1437_v30 = vsel %vm62_vm0, %v4299_v27, 0.0 }
0x11c3   :  { %1438 = vadd.xlane.f32.xlu1 %v1437_v30  ;;  %3564 = vmatpush3.bf16.msra.mxu1 %v1478_v47 }
0x11c4   :  { %3565 = vmatprep.subr.bf16.mxu1 %v3913_v21 }
0x11c7   :  { %1447 = vadd.xlane.f32.xlu1 %v1446_v35  ;;  %3566 = vmatpush3.bf16.msra.mxu1 %v1477_v52 }
0x11c8   :  { %3583 = vmatprep.subr.bf16.mxu1 %v3913_v21 }
0x124c   :  { %v1439_v36 = vpop.xlane.xlu1 %1438 }
0x124d   :  { %v1441_v37 = vmul.f32 0.03125, %v1439_v36 }
0x124f   :  { %v1443_v40 = vsub.f32 %v4299_v27, %v1441_v37 }
0x1250   :  { %v1448_v54 = vpop.xlane.xlu1 %1447 }
0x1251   :  { %v1445_v41 = vmul.f32 %v1443_v40, %v1443_v40  ;;  %v1452_v51 = vmul.f32 0.03125, %v1448_v54 }
0x1253   :  { %v1449_v43 = vsel %vm62_vm0, %v1445_v41, 0.0  ;;  %v1454_v53 = vadd.f32 1e-05, %v1452_v51  ;;  %v1556_v41 = vrot.slane %v4271_v49, %v4049_v38 }
0x1254   :  { %1450 = vadd.xlane.f32.xlu1 %v1449_v43 }
0x1255   :  { %3810 = vrsqrt.f32 %v1454_v53 }
0x1262   :  { %v3811_v58 = vpop.eup %3810 }
0x1263   :  { %v1458_v60 = vmul.f32 %v3811_v58, %v1442_v24 }
0x1265   :  { %v1464_v63 = vmul.f32 %v1463_v61, %v1458_v60 }
0x1267   :  { %v1470_v4 = vadd.f32 %v1469_v2, %v1464_v63  ;;  %v3244_v63 = vld [vmem:[%s4724_s3 + $0x38] sm:$0xff] }
0x12dd   :  { %v1451_v8 = vpop.xlane.xlu1 %1450 }
0x12de   :  { %v1453_v55 = vmul.f32 0.03125, %v1451_v8 }
0x12e0   :  { %v1455_v56 = vadd.f32 1e-05, %v1453_v55 }
0x12e2   :  { %3812 = vrsqrt.f32 %v1455_v56 }
0x12ef   :  { %v3813_v0 = vpop.eup %3812 }
0x12f0   :  { %v1459_v1 = vmul.f32 %v3813_v0, %v1443_v40 }
0x12f2   :  { %v1465_v44 = vmul.f32 %v1463_v61, %v1459_v1  ;;  %v3243_v1 = vld [vmem:[%s4724_s3 + $0x30] sm:$0xff] }
0x12f4   :  { %v1471_v3 = vadd.f32 %v1469_v2, %v1465_v44  ;;  %v1653_v2 = vpack.c.bf16 %v3244_v63, %v3243_v1  ;;  %v3241_v44 = vld [vmem:[%s4724_s3 + $0x20] sm:$0xff] }
0x12f6   :  { %v1476_v6 = vpack.c.bf16 %v1471_v3, %v1470_v4  ;;  %v3242_v4 = vld [vmem:[%s4724_s3 + $0x28] sm:$0xff] }
0x12f7   :  { %v1652_v3 = vpack.c.bf16 %v3242_v4, %v3241_v44 }
0x12f8   :  { %3568 = vmatmul.mubr.msk.bf16.vlgmr.msra.gmra.mxu1 %vm62_vm0, %v1476_v6 }
0x12f9   :  { %3587 = vmatprep.mubr.msk.bf16.mxu1 %vm3914_vm1, %v3913_v21  ;;  %3584 = vmatpush3.bf16.msra.mxu1 %v1653_v2 }
0x12fa   :  { %3585 = vmatprep.subr.bf16.mxu1 %v3913_v21 }
0x12fd   :  { %3586 = vmatpush3.bf16.msra.mxu1 %v1652_v3 }
0x12fe   :  { %3591 = vmatprep.subr.bf16.mxu1 %v3913_v21 }
0x13b8   :  { %v1523_v17 = vpop.f32.mrf.mxu1 }
0x13b9   :  { %v1524_v18 = vadd.f32 %v3236_v16, %v1523_v17 }
0x13ba   :  { %v3569_v19 = vpop.f32.mrf.mxu1 }
0x13bb   :  { %v1532_v20 = vmul.f32 0.70710677, %v1524_v18  ;;  %v1530_v30 = vmul.f32 0.5, %v1524_v18 }
0x13bc   :  { %v1526_v22 = vpop.f32.mrf.mxu1 }
0x13bd   :  { %3814 = verf.f32 %v1532_v20  ;;  %v1527_v23 = vadd.f32 %v3236_v16, %v1526_v22  ;;  %v1643_v16 = vrot.slane %v4395_v42, %v4049_v38  ;;  %v3246_v22 = vld [vmem:[%s4725_s4 + $0x1] ss:$0 sm:$0xff] }
0x13be   :  { %v3570_v28 = vpop.f32.mrf.mxu1 }
0x13bf   :  { %v1533_v24 = vmul.f32 0.70710677, %v1527_v23  ;;  %v1531_v31 = vmul.f32 0.5, %v1527_v23 }
0x13c1   :  { %3816 = verf.f32 %v1533_v24 }
0x13ca   :  { %v3815_v25 = vpop.eup %3814 }
0x13cb   :  { %v1536_v26 = vadd.f32 1.0, %v3815_v25 }
0x13cd   :  { %v1538_v36 = vmul.f32 %v1536_v26, %v1530_v30 }
0x13ce   :  { %v3817_v29 = vpop.eup %3816 }
0x13cf   :  { %v1537_v35 = vadd.f32 1.0, %v3817_v29 }
0x13d1   :  { %v1539_v37 = vmul.f32 %v1537_v35, %v1531_v31 }
0x13d3   :  { %v1548_v40 = vpack.c.bf16 %v1539_v37, %v1538_v36 }
0x13d5   :  { %3580 = vmatmul.mubr.msk.bf16.vlgmr.msra.gmra.mxu0 %vm1557_vm4, %v1548_v40 }
0x13d6   :  { %3599 = vmatprep.mubr.msk.bf16.mxu0 %vm3914_vm1, %v3913_v21 }
0x1495   :  { %v1595_v43 = vpop.f32.mrf.mxu0 }
0x1496   :  { %v1596_v5 = vadd.f32 %v1595_v43, %v1556_v41 }
0x1497   :  { %v3581_v45 = vpop.f32.mrf.mxu0 }
0x1498   :  { %v4365_v47 = vadd.f32 %v1596_v5, %v4280_v59 }
0x1499   :  { %v1598_v48 = vpop.f32.mrf.mxu0 }
0x149a   :  { %v1599_v50 = vadd.f32 %v1598_v48, %v1556_v41  ;;  %v1608_v52 = vsel %vm62_vm0, %v4365_v47, 0.0 }
0x149b   :  { %1609 = vadd.xlane.f32.xlu1 %v1608_v52  ;;  %v3582_v54 = vpop.f32.mrf.mxu0 }
0x149c   :  { %v4370_v51 = vadd.f32 %v1599_v50, %v4299_v27 }
0x149e   :  { %v1611_v53 = vsel %vm62_vm0, %v4370_v51, 0.0 }
0x149f   :  { %1612 = vadd.xlane.f32.xlu0 %v1611_v53 }
0x1524   :  { %v1610_v49 = vpop.xlane.xlu1 %1609 }
0x1525   :  { %v1614_v8 = vmul.f32 0.03125, %v1610_v49 }
0x1527   :  { %v1616_v55 = vsub.f32 %v4365_v47, %v1614_v8 }
0x1528   :  { %v1613_v59 = vpop.xlane.xlu0 %1612 }
0x1529   :  { %v1615_v56 = vmul.f32 0.03125, %v1613_v59  ;;  %v1618_v58 = vmul.f32 %v1616_v55, %v1616_v55 }
0x152b   :  { %v1617_v60 = vsub.f32 %v4370_v51, %v1615_v56  ;;  %v1620_v61 = vsel %vm62_vm0, %v1618_v58, 0.0 }
0x152c   :  { %1621 = vadd.xlane.f32.xlu1 %v1620_v61 }
0x152d   :  { %v1619_v0 = vmul.f32 %v1617_v60, %v1617_v60 }
0x152f   :  { %v1623_v27 = vsel %vm62_vm0, %v1619_v0, 0.0 }
0x1530   :  { %1624 = vadd.xlane.f32.xlu1 %v1623_v27 }
0x15b5   :  { %v1622_v6 = vpop.xlane.xlu1 %1621 }
0x15b6   :  { %v1626_v7 = vmul.f32 0.03125, %v1622_v6 }
0x15b8   :  { %v1628_v39 = vadd.f32 1e-05, %v1626_v7 }
0x15b9   :  { %v1625_v9 = vpop.xlane.xlu1 %1624 }
0x15ba   :  { %3818 = vrsqrt.f32 %v1628_v39  ;;  %v1627_v34 = vmul.f32 0.03125, %v1625_v9 }
0x15bc   :  { %v1629_v10 = vadd.f32 1e-05, %v1627_v34 }
0x15be   :  { %3820 = vrsqrt.f32 %v1629_v10 }
0x15c7   :  { %v3819_v11 = vpop.eup %3818 }
0x15c8   :  { %v1632_v12 = vmul.f32 %v3819_v11, %v1616_v55 }
0x15ca   :  { %v1638_v15 = vmul.f32 %v1637_v13, %v1632_v12 }
0x15cb   :  { %v3821_v14 = vpop.eup %3820 }
0x15cc   :  { %v1633_v46 = vmul.f32 %v3821_v14, %v1617_v60  ;;  %v1644_v18 = vadd.f32 %v1643_v16, %v1638_v15  ;;  %v3248_v14 = vld [vmem:[%s4726_s5 + $0x20] sm:$0xff] }
0x15ce   :  { %v1639_v17 = vmul.f32 %v1637_v13, %v1633_v46  ;;  %v1823_v46 = vpack.c.bf16 %v3248_v14, %v3248_v14 }
0x15d0   :  { %v1645_v19 = vadd.f32 %v1643_v16, %v1639_v17  ;;  %v4454_v15 = vsel %vm233_vm3, %v1823_v46, 0  ;;  %v3249_v16 = vld [vmem:[%s4726_s5 + $0x28] sm:$0xff] }
0x15d1   :  { %v1936_v17 = vpack.c.bf16 %v3249_v16, %v3249_v16 }
0x15d2   :  { %v1651_v20 = vpack.c.bf16 %v1645_v19, %v1644_v18 }
0x15d3   :  { %v4462_v18 = vsel %vm233_vm3, %v1936_v17, 0 }
0x15d4   :  { %3588 = vmatmul.mubr.msk.bf16.vlgmr.msra.gmra.mxu1 %vm62_vm0, %v1651_v20 }
0x15d5   :  { %3593 = vmatprep.mubr.msk.bf16.mxu1 %vm3914_vm1, %v3913_v21 }
0x1694   :  { %v1699_v23 = vpop.f32.mrf.mxu1 }
0x1695   :  { %v1700_v28 = vadd.f32 %v3246_v22, %v1699_v23 }
0x1696   :  { %v3589_v24 = vpop.f32.mrf.mxu1 }
0x1697   :  { %v4407_v25 = vpack.c.bf16 %v1700_v28, %v1700_v28 }
0x1698   :  { %v1702_v26 = vpop.f32.mrf.mxu1 }
0x1699   :  { %v4409_v29 = vadd.f32 %v3246_v22, %v1702_v26  ;;  %1824 = vrot.lane.b32.xlu0 %v4407_v25, %s3917_s24  ;;  %1713 = vrot.lane.b32.xlu1 %v4407_v25, %s3916_s23 }
0x169a   :  { %v3590_v30 = vpop.f32.mrf.mxu1 }
0x169d   :  { %1826 = vrot.lane.b32.xlu1 %v4407_v25, %s3915_s22 }
0x170b   :  { %v1714_v31 = vpop.permute.xlu1 %1713  ;;  %v1825_v40 = vpop.permute.xlu0 %1824 }
0x170c   :  { %v1719_v35 = vsel %vm168_vm2, %v1714_v31, 0 }
0x170d   :  { %3592 = vmatpush3.bf16.xpose.msra.mxu1 %v1719_v35 }
0x170e   :  { %3603 = vmatprep.subr.bf16.mxu1 %v3913_v21 }
0x170f   :  { %v1827_v36 = vpop.permute.xlu1 %1826 }
0x1710   :  { %v1832_v37 = vsel %vm168_vm2, %v1827_v36, 0 }
0x1714   :  { %3594 = vmatmul.mubr.msk.bf16.vlgmr.msra.gmra.mxu1 %vm168_vm2, %v4407_v25 }
0x1715   :  { %3604 = vmatpush3.bf16.xpose.msra.mxu1 %v1832_v37  ;;  %3605 = vmatprep.mubr.msk.bf16.mxu1 %vm3914_vm1, %v3913_v21 }
0x1716   :  { %3615 = vmatprep.subr.bf16.mxu1 %v3913_v21 }
0x171c   :  { %3606 = vmatmul.mubr.msk.bf16.vlgmr.msra.gmra.mxu1 %vm168_vm2, %v1825_v40 }
0x171d   :  { %3617 = vmatprep.mubr.msk.bf16.mxu1 %vm3914_vm1, %v3913_v21  ;;  %3616 = vmatpush3.bf16.msra.mxu1 %v4462_v18 }
0x171e   :  { %3627 = vmatprep.subr.bf16.mxu1 %v3913_v21 }
0x17d4   :  { %v1755_v41 = vpop.f32.mrf.mxu1 }
0x17d5   :  { %v1761_v43 = vmul.f32 0.35355338, %v1755_v41 }
0x17d6   :  { %v3595_v5 = vpop.f32.mrf.mxu1 }
0x17d7   :  { %v1762_v45 = vsel %vm168_vm2, %v1761_v43, -inf }
0x17d8   :  { %1763 = vmax.xlane.f32.xlu1 %v1762_v45  ;;  %v1758_v48 = vpop.f32.mrf.mxu1 }
0x17da   :  { %v3596_v50 = vpop.f32.mrf.mxu1 }
0x17dc   :  { %v1868_v52 = vpop.f32.mrf.mxu1 }
0x17dd   :  { %v1874_v54 = vmul.f32 0.35355338, %v1868_v52 }
0x17de   :  { %v3607_v53 = vpop.f32.mrf.mxu1 }
0x17df   :  { %v1875_v49 = vsel %vm168_vm2, %v1874_v54, -inf }
0x17e0   :  { %1876 = vmax.xlane.f32.xlu0 %v1875_v49  ;;  %v1871_v8 = vpop.f32.mrf.mxu1 }
0x17e2   :  { %v3608_v55 = vpop.f32.mrf.mxu1 }
0x17f6   :  { %1887 = vrot.lane.b32.xlu0 %v4407_v25, %s3921_s28 }
0x1861   :  { %v1764_v59 = vpop.xlane.xlu1 %1763 }
0x1862   :  { %v1765_v56 = vsub.f32 %v1761_v43, %v1764_v59 }
0x1864   :  { %v1766_v58 = vmul.f32 1.442695, %v1765_v56 }
0x1866   :  { %3822 = vpow2.f32 %v1766_v58 }
0x1869   :  { %v1877_v60 = vpop.xlane.xlu0 %1876 }
0x186a   :  { %v1878_v61 = vsub.f32 %v1874_v54, %v1877_v60 }
0x186c   :  { %v1879_v0 = vmul.f32 1.442695, %v1878_v61 }
0x186d   :  { %v1888_v9 = vpop.permute.xlu0 %1887 }
0x186e   :  { %3824 = vpow2.f32 %v1879_v0  ;;  %v1893_v10 = vsel %vm233_vm3, %v1888_v9, 0 }
0x1873   :  { %v3823_v27 = vpop.eup %3822 }
0x1874   :  { %v1768_v1 = vsel %vm168_vm2, %v3823_v27, 0.0 }
0x1875   :  { %1769 = vadd.xlane.f32.xlu1 %v1768_v1 }
0x187b   :  { %v3825_v63 = vpop.eup %3824 }
0x187c   :  { %v1881_v2 = vsel %vm168_vm2, %v3825_v63, 0.0 }
0x187d   :  { %1882 = vadd.xlane.f32.xlu1 %v1881_v2 }
0x188e   :  { %1774 = vrot.lane.b32.xlu1 %v4407_v25, %s3918_s25 }
0x1892   :  { %2031 = vrot.lane.b32.xlu1 %v4407_v25, %s3919_s26 }
0x1896   :  { %2029 = vrot.lane.b32.xlu1 %v4407_v25, %s3920_s27 }
0x18fe   :  { %v1770_v44 = vpop.xlane.xlu1 %1769 }
0x18ff   :  { %3826 = vrcp.f32 %v1770_v44 }
0x1906   :  { %v1883_v4 = vpop.xlane.xlu1 %1882 }
0x1907   :  { %3828 = vrcp.f32 %v1883_v4 }
0x190a   :  { %v1775_v3 = vpop.permute.xlu1 %1774 }
0x190b   :  { %v1780_v6 = vsel %vm233_vm3, %v1775_v3, 0 }
0x190c   :  { %v3827_v7 = vpop.eup %3826  ;;  %3598 = vmatpush3.bf16.msra.mxu0 %v1780_v6 }
0x190d   :  { %3609 = vmatprep.subr.bf16.mxu0 %v3913_v21  ;;  %v1772_v39 = vmul.f32 %v3827_v7, %v3823_v27 }
0x190e   :  { %v2032_v24 = vpop.permute.xlu1 %2031 }
0x190f   :  { %v1773_v34 = vpack.c.bf16 %v1772_v39, %v1772_v39  ;;  %v2037_v35 = vsel %vm168_vm2, %v2032_v24, 0  ;;  %v4511_v24 = vpack.c.bf16 %v4409_v29, %v4409_v29 }
0x1911   :  { %3600 = vmatmul.mubr.msk.bf16.vlgmr.msra.gmra.mxu0 %vm168_vm2, %v1773_v34  ;;  %v3250_v34 = vld [vmem:[%s4726_s5 + $0x30] sm:$0xff] }
0x1912   :  { %3610 = vmatpush3.bf16.msra.mxu0 %v1893_v10  ;;  %3611 = vmatprep.mubr.msk.bf16.mxu0 %vm3914_vm1, %v3913_v21  ;;  %v2030_v40 = vpop.permute.xlu1 %2029  ;;  %v2141_v10 = vpack.c.bf16 %v3250_v34, %v3250_v34 }
0x1913   :  { %3621 = vmatprep.subr.bf16.mxu0 %v3913_v21 }
0x1914   :  { %v3829_v11 = vpop.eup %3828 }
0x1915   :  { %v1885_v12 = vmul.f32 %v3829_v11, %v3825_v63  ;;  %v4501_v11 = vsel %vm233_vm3, %v2141_v10, 0 }
0x1917   :  { %v1886_v13 = vpack.c.bf16 %v1885_v12, %v1885_v12 }
0x1919   :  { %3612 = vmatmul.mubr.msk.bf16.vlgmr.msra.gmra.mxu0 %vm168_vm2, %v1886_v13 }
0x191a   :  { %3623 = vmatprep.mubr.msk.bf16.mxu0 %vm3914_vm1, %v3913_v21  ;;  %3622 = vmatpush3.bf16.msra.mxu0 %v4454_v15 }
0x191b   :  { %3633 = vmatprep.subr.bf16.mxu0 %v3913_v21 }
0x19d1   :  { %v1816_v19 = vpop.f32.mrf.mxu0 }
0x19d2   :  { %v1822_v20 = vpack.c.bf16 %v1816_v19, %v1816_v19 }
0x19d3   :  { %v3601_v22 = vpop.f32.mrf.mxu0 }
0x19d4   :  { %3624 = vmatmul.mubr.msk.bf16.vlgmr.msra.gmra.mxu0 %vm168_vm2, %v1822_v20 }
0x19d5   :  { %v1819_v23 = vpop.f32.mrf.mxu0  ;;  %3635 = vmatprep.mubr.msk.bf16.mxu0 %vm3914_vm1, %v3913_v21 }
0x19d7   :  { %v3602_v28 = vpop.f32.mrf.mxu0 }
0x19d9   :  { %v1929_v26 = vpop.f32.mrf.mxu0 }
0x19da   :  { %v1935_v30 = vpack.c.bf16 %v1929_v26, %v1929_v26 }
0x19db   :  { %v3613_v31 = vpop.f32.mrf.mxu0 }
0x19dc   :  { %3618 = vmatmul.mubr.msk.bf16.vlgmr.msra.gmra.mxu1 %vm168_vm2, %v1935_v30 }
0x19dd   :  { %3628 = vmatpush3.bf16.xpose.msra.mxu1 %v2037_v35  ;;  %v1932_v36 = vpop.f32.mrf.mxu0  ;;  %3629 = vmatprep.mubr.msk.bf16.mxu1 %vm3914_vm1, %v3913_v21 }
0x19de   :  { %3639 = vmatprep.subr.bf16.mxu1 %v3913_v21 }
0x19df   :  { %v3614_v37 = vpop.f32.mrf.mxu0 }
0x19e4   :  { %3630 = vmatmul.mubr.msk.bf16.vlgmr.msra.gmra.mxu1 %vm168_vm2, %v2030_v40 }
0x19e5   :  { %3641 = vmatprep.mubr.msk.bf16.mxu1 %vm3914_vm1, %v3913_v21  ;;  %3640 = vmatpush3.bf16.msra.mxu1 %v4501_v11 }
0x19e6   :  { %3651 = vmatprep.subr.bf16.mxu1 %v3913_v21 }
0x1a94   :  { %v2023_v41 = vpop.f32.mrf.mxu0 }
0x1a96   :  { %v3625_v43 = vpop.f32.mrf.mxu0 }
0x1a98   :  { %v2026_v5 = vpop.f32.mrf.mxu0 }
0x1a9a   :  { %v3626_v45 = vpop.f32.mrf.mxu0 }
0x1a9c   :  { %v1977_v48 = vpop.f32.mrf.mxu1 }
0x1a9d   :  { %v4477_v50 = vadd.f32 %v2023_v41, %v1977_v48 }
0x1a9e   :  { %v3619_v52 = vpop.f32.mrf.mxu1 }
0x1aa0   :  { %v1980_v54 = vpop.f32.mrf.mxu1 }
0x1aa2   :  { %v3620_v53 = vpop.f32.mrf.mxu1 }
0x1aa4   :  { %v2073_v49 = vpop.f32.mrf.mxu1 }
0x1aa5   :  { %v2079_v8 = vmul.f32 0.35355338, %v2073_v49 }
0x1aa6   :  { %v3631_v55 = vpop.f32.mrf.mxu1 }
0x1aa7   :  { %v2080_v59 = vsel %vm168_vm2, %v2079_v8, -inf }
0x1aa8   :  { %2081 = vmax.xlane.f32.xlu1 %v2080_v59  ;;  %v2076_v56 = vpop.f32.mrf.mxu1  ;;  %v3251_v59 = vld [vmem:[%s4726_s5 + $0x38] sm:$0xff] }
0x1aa9   :  { %v2301_v56 = vpack.c.bf16 %v3251_v59, %v3251_v59 }
0x1aaa   :  { %v3632_v58 = vpop.f32.mrf.mxu1 }
0x1aab   :  { %v4547_v58 = vsel %vm233_vm3, %v2301_v56, 0 }
0x1ab9   :  { %2092 = vrot.lane.b32.xlu1 %v4407_v25, %s3924_s13 }
0x1abd   :  { %2189 = vrot.lane.b32.xlu1 %v4407_v25, %s3923_s8 }
0x1b31   :  { %v2082_v60 = vpop.xlane.xlu1 %2081 }
0x1b32   :  { %v2083_v61 = vsub.f32 %v2079_v8, %v2082_v60 }
0x1b34   :  { %v2084_v0 = vmul.f32 1.442695, %v2083_v61 }
0x1b35   :  { %v2093_v27 = vpop.permute.xlu1 %2092 }
0x1b36   :  { %3830 = vpow2.f32 %v2084_v0  ;;  %v2098_v1 = vsel %vm233_vm3, %v2093_v27, 0 }
0x1b37   :  { %3634 = vmatpush3.bf16.msra.mxu0 %v2098_v1 }
0x1b38   :  { %3645 = vmatprep.subr.bf16.mxu0 %v3913_v21 }
0x1b39   :  { %v2190_v9 = vpop.permute.xlu1 %2189 }
0x1b43   :  { %v3831_v63 = vpop.eup %3830 }
0x1b44   :  { %v2086_v2 = vsel %vm168_vm2, %v3831_v63, 0.0 }
0x1b45   :  { %2087 = vadd.xlane.f32.xlu0 %v2086_v2 }
0x1b5b   :  { %2191 = vrot.lane.b32.xlu0 %v4407_v25, %s3922_s1 }
0x1bce   :  { %v2088_v44 = vpop.xlane.xlu0 %2087 }
0x1bcf   :  { %3832 = vrcp.f32 %v2088_v44 }
0x1bd2   :  { %v2192_v6 = vpop.permute.xlu0 %2191 }
0x1bd3   :  { %v2197_v39 = vsel %vm168_vm2, %v2192_v6, 0 }
0x1bdc   :  { %v3833_v4 = vpop.eup %3832 }
0x1bdd   :  { %v2090_v3 = vmul.f32 %v3833_v4, %v3831_v63 }
0x1bdf   :  { %v2091_v7 = vpack.c.bf16 %v2090_v3, %v2090_v3 }
0x1be1   :  { %3636 = vmatmul.mubr.msk.bf16.vlgmr.msra.gmra.mxu0 %vm168_vm2, %v2091_v7 }
0x1be2   :  { %3646 = vmatpush3.bf16.xpose.msra.mxu0 %v2197_v39  ;;  %3647 = vmatprep.mubr.msk.bf16.mxu0 %vm3914_vm1, %v3913_v21 }
0x1be3   :  { %3657 = vmatprep.subr.bf16.mxu0 %v3913_v21 }
0x1be9   :  { %3648 = vmatmul.mubr.msk.bf16.vlgmr.msra.gmra.mxu0 %vm168_vm2, %v2190_v9 }
0x1bea   :  { %3659 = vmatprep.mubr.msk.bf16.mxu0 %vm3914_vm1, %v3913_v21  ;;  %3658 = vmatpush3.bf16.msra.mxu0 %v4547_v58 }
0x1beb   :  { %3669 = vmatprep.subr.bf16.mxu0 %v3913_v21 }
0x1ca1   :  { %v2134_v12 = vpop.f32.mrf.mxu0 }
0x1ca2   :  { %v2140_v13 = vpack.c.bf16 %v2134_v12, %v2134_v12 }
0x1ca3   :  { %v3637_v14 = vpop.f32.mrf.mxu0 }
0x1ca4   :  { %3642 = vmatmul.mubr.msk.bf16.vlgmr.msra.gmra.mxu1 %vm168_vm2, %v2140_v13 }
0x1ca5   :  { %v2137_v46 = vpop.f32.mrf.mxu0  ;;  %3653 = vmatprep.mubr.msk.bf16.mxu1 %vm3914_vm1, %v3913_v21 }
0x1ca7   :  { %v3638_v16 = vpop.f32.mrf.mxu0 }
0x1ca9   :  { %v2233_v17 = vpop.f32.mrf.mxu0 }
0x1caa   :  { %v2239_v19 = vmul.f32 0.35355338, %v2233_v17 }
0x1cab   :  { %v3649_v20 = vpop.f32.mrf.mxu0 }
0x1cac   :  { %v2240_v22 = vsel %vm168_vm2, %v2239_v19, -inf }
0x1cad   :  { %2241 = vmax.xlane.f32.xlu1 %v2240_v22  ;;  %v2236_v23 = vpop.f32.mrf.mxu0 }
0x1caf   :  { %v3650_v28 = vpop.f32.mrf.mxu0 }
0x1cbe   :  { %2351 = vrot.lane.b32.xlu1 %v4511_v24, %s3916_s23 }
0x1cc2   :  { %2463 = vrot.lane.b32.xlu1 %v4511_v24, %s3915_s22 }
0x1d36   :  { %v2242_v26 = vpop.xlane.xlu1 %2241 }
0x1d37   :  { %v2243_v30 = vsub.f32 %v2239_v19, %v2242_v26 }
0x1d39   :  { %v2244_v31 = vmul.f32 1.442695, %v2243_v30 }
0x1d3a   :  { %v2352_v54 = vpop.permute.xlu1 %2351 }
0x1d3b   :  { %3834 = vpow2.f32 %v2244_v31  ;;  %v2357_v49 = vsel %vm168_vm2, %v2352_v54, 0 }
0x1d48   :  { %v3835_v35 = vpop.eup %3834 }
0x1d49   :  { %v2246_v36 = vsel %vm168_vm2, %v3835_v35, 0.0 }
0x1d4a   :  { %2247 = vadd.xlane.f32.xlu0 %v2246_v36 }
0x1d60   :  { %2252 = vrot.lane.b32.xlu0 %v4407_v25, %s3925_s16 }
0x1d64   :  { %2461 = vrot.lane.b32.xlu0 %v4511_v24, %s3917_s24  ;;  %v2182_v29 = vpop.f32.mrf.mxu1  ;;  %s3926_s24 = smov [#allocation5]  }
0x1d65   :  { %v4523_v37 = vadd.f32 %v2182_v29, %v4477_v50  ;;  %v2464_v50 = vpop.permute.xlu1 %2463 }
0x1d66   :  { %v3643_v40 = vpop.f32.mrf.mxu1  ;;  %v2469_v8 = vsel %vm168_vm2, %v2464_v50, 0 }
0x1d68   :  { %v2185_v41 = vpop.f32.mrf.mxu1 }
0x1d6a   :  { %v3644_v43 = vpop.f32.mrf.mxu1 }
0x1dd3   :  { %v2248_v5 = vpop.xlane.xlu0 %2247 }
0x1dd4   :  { %3836 = vrcp.f32 %v2248_v5 }
0x1dd7   :  { %v2253_v45 = vpop.permute.xlu0 %2252 }
0x1dd8   :  { %v2258_v48 = vsel %vm233_vm3, %v2253_v45, 0 }
0x1dd9   :  { %3652 = vmatpush3.bf16.msra.mxu1 %v2258_v48 }
0x1dda   :  { %3663 = vmatprep.subr.bf16.mxu1 %v3913_v21 }
0x1ddb   :  { %v2462_v55 = vpop.permute.xlu0 %2461 }
0x1de1   :  { %v3837_v52 = vpop.eup %3836 }
0x1de2   :  { %v2250_v25 = vmul.f32 %v3837_v52, %v3835_v35 }
0x1de4   :  { %v2251_v53 = vpack.c.bf16 %v2250_v25, %v2250_v25 }
0x1de6   :  { %3654 = vmatmul.mubr.msk.bf16.vlgmr.msra.gmra.mxu1 %vm168_vm2, %v2251_v53 }
0x1de7   :  { %3664 = vmatpush3.bf16.xpose.msra.mxu1 %v2357_v49  ;;  %3665 = vmatprep.mubr.msk.bf16.mxu1 %vm3914_vm1, %v3913_v21 }
0x1de8   :  { %3675 = vmatprep.subr.bf16.mxu1 %v3913_v21 }
0x1dee   :  { %3666 = vmatmul.mubr.msk.bf16.vlgmr.msra.gmra.mxu1 %vm168_vm2, %v4511_v24 }
0x1def   :  { %3676 = vmatpush3.bf16.xpose.msra.mxu1 %v2469_v8  ;;  %3677 = vmatprep.mubr.msk.bf16.mxu1 %vm3914_vm1, %v3913_v21 }
0x1df0   :  { %3687 = vmatprep.subr.bf16.mxu1 %v3913_v21 }
0x1df6   :  { %3678 = vmatmul.mubr.msk.bf16.vlgmr.msra.gmra.mxu1 %vm168_vm2, %v2462_v55 }
0x1df7   :  { %3688 = vmatpush3.bf16.msra.mxu1 %v4462_v18  ;;  %3689 = vmatprep.mubr.msk.bf16.mxu1 %vm3914_vm1, %v3913_v21 }
0x1df8   :  { %3699 = vmatprep.subr.bf16.mxu1 %v3913_v21 }
0x1ea6   :  { %v2294_v60 = vpop.f32.mrf.mxu1 }
0x1ea7   :  { %v2300_v61 = vpack.c.bf16 %v2294_v60, %v2294_v60 }
0x1ea8   :  { %v3655_v18 = vpop.f32.mrf.mxu1 }
0x1ea9   :  { %3660 = vmatmul.mubr.msk.bf16.vlgmr.msra.gmra.mxu0 %vm168_vm2, %v2300_v61 }
0x1eaa   :  { %v2297_v0 = vpop.f32.mrf.mxu1  ;;  %3671 = vmatprep.mubr.msk.bf16.mxu0 %vm3914_vm1, %v3913_v21 }
0x1eac   :  { %v3656_v27 = vpop.f32.mrf.mxu1 }
0x1eae   :  { %v2393_v1 = vpop.f32.mrf.mxu1 }
0x1eaf   :  { %v2399_v63 = vmul.f32 0.35355338, %v2393_v1 }
0x1eb0   :  { %v3667_v2 = vpop.f32.mrf.mxu1 }
0x1eb1   :  { %v2400_v44 = vsel %vm168_vm2, %v2399_v63, -inf }
0x1eb2   :  { %2401 = vmax.xlane.f32.xlu1 %v2400_v44  ;;  %v2396_v4 = vpop.f32.mrf.mxu1 }
0x1eb4   :  { %v3668_v3 = vpop.f32.mrf.mxu1 }
0x1eb6   :  { %v2505_v6 = vpop.f32.mrf.mxu1 }
0x1eb7   :  { %v2511_v7 = vmul.f32 0.35355338, %v2505_v6 }
0x1eb8   :  { %v3679_v39 = vpop.f32.mrf.mxu1 }
0x1eb9   :  { %v2512_v9 = vsel %vm168_vm2, %v2511_v7, -inf }
0x1eba   :  { %2513 = vmax.xlane.f32.xlu0 %v2512_v9  ;;  %v2508_v34 = vpop.f32.mrf.mxu1 }
0x1ebc   :  { %v3680_v10 = vpop.f32.mrf.mxu1 }
0x1f3b   :  { %v2402_v12 = vpop.xlane.xlu1 %2401 }
0x1f3c   :  { %v2403_v13 = vsub.f32 %v2399_v63, %v2402_v12 }
0x1f3e   :  { %v2404_v14 = vmul.f32 1.442695, %v2403_v13 }
0x1f40   :  { %3838 = vpow2.f32 %v2404_v14 }
0x1f43   :  { %v2514_v46 = vpop.xlane.xlu0 %2513 }
0x1f44   :  { %v2515_v16 = vsub.f32 %v2511_v7, %v2514_v46 }
0x1f46   :  { %v2516_v17 = vmul.f32 1.442695, %v2515_v16 }
0x1f48   :  { %3840 = vpow2.f32 %v2516_v17 }
0x1f4d   :  { %v3839_v19 = vpop.eup %3838 }
0x1f4e   :  { %v2406_v20 = vsel %vm168_vm2, %v3839_v19, 0.0 }
0x1f4f   :  { %2407 = vadd.xlane.f32.xlu0 %v2406_v20 }
0x1f55   :  { %v3841_v22 = vpop.eup %3840 }
0x1f56   :  { %v2518_v23 = vsel %vm168_vm2, %v3841_v22, 0.0 }
0x1f57   :  { %2519 = vadd.xlane.f32.xlu1 %v2518_v23 }
0x1f65   :  { %2412 = vrot.lane.b32.xlu0 %v4511_v24, %s3918_s25 }
0x1f68   :  { %2524 = vrot.lane.b32.xlu1 %v4511_v24, %s3921_s28 }
0x1f69   :  { %v2342_v28 = vpop.f32.mrf.mxu0  ;;  %2659 = vrot.lane.b32.xlu0 %v4511_v24, %s3920_s27 }
0x1f6a   :  { %v4565_v26 = vadd.f32 %v2342_v28, %v4523_v37 }
0x1f6b   :  { %v3661_v30 = vpop.f32.mrf.mxu0 }
0x1f6c   :  { %2661 = vrot.lane.b32.xlu1 %v4511_v24, %s3919_s26 }
0x1f6d   :  { %v2345_v31 = vpop.f32.mrf.mxu0 }
0x1f6f   :  { %v3662_v35 = vpop.f32.mrf.mxu0 }
0x1fd8   :  { %v2408_v36 = vpop.xlane.xlu0 %2407 }
0x1fd9   :  { %3842 = vrcp.f32 %v2408_v36 }
0x1fdc   :  { %v2413_v29 = vpop.permute.xlu0 %2412 }
0x1fdd   :  { %v2418_v40 = vsel %vm233_vm3, %v2413_v29, 0 }
0x1fde   :  { %3670 = vmatpush3.bf16.msra.mxu0 %v2418_v40 }
0x1fdf   :  { %3681 = vmatprep.subr.bf16.mxu0 %v3913_v21 }
0x1fe0   :  { %v2520_v41 = vpop.xlane.xlu1 %2519  ;;  %v2660_v27 = vpop.permute.xlu0 %2659 }
0x1fe1   :  { %3844 = vrcp.f32 %v2520_v41 }
0x1fe4   :  { %v2525_v37 = vpop.permute.xlu1 %2524 }
0x1fe5   :  { %v2530_v48 = vsel %vm233_vm3, %v2525_v37, 0 }
0x1fe6   :  { %v3843_v43 = vpop.eup %3842 }
0x1fe7   :  { %v2410_v5 = vmul.f32 %v3843_v43, %v3839_v19 }
0x1fe8   :  { %v2662_v59 = vpop.permute.xlu1 %2661 }
0x1fe9   :  { %v2411_v45 = vpack.c.bf16 %v2410_v5, %v2410_v5 }
0x1feb   :  { %3672 = vmatmul.mubr.msk.bf16.vlgmr.msra.gmra.mxu0 %vm168_vm2, %v2411_v45 }
0x1fec   :  { %3682 = vmatpush3.bf16.msra.mxu0 %v2530_v48  ;;  %3683 = vmatprep.mubr.msk.bf16.mxu0 %vm3914_vm1, %v3913_v21 }
0x1fed   :  { %3693 = vmatprep.subr.bf16.mxu0 %v3913_v21 }
0x1fee   :  { %v3845_v52 = vpop.eup %3844 }
0x1fef   :  { %v2522_v25 = vmul.f32 %v3845_v52, %v3841_v22 }
0x1ff1   :  { %v2523_v54 = vpack.c.bf16 %v2522_v25, %v2522_v25 }
0x1ff3   :  { %3684 = vmatmul.mubr.msk.bf16.vlgmr.msra.gmra.mxu0 %vm168_vm2, %v2523_v54 }
0x1ff4   :  { %3694 = vmatpush3.bf16.msra.mxu0 %v4454_v15  ;;  %3695 = vmatprep.mubr.msk.bf16.mxu0 %vm3914_vm1, %v3913_v21  ;;  %v2667_v15 = vsel %vm168_vm2, %v2662_v59, 0  ;;  %v4627_v59 = vld [vmem:[%s4727_s6 + $0x2] sm:$0x3]  ;;  %s3198_s6 = sshll.u32 %s3926_s24, 4  ;;  %s3199_s6 = int_to_ptr.vmem [resolvable:$true] %s3198_s6 }
0x1ff5   :  { %3705 = vmatprep.subr.bf16.mxu0 %v3913_v21  ;;  %s3886_s25 = scalar_lea.vmem %s3199_s6, 256  ;;  %p3891_p6 = scmp.lt.s32.totalorder %s3199_s6, %s3199_s6 }
0x1ff6   :  { %p3887_p5 = scmp.ne.s32.totalorder %s3199_s6, %s3886_s25  ;;  %p3892_p7 = scmp.lt.s32.totalorder %s3886_s25, %s3886_s25 }
0x1ff8   :  { %p3893_p8 = por %p3892_p7, %p3891_p6 }
0x1ffa   :  { %p3894_p9 = pnand %p3893_p8, %p3887_p5 }
0x20ab   :  { %v2454_v53 = vpop.f32.mrf.mxu0 }
0x20ac   :  { %v2460_v49 = vpack.c.bf16 %v2454_v53, %v2454_v53 }
0x20ad   :  { %v3673_v50 = vpop.f32.mrf.mxu0 }
0x20ae   :  { %3696 = vmatmul.mubr.msk.bf16.vlgmr.msra.gmra.mxu0 %vm168_vm2, %v2460_v49 }
0x20af   :  { %v2457_v8 = vpop.f32.mrf.mxu0  ;;  %3707 = vmatprep.mubr.msk.bf16.mxu0 %vm3914_vm1, %v3913_v21 }
0x20b1   :  { %v3674_v55 = vpop.f32.mrf.mxu0 }
0x20b3   :  { %v2566_v56 = vpop.f32.mrf.mxu0 }
0x20b4   :  { %v2572_v60 = vpack.c.bf16 %v2566_v56, %v2566_v56  ;;  %v2974_v56 = vrot.slane %v4627_v59, %v4039_v33 }
0x20b5   :  { %v3685_v61 = vpop.f32.mrf.mxu0 }
0x20b6   :  { %3690 = vmatmul.mubr.msk.bf16.vlgmr.msra.gmra.mxu1 %vm168_vm2, %v2572_v60 }
0x20b7   :  { %3700 = vmatpush3.bf16.xpose.msra.mxu1 %v2667_v15  ;;  %v2569_v18 = vpop.f32.mrf.mxu0  ;;  %3701 = vmatprep.mubr.msk.bf16.mxu1 %vm3914_vm1, %v3913_v21 }
0x20b8   :  { %3711 = vmatprep.subr.bf16.mxu1 %v3913_v21 }
0x20b9   :  { %v3686_v0 = vpop.f32.mrf.mxu0 }
0x20be   :  { %3702 = vmatmul.mubr.msk.bf16.vlgmr.msra.gmra.mxu1 %vm168_vm2, %v2660_v27 }
0x20bf   :  { %3712 = vmatpush3.bf16.msra.mxu1 %v4501_v11  ;;  %3713 = vmatprep.mubr.msk.bf16.mxu1 %vm3914_vm1, %v3913_v21 }
0x20c0   :  { %3723 = vmatprep.subr.bf16.mxu1 %v3913_v21 }
0x216e   :  { %v2653_v1 = vpop.f32.mrf.mxu0 }
0x2170   :  { %v3697_v63 = vpop.f32.mrf.mxu0 }
0x2172   :  { %v2656_v2 = vpop.f32.mrf.mxu0 }
0x2174   :  { %v3698_v44 = vpop.f32.mrf.mxu0 }
0x2176   :  { %v2610_v4 = vpop.f32.mrf.mxu1 }
0x2177   :  { %v4594_v3 = vadd.f32 %v2653_v1, %v2610_v4 }
0x2178   :  { %v3691_v6 = vpop.f32.mrf.mxu1 }
0x217a   :  { %v2613_v7 = vpop.f32.mrf.mxu1 }
0x217c   :  { %v3692_v39 = vpop.f32.mrf.mxu1 }
0x217e   :  { %v2703_v9 = vpop.f32.mrf.mxu1 }
0x217f   :  { %v2709_v34 = vmul.f32 0.35355338, %v2703_v9 }
0x2180   :  { %v3703_v10 = vpop.f32.mrf.mxu1 }
0x2181   :  { %v2710_v11 = vsel %vm168_vm2, %v2709_v34, -inf }
0x2182   :  { %2711 = vmax.xlane.f32.xlu1 %v2710_v11  ;;  %v2706_v12 = vpop.f32.mrf.mxu1 }
0x2184   :  { %v3704_v13 = vpop.f32.mrf.mxu1 }
0x2193   :  { %2817 = vrot.lane.b32.xlu1 %v4511_v24, %s3922_s1 }
0x2197   :  { %2815 = vrot.lane.b32.xlu1 %v4511_v24, %s3923_s8 }
0x220b   :  { %v2712_v14 = vpop.xlane.xlu1 %2711 }
0x220c   :  { %v2713_v46 = vsub.f32 %v2709_v34, %v2712_v14 }
0x220e   :  { %v2714_v16 = vmul.f32 1.442695, %v2713_v46 }
0x220f   :  { %v2818_v31 = vpop.permute.xlu1 %2817 }
0x2210   :  { %3846 = vpow2.f32 %v2714_v16  ;;  %v2823_v36 = vsel %vm168_vm2, %v2818_v31, 0 }
0x2213   :  { %v2816_v29 = vpop.permute.xlu1 %2815 }
0x221d   :  { %v3847_v17 = vpop.eup %3846 }
0x221e   :  { %v2716_v19 = vsel %vm168_vm2, %v3847_v17, 0.0 }
0x221f   :  { %2717 = vadd.xlane.f32.xlu0 %v2716_v19 }
0x2235   :  { %2722 = vrot.lane.b32.xlu0 %v4511_v24, %s3924_s13 }
0x22a8   :  { %v2718_v20 = vpop.xlane.xlu0 %2717 }
0x22a9   :  { %3848 = vrcp.f32 %v2718_v20 }
0x22ac   :  { %v2723_v22 = vpop.permute.xlu0 %2722 }
0x22ad   :  { %v2728_v23 = vsel %vm233_vm3, %v2723_v22, 0 }
0x22ae   :  { %3706 = vmatpush3.bf16.msra.mxu0 %v2728_v23 }
0x22af   :  { %3717 = vmatprep.subr.bf16.mxu0 %v3913_v21 }
0x22b6   :  { %v3849_v28 = vpop.eup %3848 }
0x22b7   :  { %v2720_v30 = vmul.f32 %v3849_v28, %v3847_v17 }
0x22b9   :  { %v2721_v35 = vpack.c.bf16 %v2720_v30, %v2720_v30 }
0x22bb   :  { %3708 = vmatmul.mubr.msk.bf16.vlgmr.msra.gmra.mxu0 %vm168_vm2, %v2721_v35 }
0x22bc   :  { %3718 = vmatpush3.bf16.xpose.msra.mxu0 %v2823_v36  ;;  %3719 = vmatprep.mubr.msk.bf16.mxu0 %vm3914_vm1, %v3913_v21  ;;  %v3279_v36 = vld [vmem:[%s4728_s7 + $0x38] sm:$0xff] }
0x22bd   :  { %3729 = vmatprep.subr.bf16.mxu0 %v3913_v21 }
0x22c3   :  { %3720 = vmatmul.mubr.msk.bf16.vlgmr.msra.gmra.mxu0 %vm168_vm2, %v2816_v29 }
0x22c4   :  { %3730 = vmatpush3.bf16.msra.mxu0 %v4547_v58  ;;  %3731 = vmatprep.mubr.msk.bf16.mxu0 %vm3914_vm1, %v3913_v21 }
0x22c5   :  { %3743 = vmatprep.subr.bf16.mxu0 %v3913_v21 }
0x237b   :  { %v2764_v40 = vpop.f32.mrf.mxu0 }
0x237c   :  { %v2770_v41 = vpack.c.bf16 %v2764_v40, %v2764_v40  ;;  %v3276_v40 = vld [vmem:[%s4728_s7 + $0x20] sm:$0xff] }
0x237d   :  { %v3709_v43 = vpop.f32.mrf.mxu0 }
0x237e   :  { %3714 = vmatmul.mubr.msk.bf16.vlgmr.msra.gmra.mxu1 %vm168_vm2, %v2770_v41  ;;  %v3277_v41 = vld [vmem:[%s4728_s7 + $0x28] sm:$0xff] }
0x237f   :  { %v2767_v5 = vpop.f32.mrf.mxu0  ;;  %3725 = vmatprep.mubr.msk.bf16.mxu1 %vm3914_vm1, %v3913_v21  ;;  %v3023_v43 = vpack.c.bf16 %v3277_v41, %v3276_v40 }
0x2381   :  { %v3710_v37 = vpop.f32.mrf.mxu0 }
0x2383   :  { %v2859_v45 = vpop.f32.mrf.mxu0 }
0x2384   :  { %v2865_v48 = vmul.f32 0.35355338, %v2859_v45 }
0x2385   :  { %v3721_v52 = vpop.f32.mrf.mxu0 }
0x2386   :  { %v2866_v58 = vsel %vm168_vm2, %v2865_v48, -inf }
0x2387   :  { %2867 = vmax.xlane.f32.xlu0 %v2866_v58  ;;  %v2862_v25 = vpop.f32.mrf.mxu0 }
0x2389   :  { %v3722_v54 = vpop.f32.mrf.mxu0 }
0x239d   :  { %2878 = vrot.lane.b32.xlu0 %v4511_v24, %s3925_s16  ;;  %v2975_v24 = vadd.f32 %v2974_v56, %v4565_v26 }
0x239f   :  { %v4633_v61 = vadd.f32 %v2975_v24, %v4365_v47 }
0x23a1   :  { %v2979_v18 = vsel %vm62_vm0, %v4633_v61, 0.0 }
0x2410   :  { %v2868_v53 = vpop.xlane.xlu0 %2867 }
0x2411   :  { %v2869_v49 = vsub.f32 %v2865_v48, %v2868_v53  ;;  %v3008_v53 = vrot.slane %v4395_v42, %v1462_v57  ;;  %v3289_v57 = vld [vmem:[%s4730_s9 + $0x78] sm:$0xff] }
0x2413   :  { %v2870_v50 = vmul.f32 1.442695, %v2869_v49 }
0x2414   :  { %v2879_v8 = vpop.permute.xlu0 %2878 }
0x2415   :  { %3850 = vpow2.f32 %v2870_v50  ;;  %v2884_v55 = vsel %vm233_vm3, %v2879_v8, 0 }
0x2416   :  { %3724 = vmatpush3.bf16.msra.mxu1 %v2884_v55  ;;  %v3014_v55 = vrot.slane %v4395_v42, %v1468_v62  ;;  %v3287_v62 = vld [vmem:[%s4730_s9 + $0x68] sm:$0xff] }
0x2417   :  { %3735 = vmatprep.subr.bf16.mxu1 %v3913_v21  ;;  %v3099_v42 = vpack.c.bf16 %v3287_v62, %v3286_v32 }
0x2422   :  { %v3851_v60 = vpop.eup %3850 }
0x2423   :  { %v2872_v15 = vsel %vm168_vm2, %v3851_v60, 0.0 }
0x2424   :  { %2873 = vadd.xlane.f32.xlu1 %v2872_v15 }
0x2428   :  { %2980 = vadd.xlane.f32.xlu1 %v2979_v18  ;;  %v3288_v18 = vld [vmem:[%s4730_s9 + $0x70] sm:$0xff] }
0x243e   :  { %v2808_v0 = vpop.f32.mrf.mxu1 }
0x243f   :  { %v2814_v27 = vadd.f32 %v2808_v0, %v4594_v3  ;;  %v3100_v0 = vpack.c.bf16 %v3289_v57, %v3288_v18 }
0x2440   :  { %v3715_v1 = vpop.f32.mrf.mxu1 }
0x2441   :  { %v3285_v1 = vld [vmem:[%s4730_s9 + $0x58] sm:$0xff] }
0x2442   :  { %v2811_v63 = vpop.f32.mrf.mxu1 }
0x2444   :  { %v3716_v2 = vpop.f32.mrf.mxu1 }
0x2445   :  { %v3282_v2 = vld [vmem:[%s4730_s9 + $0x40] sm:$0xff] }
0x24ad   :  { %v2874_v33 = vpop.xlane.xlu1 %2873 }
0x24ae   :  { %3852 = vrcp.f32 %v2874_v33  ;;  %v3283_v33 = vld [vmem:[%s4730_s9 + $0x48] sm:$0xff] }
0x24b1   :  { %v2981_v9 = vpop.xlane.xlu1 %2980 }
0x24b2   :  { %v2985_v34 = vmul.f32 0.03125, %v2981_v9 }
0x24b4   :  { %v2987_v13 = vsub.f32 %v4633_v61, %v2985_v34 }
0x24b6   :  { %v2989_v20 = vmul.f32 %v2987_v13, %v2987_v13 }
0x24b8   :  { %v2991_v22 = vsel %vm62_vm0, %v2989_v20, 0.0  ;;  %v3104_v20 = vrot.slane %v4627_v59, %v4049_v38 }
0x24bb   :  { %v3853_v26 = vpop.eup %3852 }
0x24bc   :  { %v2876_v44 = vmul.f32 %v3853_v26, %v3851_v60  ;;  %v3097_v26 = vpack.c.bf16 %v3283_v33, %v3282_v2 }
0x24be   :  { %v2877_v4 = vpack.c.bf16 %v2876_v44, %v2876_v44  ;;  %v3280_v44 = vld [vmem:[#allocation2 + $0x1] ss:$0 sm:$0xff] }
0x24c0   :  { %3726 = vmatmul.mubr.msk.bf16.vlgmr.msra.gmra.mxu1 %vm168_vm2, %v2877_v4 }
0x24c1   :  { %3739 = vmatprep.mubr.msk.bf16.mxu1 %vm3914_vm1, %v3913_v21 }
0x2580   :  { %v2920_v47 = vpop.f32.mrf.mxu1 }
0x2581   :  { %v2926_v6 = vpack.c.bf16 %v2920_v47, %v2920_v47 }
0x2582   :  { %v3727_v7 = vpop.f32.mrf.mxu1 }
0x2583   :  { %3732 = vmatmul.mubr.msk.bf16.vlgmr.msra.gmra.mxu0 %vm168_vm2, %v2926_v6 }
0x2584   :  { %v2923_v39 = vpop.f32.mrf.mxu1  ;;  %3751 = vmatprep.mubr.msk.bf16.mxu0 %vm3914_vm1, %v3913_v21  ;;  %3744 = vmatpush3.bf16.msra.mxu0 %v3100_v0 }
0x2585   :  { %3745 = vmatprep.subr.bf16.mxu0 %v3913_v21 }
0x2586   :  { %v3728_v3 = vpop.f32.mrf.mxu1 }
0x2588   :  { %3746 = vmatpush3.bf16.msra.mxu0 %v3099_v42 }
0x2589   :  { %3747 = vmatprep.subr.bf16.mxu0 %v3913_v21 }
0x2643   :  { %v2964_v10 = vpop.f32.mrf.mxu0 }
0x2644   :  { %v2970_v11 = vadd.f32 %v2964_v10, %v2814_v27  ;;  %v3284_v27 = vld [vmem:[%s4730_s9 + $0x50] sm:$0xff] }
0x2645   :  { %v3733_v12 = vpop.f32.mrf.mxu0  ;;  %v3098_v63 = vpack.c.bf16 %v3285_v1, %v3284_v27 }
0x2646   :  { %v2976_v14 = vadd.f32 %v2974_v56, %v2970_v11 }
0x2647   :  { %v2967_v46 = vpop.f32.mrf.mxu0  ;;  %3748 = vmatpush3.bf16.msra.mxu0 %v3098_v63 }
0x2648   :  { %v4647_v16 = vadd.f32 %v2976_v14, %v4370_v51  ;;  %v3278_v51 = vld [vmem:[%s4728_s7 + $0x30] sm:$0xff]  ;;  %3749 = vmatprep.subr.bf16.mxu0 %v3913_v21 }
0x2649   :  { %v3734_v17 = vpop.f32.mrf.mxu0  ;;  %v3024_v29 = vpack.c.bf16 %v3279_v36, %v3278_v51 }
0x264a   :  { %v2982_v19 = vsel %vm62_vm0, %v4647_v16, 0.0 }
0x264b   :  { %2983 = vadd.xlane.f32.xlu1 %v2982_v19  ;;  %3736 = vmatpush3.bf16.msra.mxu1 %v3024_v29 }
0x264c   :  { %3737 = vmatprep.subr.bf16.mxu1 %v3913_v21  ;;  %3750 = vmatpush3.bf16.msra.mxu0 %v3097_v26 }
0x264f   :  { %2992 = vadd.xlane.f32.xlu1 %v2991_v22  ;;  %3738 = vmatpush3.bf16.msra.mxu1 %v3023_v43 }
0x26d4   :  { %v2984_v23 = vpop.xlane.xlu1 %2983 }
0x26d5   :  { %v2986_v28 = vmul.f32 0.03125, %v2984_v23 }
0x26d7   :  { %v2988_v30 = vsub.f32 %v4647_v16, %v2986_v28 }
0x26d8   :  { %v2993_v5 = vpop.xlane.xlu1 %2992 }
0x26d9   :  { %v2990_v31 = vmul.f32 %v2988_v30, %v2988_v30  ;;  %v2997_v37 = vmul.f32 0.03125, %v2993_v5 }
0x26db   :  { %v2994_v35 = vsel %vm62_vm0, %v2990_v31, 0.0  ;;  %v2999_v45 = vadd.f32 1e-05, %v2997_v37 }
0x26dc   :  { %2995 = vadd.xlane.f32.xlu1 %v2994_v35 }
0x26dd   :  { %3854 = vrsqrt.f32 %v2999_v45 }
0x26ea   :  { %v3855_v25 = vpop.eup %3854 }
0x26eb   :  { %v3003_v54 = vmul.f32 %v3855_v25, %v2987_v13 }
0x26ed   :  { %v3009_v8 = vmul.f32 %v3008_v53, %v3003_v54 }
0x26ef   :  { %v3015_v24 = vadd.f32 %v3014_v55, %v3009_v8  ;;  %v3291_v8 = vld [vmem:[%s4731_s10] ss:$0 sm:$0xff] }
0x2765   :  { %v2996_v48 = vpop.xlane.xlu1 %2995 }
0x2766   :  { %v2998_v52 = vmul.f32 0.03125, %v2996_v48 }
0x2768   :  { %v3000_v58 = vadd.f32 1e-05, %v2998_v52 }
0x276a   :  { %3856 = vrsqrt.f32 %v3000_v58 }
0x2777   :  { %v3857_v49 = vpop.eup %3856 }
0x2778   :  { %v3004_v50 = vmul.f32 %v3857_v49, %v2988_v30 }
0x277a   :  { %v3010_v56 = vmul.f32 %v3008_v53, %v3004_v50 }
0x277c   :  { %v3016_v60 = vadd.f32 %v3014_v55, %v3010_v56  ;;  %v3292_v56 = vld [vmem:[%s4731_s10 + $0x1] ss:$0 sm:$0xff] }
0x277e   :  { %v3022_v15 = vpack.c.bf16 %v3016_v60, %v3015_v24 }
0x2780   :  { %3740 = vmatmul.mubr.msk.bf16.vlgmr.msra.gmra.mxu1 %vm62_vm0, %v3022_v15 }
0x2840   :  { %v3070_v4 = vpop.f32.mrf.mxu1 }
0x2841   :  { %v3071_v47 = vadd.f32 %v3280_v44, %v3070_v4 }
0x2842   :  { %v3741_v6 = vpop.f32.mrf.mxu1 }
0x2843   :  { %v3079_v7 = vmul.f32 0.70710677, %v3071_v47  ;;  %v3077_v12 = vmul.f32 0.5, %v3071_v47 }
0x2844   :  { %v3073_v39 = vpop.f32.mrf.mxu1 }
0x2845   :  { %3858 = verf.f32 %v3079_v7  ;;  %v3074_v3 = vadd.f32 %v3280_v44, %v3073_v39 }
0x2846   :  { %v3742_v9 = vpop.f32.mrf.mxu1 }
0x2847   :  { %v3080_v21 = vmul.f32 0.70710677, %v3074_v3  ;;  %v3078_v13 = vmul.f32 0.5, %v3074_v3 }
0x2849   :  { %3860 = verf.f32 %v3080_v21 }
0x2852   :  { %v3859_v34 = vpop.eup %3858 }
0x2853   :  { %v3083_v10 = vadd.f32 1.0, %v3859_v34 }
0x2855   :  { %v3085_v46 = vmul.f32 %v3083_v10, %v3077_v12 }
0x2856   :  { %v3861_v11 = vpop.eup %3860 }
0x2857   :  { %v3084_v14 = vadd.f32 1.0, %v3861_v11 }
0x2859   :  { %v3086_v17 = vmul.f32 %v3084_v14, %v3078_v13 }
0x285b   :  { %v3096_v19 = vpack.c.bf16 %v3086_v17, %v3085_v46 }
0x285d   :  { %3752 = vmatmul.mubr.msk.bf16.vlgmr.msra.gmra.mxu0 %vm1557_vm4, %v3096_v19 }
0x291d   :  { %v3142_v22 = vpop.f32.mrf.mxu0 }
0x291e   :  { %v3143_v23 = vadd.f32 %v3142_v22, %v3104_v20 }
0x291f   :  { %v3753_v28 = vpop.f32.mrf.mxu0 }
0x2920   :  { %v3149_v30 = vadd.f32 %v3143_v23, %v4633_v61 }
0x2921   :  { %v3145_v31 = vpop.f32.mrf.mxu0 }
0x2922   :  { %v3146_v35 = vadd.f32 %v3145_v31, %v3104_v20  ;;  %v3153_v51 = vsel %vm62_vm0, %v3149_v30, 0.0 }
0x2923   :  { %3154 = vadd.xlane.f32.xlu0 %v3153_v51  ;;  %v3754_v36 = vpop.f32.mrf.mxu0 }
0x2924   :  { %v3150_v29 = vadd.f32 %v3146_v35, %v4647_v16 }
0x2926   :  { %v3156_v40 = vsel %vm62_vm0, %v3150_v29, 0.0 }
0x2927   :  { %3157 = vadd.xlane.f32.xlu1 %v3156_v40 }
0x29ac   :  { %v3155_v41 = vpop.xlane.xlu0 %3154 }
0x29ad   :  { %v3159_v43 = vmul.f32 0.03125, %v3155_v41 }
0x29af   :  { %v3161_v5 = vsub.f32 %v3149_v30, %v3159_v43 }
0x29b0   :  { %v3158_v38 = vpop.xlane.xlu1 %3157 }
0x29b1   :  { %v3160_v59 = vmul.f32 0.03125, %v3158_v38  ;;  %v3163_v37 = vmul.f32 %v3161_v5, %v3161_v5 }
0x29b3   :  { %v3162_v45 = vsub.f32 %v3150_v29, %v3160_v59  ;;  %v3165_v61 = vsel %vm62_vm0, %v3163_v37, 0.0 }
0x29b4   :  { %3166 = vadd.xlane.f32.xlu1 %v3165_v61 }
0x29b5   :  { %v3164_v48 = vmul.f32 %v3162_v45, %v3162_v45 }
0x29b7   :  { %v3168_v52 = vsel %vm62_vm0, %v3164_v48, 0.0 }
0x29b8   :  { %3169 = vadd.xlane.f32.xlu1 %v3168_v52 }
0x2a3d   :  { %v3167_v58 = vpop.xlane.xlu1 %3166 }
0x2a3e   :  { %v3171_v25 = vmul.f32 0.03125, %v3167_v58 }
0x2a40   :  { %v3173_v16 = vadd.f32 1e-05, %v3171_v25 }
0x2a41   :  { %v3170_v54 = vpop.xlane.xlu1 %3169 }
0x2a42   :  { %3862 = vrsqrt.f32 %v3173_v16  ;;  %v3172_v53 = vmul.f32 0.03125, %v3170_v54 }
0x2a44   :  { %v3174_v49 = vadd.f32 1e-05, %v3172_v53 }
0x2a46   :  { %3864 = vrsqrt.f32 %v3174_v49 }
0x2a4f   :  { %v3863_v50 = vpop.eup %3862 }
0x2a50   :  { %v3177_v55 = vmul.f32 %v3863_v50, %v3161_v5 }
0x2a52   :  { %v3183_v24 = vmul.f32 %v3291_v8, %v3177_v55 }
0x2a53   :  { %v3865_v60 = vpop.eup %3864 }
0x2a54   :  { %v3178_v15 = vmul.f32 %v3865_v60, %v3162_v45  ;;  %v3189_v18 = vadd.f32 %v3292_v56, %v3183_v24 }
0x2a56   :  { %v3184_v57 = vmul.f32 %v3291_v8, %v3178_v15  ;;  %3191 = vst.msk [vmem:[#allocation5] sm:$0xff] %vm62_vm0, %v3189_v18 }
0x2a58   :  { %v3190_v0 = vadd.f32 %v3292_v56, %v3184_v57 }
0x2a5a   :  { %3192 = vst.msk [vmem:[#allocation5 + $0x8] sm:$0xff] %vm62_vm0, %v3190_v0 }
0x2a5b   :  { %3897 = shalt.err (!%p3894_p9)
}
0x2a5c   :  { %s3927_s10 = smov 128   ;;  %s3928_s26 = smov 8  }
0x2a5d   :  { %3204 = dma.vmem_to_hbm [thread:$0]  %s3199_s6, 256, %s4732_s11, [#allocation4], %s3927_s10, %s3927_s10, %s3928_s26  }
0x2a5e   :  { %3908 = dma.done.wait [#allocation4], 256  }
0x2a5f   :  { %3909 = vsyncadd [#allocation4], 4294967040 }
0x2a60   :  { %3208 = vsyncpa [#allocation3], 1 }
0x2a61   :  { %3209 = vsyncpa [#allocation4], 1 }

</bundles_post_ra>
